<compile_context>
chip_gen: v6e
topology: v6e:2x2x1
jax: 0.10.0
libtpu: 0.0.40
codegen_flags: <defaults>
</compile_context>

<pallas_src>
import functools

import jax
import jax.numpy as jnp
from jax import lax
from jax.experimental import pallas as pl
from jax.experimental.pallas import tpu as pltpu


def _round_up(x, m):
    return ((x + m - 1) // m) * m


def _backbone_pool_kernel(x_ref, ws_ref, bs_ref, w1_ref, b1_ref,
                          w2_ref, b2_ref, pooled_ref,
                          *, num_res_blocks, inv_p, true_p):
    """Backbone (pointwise stem + pointwise res blocks) + global average pool.

    One grid step handles a (1, pt, Cin) activation block of one batch row;
    the pooled (1, 1, C_pad) output block stays resident across the
    "arbitrary" P grid axis and accumulates the mean.
    """
    pi = pl.program_id(1)

    @pl.when(pi == 0)
    def _init():
        pooled_ref[...] = jnp.zeros_like(pooled_ref)

    _, pt, cin = x_ref.shape
    c_p = pooled_ref.shape[-1]
    m = pt
    x = x_ref[...].reshape(m, cin)                        # (M, Cin) bf16, unpadded

    # ---- Stem: pointwise conv (channel lift) + bias + ReLU -----------------
    if cin <= 8:
        # Tiny Cin (RGB video): Cin broadcast-MACs on the VPU, f32 accumulate.
        acc = None
        for c in range(cin):                              # static unroll
            term = (x[:, c:c + 1].astype(jnp.float32)
                    * ws_ref[c:c + 1, :].astype(jnp.float32))   # (M,1)*(1,C) bcast
            acc = term if acc is None else acc + term
        acc = acc + bs_ref[...]
    else:
        # Larger Cin: small-K MXU dot (K left unpadded; no HBM pad of x).
        acc = jnp.dot(x, ws_ref[...],
                      preferred_element_type=jnp.float32) + bs_ref[...]
    h = jnp.maximum(acc, 0.0).astype(jnp.bfloat16)        # (M, C_pad)

    # ---- Residual blocks: h = relu(h + W2 @ relu(W1 @ h + b1) + b2) --------
    def res_block(r, h):
        t = jnp.dot(h, w1_ref[r], preferred_element_type=jnp.float32)
        t = jnp.maximum(t + b1_ref[r], 0.0).astype(jnp.bfloat16)
        t = jnp.dot(t, w2_ref[r], preferred_element_type=jnp.float32)
        t = t + b2_ref[r]
        # f32 residual epilogue (v5e has no bf16 VPU).
        # TODO(synk): on v6e/v7x this epilogue could stay in bf16 to halve
        #   VPU/vreg pressure when pt is large.
        return jnp.maximum(h.astype(jnp.float32) + t, 0.0).astype(jnp.bfloat16)

    h = lax.fori_loop(0, num_res_blocks, res_block, h,
                      unroll=(True if num_res_blocks <= 16 else 8))

    # ---- Partial global-average pool (mask any zero-padded P rows) ---------
    hs = h.astype(jnp.float32)
    if true_p % pt != 0:   # static: only needed when P was padded in HBM
        row = lax.broadcasted_iota(jnp.int32, (m, 1), 0) + pi * pt
        hs = jnp.where(row < true_p, hs, 0.0)
    part = hs.sum(axis=0, keepdims=True) * inv_p          # (1, C_pad)
    pooled_ref[...] += part.reshape(pooled_ref.shape)


def visualnet_classifier_forward(x, params, num_res_blocks, *, m_target=2048):
    """x: (B, Cin, T, H, W) float32 (PyTorch NCDHW). Returns (B, num_classes)."""
    B, Cin, T, H, W = x.shape
    P = T * H * W
    C = params["w_stem"].shape[1]
    R = num_res_blocks

    c_p = _round_up(C, 128)              # lane-dense backbone channel width
    # TODO(synk): for production models on v6e/v7x pick C (hence c_p) as a
    #   multiple of 256 so the 256x256 MXUs are filled each pass.

    # One batch row per grid step: the "parallel" axis has B entries (v7x: both
    # TCs busy); the matmul M dimension is the P tile.
    bt = 1
    pt = min(_round_up(P, 8), _round_up(m_target, 8))
    P_pad = _round_up(P, pt)

    # NCDHW -> channels-last (B, P, Cin), bf16.  Cin is NOT padded in HBM.
    x_flat = jnp.transpose(x, (0, 2, 3, 4, 1)).reshape(B, P, Cin)
    x_flat = x_flat.astype(jnp.bfloat16)
    if P_pad != P:
        x_flat = jnp.pad(x_flat, ((0, 0), (0, P_pad - P), (0, 0)))

    # Zero-pad weights/biases to the padded backbone width (exact: padded
    # channels stay identically zero through the whole network).
    w_stem = jnp.pad(params["w_stem"], ((0, 0), (0, c_p - C))).astype(jnp.bfloat16)
    b_stem = jnp.pad(params["b_stem"], ((0, 0), (0, c_p - C)))
    w1 = jnp.pad(params["w1"],
                 ((0, 0), (0, c_p - C), (0, c_p - C))).astype(jnp.bfloat16)
    b1 = jnp.pad(params["b1"], ((0, 0), (0, 0), (0, c_p - C)))
    w2 = jnp.pad(params["w2"],
                 ((0, 0), (0, c_p - C), (0, c_p - C))).astype(jnp.bfloat16)
    b2 = jnp.pad(params["b2"], ((0, 0), (0, 0), (0, c_p - C)))

    kernel = functools.partial(_backbone_pool_kernel,
                               num_res_blocks=R, inv_p=1.0 / P, true_p=P)

    # Explicit scoped-VMEM limit from the actual (lane/sublane padded) budget.
    cin_lane = _round_up(Cin, 128)
    vmem_need = (
        2 * pt * cin_lane * 2                               # x (double-buffered)
        + _round_up(Cin, 8) * c_p * 2 + 8 * c_p * 4         # stem W + b
        + 2 * R * c_p * c_p * 2 + 2 * R * 8 * c_p * 4       # res weights (1-buffered)
        + 2 * 8 * c_p * 4                                   # pooled accumulator
        + 6 * pt * c_p * 4                                  # activation headroom
    )
    vmem_limit = int(min(max(2 * vmem_need, 32 << 20), 100 << 20))

    cost = pl.CostEstimate(
        flops=2 * B * P * (Cin * C + 2 * R * C * C),
        transcendentals=0,
        bytes_accessed=(B * P * Cin * 2
                        + (Cin * C + 2 * R * C * C) * 2
                        + (C + 2 * R * C) * 4
                        + B * c_p * 4))

    const = dict(pipeline_mode=pl.Buffered(1))   # weights: constant index_map
    pooled = pl.pallas_call(
        kernel,
        out_shape=jax.ShapeDtypeStruct((B, 1, c_p), jnp.float32),
        grid_spec=pltpu.PrefetchScalarGridSpec(
            num_scalar_prefetch=0,
            grid=(B // bt, P_pad // pt),
            in_specs=[
                pl.BlockSpec((bt, pt, Cin), lambda bi, pi: (bi, pi, 0)),         # x
                pl.BlockSpec((Cin, c_p), lambda bi, pi: (0, 0), **const),        # stem W
                pl.BlockSpec((1, c_p), lambda bi, pi: (0, 0), **const),          # stem b
                pl.BlockSpec((R, c_p, c_p), lambda bi, pi: (0, 0, 0), **const),  # res W1
                pl.BlockSpec((R, 1, c_p), lambda bi, pi: (0, 0, 0), **const),    # res b1
                pl.BlockSpec((R, c_p, c_p), lambda bi, pi: (0, 0, 0), **const),  # res W2
                pl.BlockSpec((R, 1, c_p), lambda bi, pi: (0, 0, 0), **const),    # res b2
            ],
            out_specs=pl.BlockSpec((bt, 1, c_p), lambda bi, pi: (bi, 0, 0)),
        ),
        compiler_params=pltpu.CompilerParams(
            dimension_semantics=("parallel", "arbitrary"),
            vmem_limit_bytes=vmem_limit),
        cost_estimate=cost,
    )(x_flat, w_stem, b_stem, w1, b1, w2, b2)

    # Final nn.Linear on pooled features: tiny (B,C)@(C,num_classes) matmul,
    # hoisted out of the kernel (avoids masked 10-lane stores / M=1 in-kernel).
    y = pooled[:, 0, :C] @ params["w_lin"] + params["b_lin"][0]
    return y


def reference_forward(x, params, num_res_blocks):
    """Pure-JAX f32 reference with identical semantics (correctness check)."""
    B, Cin, T, H, W = x.shape
    xf = jnp.transpose(x, (0, 2, 3, 4, 1)).reshape(B, -1, Cin)
    h = jnp.maximum(xf @ params["w_stem"] + params["b_stem"], 0.0)
    for r in range(num_res_blocks):
        t = jnp.maximum(h @ params["w1"][r] + params["b1"][r], 0.0)
        t = t @ params["w2"][r] + params["b2"][r]
        h = jnp.maximum(h + t, 0.0)
    pooled = h.mean(axis=1)            # avg_pool3d over full extent + squeeze
    return pooled @ params["w_lin"] + params["b_lin"][0]


def init_params(key, cin, channels, num_res_blocks, num_classes):
    ks = jax.random.split(key, 8)
    s = 0.05
    return {
        "w_stem": s * jax.random.normal(ks[0], (cin, channels), jnp.float32),
        "b_stem": s * jax.random.normal(ks[1], (1, channels), jnp.float32),
        "w1": s * jax.random.normal(ks[2], (num_res_blocks, channels, channels), jnp.float32),
        "b1": s * jax.random.normal(ks[3], (num_res_blocks, 1, channels), jnp.float32),
        "w2": s * jax.random.normal(ks[4], (num_res_blocks, channels, channels), jnp.float32),
        "b2": s * jax.random.normal(ks[5], (num_res_blocks, 1, channels), jnp.float32),
        "w_lin": s * jax.random.normal(ks[6], (channels, num_classes), jnp.float32),
        "b_lin": s * jax.random.normal(ks[7], (1, num_classes), jnp.float32),
    }


if __name__ == "__main__":
    # Small shapes: batch=2, rgb video 3x4x8x8, 32 backbone channels, 10 classes.
    B, Cin, T, H, W = 2, 3, 4, 8, 8
    CHANNELS = 32                  # == visualnet.path1.resblocks_out_channels
    NUM_RES_BLOCKS = 4
    NUM_CLASSES = 10

    key = jax.random.PRNGKey(0)
    kx, kp = jax.random.split(key)
    x = jax.random.normal(kx, (B, Cin, T, H, W), jnp.float32)
    params = init_params(kp, Cin, CHANNELS, NUM_RES_BLOCKS, NUM_CLASSES)

    y = jax.block_until_ready(
        visualnet_classifier_forward(x, params, NUM_RES_BLOCKS))
    y_ref = jax.block_until_ready(reference_forward(x, params, NUM_RES_BLOCKS))

    assert y.shape == (B, NUM_CLASSES), y.shape
    # bf16 matmuls (f32 accumulate) vs pure-f32 reference -> loosened tolerance.
    assert jnp.allclose(y, y_ref, atol=2e-2, rtol=2e-2), (y, y_ref)

    print("KERNEL_OK")
</pallas_src>

<mosaic_0001>
module attributes {stable_mosaic.version = 11 : i64} {
  func.func @_backbone_pool_kernel(%arg0: i32, %arg1: i32, %arg2: memref<1x256x3xbf16, #tpu.memory_space<vmem>>, %arg3: memref<3x128xbf16, #tpu.memory_space<vmem>>, %arg4: memref<1x128xf32, #tpu.memory_space<vmem>>, %arg5: memref<4x128x128xbf16, #tpu.memory_space<vmem>>, %arg6: memref<4x1x128xf32, #tpu.memory_space<vmem>>, %arg7: memref<4x128x128xbf16, #tpu.memory_space<vmem>>, %arg8: memref<4x1x128xf32, #tpu.memory_space<vmem>>, %arg9: memref<1x1x128xf32, #tpu.memory_space<vmem>>) attributes {dimension_semantics = [#tpu.dimension_semantics<parallel>, #tpu.dimension_semantics<arbitrary>], iteration_bounds = array<i64: 2, 1>, scalar_prefetch = 0 : i64, scratch_operands = 0 : i64, tpu.core_type = #tpu.core_type<tc>, window_params = [{transform_indices = @transform_0, window_bounds = array<i64: 1, 256, 3>}, {pipeline_mode = #tpu.pipeline_mode<synchronous>, transform_indices = @transform_1, window_bounds = array<i64: 3, 128>}, {pipeline_mode = #tpu.pipeline_mode<synchronous>, transform_indices = @transform_2, window_bounds = array<i64: 1, 128>}, {pipeline_mode = #tpu.pipeline_mode<synchronous>, transform_indices = @transform_3, window_bounds = array<i64: 4, 128, 128>}, {pipeline_mode = #tpu.pipeline_mode<synchronous>, transform_indices = @transform_4, window_bounds = array<i64: 4, 1, 128>}, {pipeline_mode = #tpu.pipeline_mode<synchronous>, transform_indices = @transform_5, window_bounds = array<i64: 4, 128, 128>}, {pipeline_mode = #tpu.pipeline_mode<synchronous>, transform_indices = @transform_6, window_bounds = array<i64: 4, 1, 128>}, {transform_indices = @transform_7, window_bounds = array<i64: 1, 1, 128>}]} {
    %c0_i32 = arith.constant 0 : i32
    %0 = arith.cmpi eq, %arg1, %c0_i32 : i32
    %1 = arith.extui %0 : i1 to i32
    %c0_i32_0 = arith.constant 0 : i32
    %2 = arith.cmpi ne, %1, %c0_i32_0 : i32
    scf.if %2 {
      %cst_66 = arith.constant 0.000000e+00 : f32
      %147 = vector.broadcast %cst_66 : f32 to vector<1x1x128xf32>
      %c0_67 = arith.constant 0 : index
      %c0_68 = arith.constant 0 : index
      %c0_69 = arith.constant 0 : index
      %148 = vector.load %arg9[%c0_67, %c0_68, %c0_69] : memref<1x1x128xf32, #tpu.memory_space<vmem>>, vector<1x1x128xf32>
      tpu.vector_store %arg9[%c0_67, %c0_68, %c0_69], %147 {strides = array<i32>} : memref<1x1x128xf32, #tpu.memory_space<vmem>>, vector<1x1x128xf32>,
    } else {
    }
    %c0 = arith.constant 0 : index
    %c0_1 = arith.constant 0 : index
    %c0_2 = arith.constant 0 : index
    %3 = vector.load %arg2[%c0, %c0_1, %c0_2] : memref<1x256x3xbf16, #tpu.memory_space<vmem>>, vector<1x256x3xbf16>
    %4 = vector.shape_cast %3 : vector<1x256x3xbf16> to vector<256x3xbf16>
    %5 = vector.extract_strided_slice %4 {offsets = [0, 0], sizes = [256, 1], strides = [1, 1]} : vector<256x3xbf16> to vector<256x1xbf16>
    %6 = arith.extf %5 : vector<256x1xbf16> to vector<256x1xf32>
    %c0_3 = arith.constant 0 : index
    %c0_4 = arith.constant 0 : index
    %7 = vector.load %arg3[%c0_3, %c0_4] : memref<3x128xbf16, #tpu.memory_space<vmem>>, vector<1x128xbf16>
    %8 = arith.extf %7 : vector<1x128xbf16> to vector<1x128xf32>
    %9 = vector.broadcast %6 : vector<256x1xf32> to vector<256x128xf32>
    %10 = vector.broadcast %8 : vector<1x128xf32> to vector<256x128xf32>
    %11 = arith.mulf %9, %10 : vector<256x128xf32>
    %12 = vector.extract_strided_slice %4 {offsets = [0, 1], sizes = [256, 1], strides = [1, 1]} : vector<256x3xbf16> to vector<256x1xbf16>
    %13 = arith.extf %12 : vector<256x1xbf16> to vector<256x1xf32>
    %c1 = arith.constant 1 : index
    %c0_5 = arith.constant 0 : index
    %14 = vector.load %arg3[%c1, %c0_5] : memref<3x128xbf16, #tpu.memory_space<vmem>>, vector<1x128xbf16>
    %15 = arith.extf %14 : vector<1x128xbf16> to vector<1x128xf32>
    %16 = vector.broadcast %13 : vector<256x1xf32> to vector<256x128xf32>
    %17 = vector.broadcast %15 : vector<1x128xf32> to vector<256x128xf32>
    %18 = arith.mulf %16, %17 : vector<256x128xf32>
    %19 = arith.addf %11, %18 : vector<256x128xf32>
    %20 = vector.extract_strided_slice %4 {offsets = [0, 2], sizes = [256, 1], strides = [1, 1]} : vector<256x3xbf16> to vector<256x1xbf16>
    %21 = arith.extf %20 : vector<256x1xbf16> to vector<256x1xf32>
    %c2 = arith.constant 2 : index
    %c0_6 = arith.constant 0 : index
    %22 = vector.load %arg3[%c2, %c0_6] : memref<3x128xbf16, #tpu.memory_space<vmem>>, vector<1x128xbf16>
    %23 = arith.extf %22 : vector<1x128xbf16> to vector<1x128xf32>
    %24 = vector.broadcast %21 : vector<256x1xf32> to vector<256x128xf32>
    %25 = vector.broadcast %23 : vector<1x128xf32> to vector<256x128xf32>
    %26 = arith.mulf %24, %25 : vector<256x128xf32>
    %27 = arith.addf %19, %26 : vector<256x128xf32>
    %c0_7 = arith.constant 0 : index
    %c0_8 = arith.constant 0 : index
    %28 = vector.load %arg4[%c0_7, %c0_8] : memref<1x128xf32, #tpu.memory_space<vmem>>, vector<1x128xf32>
    %29 = vector.broadcast %28 : vector<1x128xf32> to vector<256x128xf32>
    %30 = arith.addf %27, %29 : vector<256x128xf32>
    %cst = arith.constant 0.000000e+00 : f32
    %31 = vector.broadcast %cst : f32 to vector<256x128xf32>
    %32 = arith.maximumf %30, %31 : vector<256x128xf32>
    %33 = arith.truncf %32 : vector<256x128xf32> to vector<256x128xbf16>
    %c0_i32_9 = arith.constant 0 : i32
    %34 = arith.index_cast %c0_i32_9 : i32 to index
    %c0_10 = arith.constant 0 : index
    %c0_11 = arith.constant 0 : index
    %35 = vector.load %arg5[%34, %c0_10, %c0_11] : memref<4x128x128xbf16, #tpu.memory_space<vmem>>, vector<1x128x128xbf16>
    %36 = vector.shape_cast %35 : vector<1x128x128xbf16> to vector<128x128xbf16>
    %cst_12 = arith.constant dense<0.000000e+00> : vector<256x128xf32>
    %37 = tpu.matmul %33, %36, %cst_12 {dimension_numbers = #tpu.dot_dimension_numbers<[1], [0], [0], [1], [0, 0, 1, 1], [], []>} : vector<256x128xbf16>, vector<128x128xbf16>, vector<256x128xf32> -> vector<256x128xf32>
    %38 = arith.index_cast %c0_i32_9 : i32 to index
    %c0_13 = arith.constant 0 : index
    %c0_14 = arith.constant 0 : index
    %39 = vector.load %arg6[%38, %c0_13, %c0_14] : memref<4x1x128xf32, #tpu.memory_space<vmem>>, vector<1x1x128xf32>
    %40 = vector.shape_cast %39 : vector<1x1x128xf32> to vector<1x128xf32>
    %41 = vector.broadcast %40 : vector<1x128xf32> to vector<256x128xf32>
    %42 = arith.addf %37, %41 : vector<256x128xf32>
    %cst_15 = arith.constant 0.000000e+00 : f32
    %43 = vector.broadcast %cst_15 : f32 to vector<256x128xf32>
    %44 = arith.maximumf %42, %43 : vector<256x128xf32>
    %45 = arith.truncf %44 : vector<256x128xf32> to vector<256x128xbf16>
    %46 = arith.index_cast %c0_i32_9 : i32 to index
    %c0_16 = arith.constant 0 : index
    %c0_17 = arith.constant 0 : index
    %47 = vector.load %arg7[%46, %c0_16, %c0_17] : memref<4x128x128xbf16, #tpu.memory_space<vmem>>, vector<1x128x128xbf16>
    %48 = vector.shape_cast %47 : vector<1x128x128xbf16> to vector<128x128xbf16>
    %cst_18 = arith.constant dense<0.000000e+00> : vector<256x128xf32>
    %49 = tpu.matmul %45, %48, %cst_18 {dimension_numbers = #tpu.dot_dimension_numbers<[1], [0], [0], [1], [0, 0, 1, 1], [], []>} : vector<256x128xbf16>, vector<128x128xbf16>, vector<256x128xf32> -> vector<256x128xf32>
    %50 = arith.index_cast %c0_i32_9 : i32 to index
    %c0_19 = arith.constant 0 : index
    %c0_20 = arith.constant 0 : index
    %51 = vector.load %arg8[%50, %c0_19, %c0_20] : memref<4x1x128xf32, #tpu.memory_space<vmem>>, vector<1x1x128xf32>
    %52 = vector.shape_cast %51 : vector<1x1x128xf32> to vector<1x128xf32>
    %53 = vector.broadcast %52 : vector<1x128xf32> to vector<256x128xf32>
    %54 = arith.addf %49, %53 : vector<256x128xf32>
    %55 = arith.extf %33 : vector<256x128xbf16> to vector<256x128xf32>
    %56 = arith.addf %55, %54 : vector<256x128xf32>
    %cst_21 = arith.constant 0.000000e+00 : f32
    %57 = vector.broadcast %cst_21 : f32 to vector<256x128xf32>
    %58 = arith.maximumf %56, %57 : vector<256x128xf32>
    %59 = arith.truncf %58 : vector<256x128xf32> to vector<256x128xbf16>
    %c1_i32 = arith.constant 1 : i32
    %60 = arith.index_cast %c1_i32 : i32 to index
    %c0_22 = arith.constant 0 : index
    %c0_23 = arith.constant 0 : index
    %61 = vector.load %arg5[%60, %c0_22, %c0_23] : memref<4x128x128xbf16, #tpu.memory_space<vmem>>, vector<1x128x128xbf16>
    %62 = vector.shape_cast %61 : vector<1x128x128xbf16> to vector<128x128xbf16>
    %cst_24 = arith.constant dense<0.000000e+00> : vector<256x128xf32>
    %63 = tpu.matmul %59, %62, %cst_24 {dimension_numbers = #tpu.dot_dimension_numbers<[1], [0], [0], [1], [0, 0, 1, 1], [], []>} : vector<256x128xbf16>, vector<128x128xbf16>, vector<256x128xf32> -> vector<256x128xf32>
    %64 = arith.index_cast %c1_i32 : i32 to index
    %c0_25 = arith.constant 0 : index
    %c0_26 = arith.constant 0 : index
    %65 = vector.load %arg6[%64, %c0_25, %c0_26] : memref<4x1x128xf32, #tpu.memory_space<vmem>>, vector<1x1x128xf32>
    %66 = vector.shape_cast %65 : vector<1x1x128xf32> to vector<1x128xf32>
    %67 = vector.broadcast %66 : vector<1x128xf32> to vector<256x128xf32>
    %68 = arith.addf %63, %67 : vector<256x128xf32>
    %cst_27 = arith.constant 0.000000e+00 : f32
    %69 = vector.broadcast %cst_27 : f32 to vector<256x128xf32>
    %70 = arith.maximumf %68, %69 : vector<256x128xf32>
    %71 = arith.truncf %70 : vector<256x128xf32> to vector<256x128xbf16>
    %72 = arith.index_cast %c1_i32 : i32 to index
    %c0_28 = arith.constant 0 : index
    %c0_29 = arith.constant 0 : index
    %73 = vector.load %arg7[%72, %c0_28, %c0_29] : memref<4x128x128xbf16, #tpu.memory_space<vmem>>, vector<1x128x128xbf16>
    %74 = vector.shape_cast %73 : vector<1x128x128xbf16> to vector<128x128xbf16>
    %cst_30 = arith.constant dense<0.000000e+00> : vector<256x128xf32>
    %75 = tpu.matmul %71, %74, %cst_30 {dimension_numbers = #tpu.dot_dimension_numbers<[1], [0], [0], [1], [0, 0, 1, 1], [], []>} : vector<256x128xbf16>, vector<128x128xbf16>, vector<256x128xf32> -> vector<256x128xf32>
    %76 = arith.index_cast %c1_i32 : i32 to index
    %c0_31 = arith.constant 0 : index
    %c0_32 = arith.constant 0 : index
    %77 = vector.load %arg8[%76, %c0_31, %c0_32] : memref<4x1x128xf32, #tpu.memory_space<vmem>>, vector<1x1x128xf32>
    %78 = vector.shape_cast %77 : vector<1x1x128xf32> to vector<1x128xf32>
    %79 = vector.broadcast %78 : vector<1x128xf32> to vector<256x128xf32>
    %80 = arith.addf %75, %79 : vector<256x128xf32>
    %81 = arith.extf %59 : vector<256x128xbf16> to vector<256x128xf32>
    %82 = arith.addf %81, %80 : vector<256x128xf32>
    %cst_33 = arith.constant 0.000000e+00 : f32
    %83 = vector.broadcast %cst_33 : f32 to vector<256x128xf32>
    %84 = arith.maximumf %82, %83 : vector<256x128xf32>
    %85 = arith.truncf %84 : vector<256x128xf32> to vector<256x128xbf16>
    %c2_i32 = arith.constant 2 : i32
    %86 = arith.index_cast %c2_i32 : i32 to index
    %c0_34 = arith.constant 0 : index
    %c0_35 = arith.constant 0 : index
    %87 = vector.load %arg5[%86, %c0_34, %c0_35] : memref<4x128x128xbf16, #tpu.memory_space<vmem>>, vector<1x128x128xbf16>
    %88 = vector.shape_cast %87 : vector<1x128x128xbf16> to vector<128x128xbf16>
    %cst_36 = arith.constant dense<0.000000e+00> : vector<256x128xf32>
    %89 = tpu.matmul %85, %88, %cst_36 {dimension_numbers = #tpu.dot_dimension_numbers<[1], [0], [0], [1], [0, 0, 1, 1], [], []>} : vector<256x128xbf16>, vector<128x128xbf16>, vector<256x128xf32> -> vector<256x128xf32>
    %90 = arith.index_cast %c2_i32 : i32 to index
    %c0_37 = arith.constant 0 : index
    %c0_38 = arith.constant 0 : index
    %91 = vector.load %arg6[%90, %c0_37, %c0_38] : memref<4x1x128xf32, #tpu.memory_space<vmem>>, vector<1x1x128xf32>
    %92 = vector.shape_cast %91 : vector<1x1x128xf32> to vector<1x128xf32>
    %93 = vector.broadcast %92 : vector<1x128xf32> to vector<256x128xf32>
    %94 = arith.addf %89, %93 : vector<256x128xf32>
    %cst_39 = arith.constant 0.000000e+00 : f32
    %95 = vector.broadcast %cst_39 : f32 to vector<256x128xf32>
    %96 = arith.maximumf %94, %95 : vector<256x128xf32>
    %97 = arith.truncf %96 : vector<256x128xf32> to vector<256x128xbf16>
    %98 = arith.index_cast %c2_i32 : i32 to index
    %c0_40 = arith.constant 0 : index
    %c0_41 = arith.constant 0 : index
    %99 = vector.load %arg7[%98, %c0_40, %c0_41] : memref<4x128x128xbf16, #tpu.memory_space<vmem>>, vector<1x128x128xbf16>
    %100 = vector.shape_cast %99 : vector<1x128x128xbf16> to vector<128x128xbf16>
    %cst_42 = arith.constant dense<0.000000e+00> : vector<256x128xf32>
    %101 = tpu.matmul %97, %100, %cst_42 {dimension_numbers = #tpu.dot_dimension_numbers<[1], [0], [0], [1], [0, 0, 1, 1], [], []>} : vector<256x128xbf16>, vector<128x128xbf16>, vector<256x128xf32> -> vector<256x128xf32>
    %102 = arith.index_cast %c2_i32 : i32 to index
    %c0_43 = arith.constant 0 : index
    %c0_44 = arith.constant 0 : index
    %103 = vector.load %arg8[%102, %c0_43, %c0_44] : memref<4x1x128xf32, #tpu.memory_space<vmem>>, vector<1x1x128xf32>
    %104 = vector.shape_cast %103 : vector<1x1x128xf32> to vector<1x128xf32>
    %105 = vector.broadcast %104 : vector<1x128xf32> to vector<256x128xf32>
    %106 = arith.addf %101, %105 : vector<256x128xf32>
    %107 = arith.extf %85 : vector<256x128xbf16> to vector<256x128xf32>
    %108 = arith.addf %107, %106 : vector<256x128xf32>
    %cst_45 = arith.constant 0.000000e+00 : f32
    %109 = vector.broadcast %cst_45 : f32 to vector<256x128xf32>
    %110 = arith.maximumf %108, %109 : vector<256x128xf32>
    %111 = arith.truncf %110 : vector<256x128xf32> to vector<256x128xbf16>
    %c3_i32 = arith.constant 3 : i32
    %112 = arith.index_cast %c3_i32 : i32 to index
    %c0_46 = arith.constant 0 : index
    %c0_47 = arith.constant 0 : index
    %113 = vector.load %arg5[%112, %c0_46, %c0_47] : memref<4x128x128xbf16, #tpu.memory_space<vmem>>, vector<1x128x128xbf16>
    %114 = vector.shape_cast %113 : vector<1x128x128xbf16> to vector<128x128xbf16>
    %cst_48 = arith.constant dense<0.000000e+00> : vector<256x128xf32>
    %115 = tpu.matmul %111, %114, %cst_48 {dimension_numbers = #tpu.dot_dimension_numbers<[1], [0], [0], [1], [0, 0, 1, 1], [], []>} : vector<256x128xbf16>, vector<128x128xbf16>, vector<256x128xf32> -> vector<256x128xf32>
    %116 = arith.index_cast %c3_i32 : i32 to index
    %c0_49 = arith.constant 0 : index
    %c0_50 = arith.constant 0 : index
    %117 = vector.load %arg6[%116, %c0_49, %c0_50] : memref<4x1x128xf32, #tpu.memory_space<vmem>>, vector<1x1x128xf32>
    %118 = vector.shape_cast %117 : vector<1x1x128xf32> to vector<1x128xf32>
    %119 = vector.broadcast %118 : vector<1x128xf32> to vector<256x128xf32>
    %120 = arith.addf %115, %119 : vector<256x128xf32>
    %cst_51 = arith.constant 0.000000e+00 : f32
    %121 = vector.broadcast %cst_51 : f32 to vector<256x128xf32>
    %122 = arith.maximumf %120, %121 : vector<256x128xf32>
    %123 = arith.truncf %122 : vector<256x128xf32> to vector<256x128xbf16>
    %124 = arith.index_cast %c3_i32 : i32 to index
    %c0_52 = arith.constant 0 : index
    %c0_53 = arith.constant 0 : index
    %125 = vector.load %arg7[%124, %c0_52, %c0_53] : memref<4x128x128xbf16, #tpu.memory_space<vmem>>, vector<1x128x128xbf16>
    %126 = vector.shape_cast %125 : vector<1x128x128xbf16> to vector<128x128xbf16>
    %cst_54 = arith.constant dense<0.000000e+00> : vector<256x128xf32>
    %127 = tpu.matmul %123, %126, %cst_54 {dimension_numbers = #tpu.dot_dimension_numbers<[1], [0], [0], [1], [0, 0, 1, 1], [], []>} : vector<256x128xbf16>, vector<128x128xbf16>, vector<256x128xf32> -> vector<256x128xf32>
    %128 = arith.index_cast %c3_i32 : i32 to index
    %c0_55 = arith.constant 0 : index
    %c0_56 = arith.constant 0 : index
    %129 = vector.load %arg8[%128, %c0_55, %c0_56] : memref<4x1x128xf32, #tpu.memory_space<vmem>>, vector<1x1x128xf32>
    %130 = vector.shape_cast %129 : vector<1x1x128xf32> to vector<1x128xf32>
    %131 = vector.broadcast %130 : vector<1x128xf32> to vector<256x128xf32>
    %132 = arith.addf %127, %131 : vector<256x128xf32>
    %133 = arith.extf %111 : vector<256x128xbf16> to vector<256x128xf32>
    %134 = arith.addf %133, %132 : vector<256x128xf32>
    %cst_57 = arith.constant 0.000000e+00 : f32
    %135 = vector.broadcast %cst_57 : f32 to vector<256x128xf32>
    %136 = arith.maximumf %134, %135 : vector<256x128xf32>
    %137 = arith.truncf %136 : vector<256x128xf32> to vector<256x128xbf16>
    %c4_i32 = arith.constant 4 : i32
    %138 = arith.extf %137 : vector<256x128xbf16> to vector<256x128xf32>
    %cst_58 = arith.constant dense<0.000000e+00> : vector<128xf32>
    %139 = vector.multi_reduction <add>, %138, %cst_58 [0] : vector<256x128xf32> to vector<128xf32>
    %140 = vector.shape_cast %139 : vector<128xf32> to vector<1x128xf32>
    %cst_59 = arith.constant 3.906250e-03 : f32
    %141 = vector.broadcast %cst_59 : f32 to vector<1x128xf32>
    %142 = arith.mulf %140, %141 : vector<1x128xf32>
    %c0_60 = arith.constant 0 : index
    %c0_61 = arith.constant 0 : index
    %c0_62 = arith.constant 0 : index
    %143 = vector.load %arg9[%c0_60, %c0_61, %c0_62] : memref<1x1x128xf32, #tpu.memory_space<vmem>>, vector<1x1x128xf32>
    %144 = vector.shape_cast %142 : vector<1x128xf32> to vector<1x1x128xf32>
    %145 = arith.addf %143, %144 : vector<1x1x128xf32>
    %c0_63 = arith.constant 0 : index
    %c0_64 = arith.constant 0 : index
    %c0_65 = arith.constant 0 : index
    %146 = vector.load %arg9[%c0_63, %c0_64, %c0_65] : memref<1x1x128xf32, #tpu.memory_space<vmem>>, vector<1x1x128xf32>
    tpu.vector_store %arg9[%c0_63, %c0_64, %c0_65], %145 {strides = array<i32>} : memref<1x1x128xf32, #tpu.memory_space<vmem>>, vector<1x1x128xf32>,
    return
  }
  func.func @transform_0(%arg0: i32, %arg1: i32) -> (i32, i32, i32) {
    %c0_i32 = arith.constant 0 : i32
    %c0_i32_0 = arith.constant 0 : i32
    return %arg0, %arg1, %c0_i32 : i32, i32, i32
  }
  func.func @transform_1(%arg0: i32, %arg1: i32) -> (i32, i32) {
    %c0_i32 = arith.constant 0 : i32
    %c0_i32_0 = arith.constant 0 : i32
    %c0_i32_1 = arith.constant 0 : i32
    return %c0_i32, %c0_i32_0 : i32, i32
  }
  func.func @transform_2(%arg0: i32, %arg1: i32) -> (i32, i32) {
    %c0_i32 = arith.constant 0 : i32
    %c0_i32_0 = arith.constant 0 : i32
    %c0_i32_1 = arith.constant 0 : i32
    return %c0_i32, %c0_i32_0 : i32, i32
  }
  func.func @transform_3(%arg0: i32, %arg1: i32) -> (i32, i32, i32) {
    %c0_i32 = arith.constant 0 : i32
    %c0_i32_0 = arith.constant 0 : i32
    %c0_i32_1 = arith.constant 0 : i32
    %c0_i32_2 = arith.constant 0 : i32
    return %c0_i32, %c0_i32_0, %c0_i32_1 : i32, i32, i32
  }
  func.func @transform_4(%arg0: i32, %arg1: i32) -> (i32, i32, i32) {
    %c0_i32 = arith.constant 0 : i32
    %c0_i32_0 = arith.constant 0 : i32
    %c0_i32_1 = arith.constant 0 : i32
    %c0_i32_2 = arith.constant 0 : i32
    return %c0_i32, %c0_i32_0, %c0_i32_1 : i32, i32, i32
  }
  func.func @transform_5(%arg0: i32, %arg1: i32) -> (i32, i32, i32) {
    %c0_i32 = arith.constant 0 : i32
    %c0_i32_0 = arith.constant 0 : i32
    %c0_i32_1 = arith.constant 0 : i32
    %c0_i32_2 = arith.constant 0 : i32
    return %c0_i32, %c0_i32_0, %c0_i32_1 : i32, i32, i32
  }
  func.func @transform_6(%arg0: i32, %arg1: i32) -> (i32, i32, i32) {
    %c0_i32 = arith.constant 0 : i32
    %c0_i32_0 = arith.constant 0 : i32
    %c0_i32_1 = arith.constant 0 : i32
    %c0_i32_2 = arith.constant 0 : i32
    return %c0_i32, %c0_i32_0, %c0_i32_1 : i32, i32, i32
  }
  func.func @transform_7(%arg0: i32, %arg1: i32) -> (i32, i32, i32) {
    %c0_i32 = arith.constant 0 : i32
    %c0_i32_0 = arith.constant 0 : i32
    %c0_i32_1 = arith.constant 0 : i32
    return %arg0, %c0_i32, %c0_i32_0 : i32, i32, i32
  }
}

</mosaic_0001>

<bundles_post_ra>
// kernel: tpu_custom_call.1
= control target key start
LH: loop header
LB: loop body
LE: loop exit
PB: predicated region body
PF: predicated region fallthrough
CT: control target
= control target key end

     0   :  { %12 = vsyncpa [#allocation3], 0  ;;  %s6161_s0 = inlined_call_operand.vmem [shape: bf16[2,256,3], index: 0, kind: input, shape index: {}]   ;;  %s6162_s1 = inlined_call_operand.vmem [shape: bf16[3,128], index: 1, kind: input, shape index: {}]   ;;  %s6163_s2 = inlined_call_operand.vmem [shape: f32[1,128], index: 2, kind: input, shape index: {}]   ;;  %s6164_s3 = inlined_call_operand.vmem [shape: bf16[4,128,128], index: 3, kind: input, shape index: {}]   ;;  %s6165_s4 = inlined_call_operand.vmem [shape: f32[4,1,128], index: 4, kind: input, shape index: {}]   ;;  %s6166_s5 = inlined_call_operand.hbm [shape: bf16[4,128,128], index: 5, kind: input, shape index: {}]   ;;  %s6167_s6 = inlined_call_operand.vmem [shape: f32[4,1,128], index: 6, kind: input, shape index: {}]   ;;  %s6168_s7 = inlined_call_operand.hbm [shape: f32[2,1,128], index: 7, kind: output, shape index: {}]  }
   0x1   :  { %13 = vsyncpa [#allocation4], 0 }
   0x2   :  { %15 = vsyncpa [#allocation4 + $0x1], 0  ;;  %s5100_s24 = smov 0   ;;  %s5102_s25 = smov 0  }
   0x3   :  { %s5104_s26 = smov 0   ;;  %s5106_s27 = smov 0  }
   0x4   :  { %s5108_s28 = smov 0   ;;  %s5110_s29 = smov 0  }
   0x5 LB: > { %s3743_s30 = sadd.s32 4294967295, %s5050_s29   ;;  %s3744_s8 = sadd.s32 4294967294, %s5050_s29   ;;  %s5050_s29 = sphi %s5110_s29, %s21_s29   ;;  %s5046_s28 = sphi %s5108_s28, %s6177_s28   ;;  %s5042_s27 = sphi %s5106_s27, %s6176_s27   ;;  %s5038_s26 = sphi %s5104_s26, %s6175_s26   ;;  %s5034_s25 = sphi %s5102_s25, %s6174_s25   ;;  %s5030_s24 = sphi %s5100_s24, %s6173_s24  }
   0x6   : > { %s33_s9 = sadd.s32 1, %s5046_s28  ;;  %s194_s10 = sadd.s32 1, %s5038_s26 }
   0x7   : > { %p35_p0 = scmp.ge.s32.totalorder %s33_s9, 2  ;;  %p204_p1 = scmp.ne.s32.totalorder %s5038_s26, %s5034_s25 }
   0x8   : > { %p205_p2 = scmp.eq.s32.totalorder %s3743_s30, 1  ;;  %p210_p3 = scmp.ne.s32.totalorder %s5034_s25, %s5030_s24 }
   0x9   : > { %s6179_s9 = smov (%p35_p0, %s33_s9), 0  ;;  %p211_p5 = scmp.eq.s32.totalorder %s3744_s8, 1 }
   0xa   : > { %p5140_p4 = por %p205_p2, %p204_p1  ;;  %s191_s12 = ssub.s32 %s5046_s28, %s6179_s9 }
   0xb   : > { %p3745_p6 = scmp.ge.s32.totalorder %s5050_s29, 1  ;;  %p192_p7 = scmp.eq.s32.totalorder %s191_s12, 0 }
   0xc   : > { %p5147_p8 = por %p211_p5, %p210_p3  ;;  %p218_p9 = scmp.lt.s32.totalorder %s5050_s29, 3 }
   0xd   : > { %s5153_s14 = scalar_select %p192_p7, %s5038_s26, %s194_s10  }
   0xe   : > { %p5155_p10 = pnand %p3745_p6, %p218_p9  ;;  %p5159_p11 = scmp.eq.s32.totalorder %s3743_s30, 0 }
   0xf   : > { %s5052_s17 = smov [#allocation2]  }
  0x10   : > { %p4544_p12 = pneg %p5155_p10  ;;  %s242_s18 = sshll.u32 %s5052_s17, 4  ;;  %s243_s18 = int_to_ptr.vmem [resolvable:$true] %s242_s18 }
  0x11   : > { %s4955_s19 = scalar_lea.vmem %s243_s18, 4096  ;;  %p4963_p5 = scmp.lt.s32.totalorder %s243_s18, %s243_s18 }
  0x12   : > { %p4545_p13 = pnand %p5159_p11, %p4544_p12  ;;  %p4956_p1 = scmp.ne.s32.totalorder %s243_s18, %s4955_s19 }
  0x13   : > { %p4964_p6 = scmp.lt.s32.totalorder %s4955_s19, %s4955_s19 }
  0x14   : > { %p4946_p0 = pneg %p4545_p13 }
  0x15   : > { %p4965_p7 = por %p4964_p6, %p4963_p5 }
  0x16   : > { %p4958_p2 = pnand %p4956_p1, %p4946_p0 }
  0x18   : > { %p4959_p3 = pneg %p4958_p2 }
  0x1a   : > { %p4966_p9 = pnand %p4965_p7, %p4959_p3 }
  0x1c   : > { %4969 = shalt.err (!%p4966_p9)
}
  0x1d   : > { %s5053_s20 = smov 64   ;;  %s5054_s21 = smov 4  }
  0x1e   : > { %4547 = dma.hbm_to_vmem [thread:$0]  (!%p4545_p13), %s6166_s5, 4096, %s243_s18, [#allocation3], %s5053_s20, %s5053_s20, %s5054_s21  }
  0x1f   : > { %274 = sbr.rel (%p5155_p10) target bundleno = 2022 (0x7e6), region = 48 }
  0x24   : > { %5021 = dma.done.wait (%p5159_p11), [#allocation3], 4096  }
  0x25   : > { %5023 = vsyncadd (%p5159_p11), [#allocation3], 4294963200  ;;  %p310_p12 = scmp.lt.s32.totalorder %s5042_s27, 1  ;;  %v5055_v0 = vmov 1   ;;  %v5056_v1 = vmov 0   ;;  %v4880_v11 = vld [vmem:[%s6164_s3 + $0x38] sm:$0xff]  }
  0x26   : > { %4610 = vset.pattern.permute.xlu0 %v5055_v0  ;;  %4616 = vset.pattern.permute.xlu1 %v5056_v1  ;;  %v4881_v15 = vld [vmem:[%s6164_s3 + $0x30] sm:$0xff]   ;;  %v4882_v17 = vld [vmem:[%s6164_s3 + $0x28] sm:$0xff]   ;;  %v5057_v18 = vmov 2   ;;  %v4883_v25 = vld [vmem:[%s6164_s3 + $0x20] sm:$0xff]   ;;  %s3879_s10 = sshll.u32 %s5042_s27, 4  ;;  %s5059_s21 = smov [#allocation5]  }
  0x27   : > { %s311_s30 = scalar_select %p310_p12, %s5042_s27, 1  ;;  %4154 = vmatprep.subr.bf16.mxu0 %v4880_v11  ;;  %v4884_v31 = vld [vmem:[%s6164_s3 + $0x18] sm:$0xff]   ;;  %v4885_v33 = vld [vmem:[%s6164_s3 + $0x10] sm:$0xff]   ;;  %v4886_v39 = vld [vmem:[%s6164_s3 + $0x8] sm:$0xff]  }
  0x28   : > { %4155 = vmatpush3.bf16.msra.mxu0 %v4880_v11  ;;  %v4887_v43 = vld [vmem:[%s6164_s3] sm:$0xff]   ;;  %s3660_s18 = scalar_lea.hbm %s6168_s7, %s3879_s10  ;;  %s4974_s22 = sshll.u32 %s5059_s21, 4  ;;  %s4975_s22 = int_to_ptr.vmem [resolvable:$false] %s4974_s22 }
  0x29   : > { %s3882_s8 = sshll.u32 %s311_s30, 7  ;;  %4156 = vmatprep.subr.bf16.mxu0 %v4881_v15  ;;  %s307_s30 = sand.u32 1, %s5034_s25  }
  0x2a   : > { %s5183_s15 = scalar_lea.vmem %s6161_s0, %s3882_s8  ;;  %s6067_s8 = scalar_lea.vmem [#allocation5], %s307_s30 }
  0x2b   : > { %v3947_v2 = vld [vmem:[%s5183_s15 + $0x8] sm:$0xff]   ;;  %v3884_v3 = vld [vmem:[%s5183_s15] sm:$0xff]   ;;  %v3949_v10 = vld [vmem:[%s5183_s15 + $0x18] sm:$0xff]   ;;  %s3662_s12 = sshll.u32 %s6067_s8, 4  ;;  %s3650_s19 = scalar_lea.sflag [#allocation4], %s307_s30  ;;  %s3663_s12 = int_to_ptr.vmem [resolvable:$true] %s3662_s12 }
  0x2c   : > { %v3889_v4 = vunpack.c.l.bf16 %v3947_v2  ;;  %v3890_v5 = vunpack.c.h.bf16 %v3947_v2  ;;  %v3885_v6 = vunpack.c.l.bf16 %v3884_v3  ;;  %v3886_v7 = vunpack.c.h.bf16 %v3884_v3  ;;  %v3951_v14 = vld [vmem:[%s5183_s15 + $0x28] sm:$0xff]   ;;  %v3948_v16 = vld [vmem:[%s5183_s15 + $0x10] sm:$0xff]   ;;  %4157 = vmatpush3.bf16.msra.mxu0 %v4881_v15  ;;  %v3961_v30 = vld [vmem:[%s5183_s15 + $0x78] sm:$0xff]   ;;  %s4970_s20 = scalar_lea.vmem %s3663_s12, 16  ;;  %s4976_s27 = scalar_lea.vmem %s4975_s22, 32 }
  0x2d   : > { %v3897_v12 = vunpack.c.l.bf16 %v3949_v10  ;;  %v3898_v13 = vunpack.c.h.bf16 %v3949_v10  ;;  %v3905_v20 = vunpack.c.l.bf16 %v3951_v14  ;;  %v3906_v21 = vunpack.c.h.bf16 %v3951_v14  ;;  %v3959_v22 = vld [vmem:[%s5183_s15 + $0x68] sm:$0xff]   ;;  %4158 = vmatprep.subr.bf16.mxu0 %v4882_v17  ;;  %v3953_v36 = vld [vmem:[%s5183_s15 + $0x38] sm:$0xff]   ;;  %v3950_v38 = vld [vmem:[%s5183_s15 + $0x20] sm:$0xff]   ;;  %p4971_p10 = scmp.ne.s32.totalorder %s3663_s12, %s4970_s20  ;;  %p4977_p0 = scmp.lt.s32.totalorder %s3663_s12, %s4975_s22 }
  0x2e   : > { %v4617_v8 = vpack.i.bf16 %v3890_v5, %v3889_v4  ;;  %v4611_v9 = vpack.i.bf16 %v3886_v7, %v3885_v6  ;;  %v3893_v23 = vunpack.c.l.bf16 %v3948_v16  ;;  %v3894_v24 = vunpack.c.h.bf16 %v3948_v16  ;;  %v3955_v40 = vld [vmem:[%s5183_s15 + $0x48] sm:$0xff]   ;;  %v3957_v45 = vld [vmem:[%s5183_s15 + $0x58] sm:$0xff]   ;;  %v3952_v55 = vld [vmem:[%s5183_s15 + $0x30] sm:$0xff]   ;;  %p4978_p1 = scmp.lt.s32.totalorder %s4976_s27, %s4970_s20 }
  0x2f   : > { %v4663_v19 = vpack.i.bf16 %v3898_v13, %v3897_v12  ;;  %v4691_v26 = vpack.i.bf16 %v3906_v21, %v3905_v20  ;;  %v3937_v28 = vunpack.c.l.bf16 %v3959_v22  ;;  %v3938_v29 = vunpack.c.h.bf16 %v3959_v22  ;;  %v3954_v59 = vld [vmem:[%s5183_s15 + $0x40] sm:$0xff]   ;;  %v3956_v63 = vld [vmem:[%s5183_s15 + $0x50] sm:$0xff]   ;;  %p4972_p11 = pnand %p4971_p10, %p5140_p4 }
  0x30   : > { %4618 = vperm.xlu1 %4616, %v4617_v8   ;;  %4612 = vperm.xlu0 %4610, %v4611_v9   ;;  %v4641_v27 = vpack.i.bf16 %v3894_v24, %v3893_v23  ;;  %v3945_v34 = vunpack.c.l.bf16 %v3961_v30  ;;  %v3946_v35 = vunpack.c.h.bf16 %v3961_v30  ;;  %v3913_v41 = vunpack.c.l.bf16 %v3953_v36  ;;  %v3958_v5 = vld [vmem:[%s5183_s15 + $0x60] sm:$0xff]   ;;  %v3960_v10 = vld [vmem:[%s5183_s15 + $0x70] sm:$0xff]   ;;  %p4979_p2 = por %p4978_p1, %p4977_p0 }
  0x31   : > { %4159 = vmatpush3.bf16.msra.mxu0 %v4882_v17  ;;  %v5210_v32 = vpack.i.bf16 %v3938_v29, %v3937_v28  ;;  %v3914_v42 = vunpack.c.h.bf16 %v3953_v36  ;;  %v3901_v44 = vunpack.c.l.bf16 %v3950_v38  ;;  %v3902_v46 = vunpack.c.h.bf16 %v3950_v38  ;;  %v389_v14 = vld [vmem:[%s6162_s1] sm:$0x1]  ;;  %p4973_p13 = pneg %p4972_p11 }
  0x32   : > { %4160 = vmatprep.subr.bf16.mxu0 %v4883_v25  ;;  %v5218_v37 = vpack.i.bf16 %v3946_v35, %v3945_v34  ;;  %v3921_v48 = vunpack.c.l.bf16 %v3955_v40  ;;  %v3922_v49 = vunpack.c.h.bf16 %v3955_v40  ;;  %v3929_v52 = vunpack.c.l.bf16 %v3957_v45 }
  0x33   : > { %v4724_v47 = vpack.i.bf16 %v3914_v42, %v3913_v41  ;;  %v4669_v50 = vpack.i.bf16 %v3902_v46, %v3901_v44  ;;  %v3930_v53 = vunpack.c.h.bf16 %v3957_v45  ;;  %v3909_v56 = vunpack.c.l.bf16 %v3952_v55  ;;  %p4980_p3 = pnand %p4979_p2, %p4973_p13 }
  0x34   : > { %4622 = vset.pattern.permute.xlu1 %v5055_v0  ;;  %4634 = vset.pattern.permute.xlu0 %v5057_v18  ;;  %v4752_v51 = vpack.i.bf16 %v3922_v49, %v3921_v48  ;;  %v3910_v57 = vunpack.c.h.bf16 %v3952_v55  ;;  %v3917_v60 = vunpack.c.l.bf16 %v3954_v59  ;;  %v3918_v61 = vunpack.c.h.bf16 %v3954_v59 }
  0x35   : > { %4624 = vperm.xlu1 %4622, %v4617_v8   ;;  %4636 = vperm.xlu0 %4634, %v4617_v8   ;;  %v4780_v54 = vpack.i.bf16 %v3930_v53, %v3929_v52  ;;  %v3925_v2 = vunpack.c.l.bf16 %v3956_v63  ;;  %v3926_v3 = vunpack.c.h.bf16 %v3956_v63  ;;  %v3933_v6 = vunpack.c.l.bf16 %v3958_v5 }
  0x36   : > { %4161 = vmatpush3.bf16.msra.mxu0 %v4883_v25  ;;  %v4713_v58 = vpack.i.bf16 %v3910_v57, %v3909_v56  ;;  %v4741_v62 = vpack.i.bf16 %v3918_v61, %v3917_v60  ;;  %v3934_v7 = vunpack.c.h.bf16 %v3958_v5  ;;  %v3941_v11 = vunpack.c.l.bf16 %v3960_v10 }
  0x37   : > { %4162 = vmatprep.subr.bf16.mxu0 %v4884_v31  ;;  %v4769_v4 = vpack.i.bf16 %v3926_v3, %v3925_v2  ;;  %v3942_v12 = vunpack.c.h.bf16 %v3960_v10  ;;  %v390_v21 = vunpack.c.l.bf16 %v389_v14 }
  0x38   : > { %v4813_v8 = vpack.i.bf16 %v3934_v7, %v3933_v6 }
  0x39   : > { %4628 = vset.pattern.permute.xlu1 %v5057_v18  ;;  %4664 = vperm.xlu0 %4634, %v4663_v19   ;;  %v4847_v20 = vpack.i.bf16 %v3942_v12, %v3941_v11 }
  0x3a   : > { %4630 = vperm.xlu1 %4628, %v4611_v9   ;;  %4163 = vmatpush3.bf16.msra.mxu0 %v4884_v31 }
  0x3b   : > { %4164 = vmatprep.subr.bf16.mxu0 %v4885_v33 }
  0x3d   : > { %4692 = vperm.xlu0 %4634, %v4691_v26  }
  0x3e   : > { %4640 = vset.pattern.permute.xlu1 %v5056_v1  ;;  %4165 = vmatpush3.bf16.msra.mxu0 %v4885_v33 }
  0x3f   : > { %4642 = vperm.xlu1 %4640, %v4641_v27   ;;  %4166 = vmatprep.subr.bf16.mxu0 %v4886_v39 }
  0x41   : > { %4696 = vset.pattern.permute.xlu0 %v5056_v1 }
  0x42   : > { %4698 = vperm.xlu0 %4696, %v4611_v9   ;;  %4167 = vmatpush3.bf16.msra.mxu0 %v4886_v39  ;;  %v551_v9 = vlaneseq }
  0x43   : > { %4646 = vset.pattern.permute.xlu1 %v5055_v0  ;;  %4168 = vmatprep.subr.bf16.mxu0 %v4887_v43 }
  0x44   : > { %4648 = vperm.xlu1 %4646, %v4641_v27   ;;  %v552_v13 = vshrl.u32 %v551_v9, 7 }
  0x46   : > { %4703 = vperm.xlu0 %4696, %v4663_v19   ;;  %4169 = vmatpush3.bf16.msra.mxu0 %v4887_v43  ;;  %v717_v17 = vsub.s32 1, %v552_v13  ;;  %v553_v22 = vsub.s32 0, %v552_v13  ;;  %v915_v24 = vsub.s32 2, %v552_v13 }
  0x48   : > { %4653 = vperm.xlu1 %4646, %v4663_v19   ;;  %v783_v19 = vld [vmem:[%s6162_s1] sm:$0x2]  ;;  %v5265_v25 = vrot.slane %v390_v21, %v717_v17  ;;  %v5268_v30 = vrot.slane %v390_v21, %v553_v22 }
  0x49   : > { %v784_v23 = vunpack.c.l.bf16 %v783_v19 }
  0x4a   : > { %4708 = vperm.xlu0 %4696, %v4691_v26  }
  0x4b   : > { %v5270_v33 = vrot.slane %v784_v23, %v915_v24 }
  0x4c   : > { %4657 = vset.pattern.permute.xlu1 %v5057_v18 }
  0x4d   : > { %4659 = vperm.xlu1 %4657, %v4641_v27  }
  0x4e   : > { %4725 = vperm.xlu0 %4696, %v4724_v47  }
  0x51   : > { %4668 = vset.pattern.permute.xlu1 %v5056_v1 }
  0x52   : > { %4670 = vperm.xlu1 %4668, %v4669_v50   ;;  %4753 = vperm.xlu0 %4696, %v4752_v51  }
  0x56   : > { %4674 = vset.pattern.permute.xlu1 %v5055_v0  ;;  %4781 = vperm.xlu0 %4696, %v4780_v54  }
  0x57   : > { %4676 = vperm.xlu1 %4674, %v4669_v50  }
  0x5a   : > { %4785 = vset.pattern.permute.xlu0 %v5057_v18 }
  0x5b   : > { %4681 = vperm.xlu1 %4674, %v4691_v26   ;;  %4787 = vperm.xlu0 %4785, %v4724_v47  }
  0x5f   : > { %4685 = vset.pattern.permute.xlu1 %v5057_v18  ;;  %4792 = vperm.xlu0 %4785, %v4752_v51  }
  0x60   : > { %4687 = vperm.xlu1 %4685, %v4669_v50  }
  0x63   : > { %4808 = vperm.xlu0 %4785, %v4780_v54  }
  0x64   : > { %4712 = vset.pattern.permute.xlu1 %v5056_v1 }
  0x65   : > { %4714 = vperm.xlu1 %4712, %v4713_v58  }
  0x67   : > { %4836 = vperm.xlu0 %4785, %v5210_v32  }
  0x69   : > { %4718 = vset.pattern.permute.xlu1 %v5055_v0 }
  0x6a   : > { %4720 = vperm.xlu1 %4718, %v4713_v58  }
  0x6b   : > { %4840 = vset.pattern.permute.xlu0 %v5056_v1 }
  0x6c   : > { %4842 = vperm.xlu0 %4840, %v5210_v32  }
  0x6e   : > { %4730 = vperm.xlu1 %4718, %v4724_v47  }
  0x70   : > { %4859 = vperm.xlu0 %4840, %v5218_v37  }
  0x72   : > { %4734 = vset.pattern.permute.xlu1 %v5057_v18 }
  0x73   : > { %4736 = vperm.xlu1 %4734, %v4713_v58  }
  0x74   : > { %4874 = vset.pattern.permute.xlu0 %v5057_v18 }
  0x75   : > { %4876 = vperm.xlu0 %4874, %v5218_v37  }
  0x77   : > { %4740 = vset.pattern.permute.xlu1 %v5056_v1 }
  0x78   : > { %4742 = vperm.xlu1 %4740, %v4741_v62  }
  0x7c   : > { %4746 = vset.pattern.permute.xlu1 %v5055_v0 }
  0x7d   : > { %4748 = vperm.xlu1 %4746, %v4741_v62  }
  0x81   : > { %4758 = vperm.xlu1 %4746, %v4752_v51  }
  0x85   : > { %4762 = vset.pattern.permute.xlu1 %v5057_v18 }
  0x86   : > { %4764 = vperm.xlu1 %4762, %v4741_v62  }
  0x8a   : > { %4768 = vset.pattern.permute.xlu1 %v5056_v1 }
  0x8b   : > { %4770 = vperm.xlu1 %4768, %v4769_v4  }
  0x8f   : > { %4774 = vset.pattern.permute.xlu1 %v5055_v0 }
  0x90   : > { %4776 = vperm.xlu1 %4774, %v4769_v4  }
  0x94   : > { %4797 = vperm.xlu1 %4774, %v4780_v54   ;;  %v5285_v54 = vld [vmem:[%s6163_s2] ss:$0 sm:$0xff] }
  0x98   : > { %4801 = vset.pattern.permute.xlu1 %v5057_v18 }
  0x99   : > { %4803 = vperm.xlu1 %4801, %v4769_v4  }
  0x9d   : > { %4812 = vset.pattern.permute.xlu1 %v5056_v1 }
  0x9e   : > { %4814 = vperm.xlu1 %4812, %v4813_v8  }
  0xa2   : > { %4818 = vset.pattern.permute.xlu1 %v5055_v0 }
  0xa3   : > { %4820 = vperm.xlu1 %4818, %v4813_v8  }
  0xa7   : > { %4825 = vperm.xlu1 %4818, %v5210_v32  }
  0xab   : > { %v4619_v15 = vpop.permute.xlu1 %4618  ;;  %4829 = vset.pattern.permute.xlu1 %v5057_v18  ;;  %v4613_v16 = vpop.permute.xlu0 %4612 }
  0xac   : > { %4831 = vperm.xlu1 %4829, %v4813_v8   ;;  %v4621_v31 = vunpack.i.h.bf16 %v4619_v15  ;;  %v4620_v32 = vunpack.i.l.bf16 %v4619_v15  ;;  %v4615_v47 = vunpack.i.h.bf16 %v4613_v16  ;;  %v4614_v48 = vunpack.i.l.bf16 %v4613_v16 }
  0xae   : > { %v558_v40 = vmul.f32 %v4621_v31, %v5268_v30  ;;  %v557_v41 = vmul.f32 %v4620_v32, %v5268_v30  ;;  %v720_v55 = vmul.f32 %v4615_v47, %v5265_v25  ;;  %v719_v56 = vmul.f32 %v4614_v48, %v5265_v25 }
  0xb0   : > { %v4625_v26 = vpop.permute.xlu1 %4624  ;;  %4846 = vset.pattern.permute.xlu1 %v5056_v1  ;;  %v4637_v27 = vpop.permute.xlu0 %4636 }
  0xb1   : > { %v4627_v28 = vunpack.i.h.bf16 %v4625_v26  ;;  %v4626_v29 = vunpack.i.l.bf16 %v4625_v26  ;;  %4848 = vperm.xlu1 %4846, %v4847_v20   ;;  %v4639_v36 = vunpack.i.h.bf16 %v4637_v27  ;;  %v4638_v38 = vunpack.i.l.bf16 %v4637_v27 }
  0xb3   : > { %v722_v34 = vmul.f32 %v4627_v28, %v5265_v25  ;;  %v721_v35 = vmul.f32 %v4626_v29, %v5265_v25  ;;  %v920_v44 = vmul.f32 %v4639_v36, %v5270_v33  ;;  %v919_v45 = vmul.f32 %v4638_v38, %v5270_v33 }
  0xb4   : > { %v4665_v39 = vpop.permute.xlu0 %4664 }
  0xb5   : > { %4852 = vset.pattern.permute.xlu1 %v5055_v0  ;;  %v4631_v1 = vpop.permute.xlu1 %4630  ;;  %v753_v42 = vadd.f32 %v721_v35, %v557_v41  ;;  %v754_v43 = vadd.f32 %v722_v34, %v558_v40  ;;  %v4667_v3 = vunpack.i.h.bf16 %v4665_v39  ;;  %v4666_v4 = vunpack.i.l.bf16 %v4665_v39  ;;  %v4889_v40 = vld [vmem:[#allocation2 + $0x30] sm:$0xff]  }
  0xb6   : > { %4854 = vperm.xlu1 %4852, %v4847_v20   ;;  %v4633_v51 = vunpack.i.h.bf16 %v4631_v1  ;;  %v4632_v52 = vunpack.i.l.bf16 %v4631_v1  ;;  %v4888_v1 = vld [vmem:[#allocation2 + $0x38] sm:$0xff]  }
  0xb7   : > { %v952_v0 = vadd.f32 %v920_v44, %v754_v43  ;;  %v951_v50 = vadd.f32 %v919_v45, %v753_v42  ;;  %v924_v28 = vmul.f32 %v4667_v3, %v5270_v33  ;;  %v923_v29 = vmul.f32 %v4666_v4, %v5270_v33  ;;  %4202 = vmatprep.subr.bf16.mxu1 %v4888_v1 }
  0xb8   : > { %v5279_v46 = vpop.permute.xlu0 %4692  ;;  %v918_v63 = vmul.f32 %v4633_v51, %v5270_v33  ;;  %v917_v2 = vmul.f32 %v4632_v52, %v5270_v33  ;;  %4203 = vmatpush3.bf16.msra.mxu1 %v4888_v1 }
  0xb9   : > { %v990_v61 = vadd.f32 %v5285_v54, %v951_v50  ;;  %v991_v62 = vadd.f32 %v5285_v54, %v952_v0  ;;  %4204 = vmatprep.subr.bf16.mxu1 %v4889_v40 }
  0xba   : > { %4864 = vperm.xlu1 %4852, %v5218_v37   ;;  %v4643_v49 = vpop.permute.xlu1 %4642 }
  0xbb   : > { %v4645_v9 = vunpack.i.h.bf16 %v4643_v49  ;;  %v4644_v10 = vunpack.i.l.bf16 %v4643_v49  ;;  %v1022_v16 = vmax.f32 %v990_v61, 0.0  ;;  %v1023_v17 = vmax.f32 %v991_v62, 0.0 }
  0xbc   : > { %4205 = vmatpush3.bf16.msra.mxu1 %v4889_v40 }
  0xbd   : > { %v4699_v53 = vpop.permute.xlu0 %4698  ;;  %v560_v34 = vmul.f32 %v4645_v9, %v5268_v30  ;;  %v559_v35 = vmul.f32 %v4644_v10, %v5268_v30  ;;  %v5310_v49 = vpack.c.bf16 %v1023_v17, %v1022_v16  ;;  %v4892_v10 = vld [vmem:[#allocation2 + $0x18] sm:$0xff]  }
  0xbe   : > { %v4701_v57 = vunpack.i.h.bf16 %v4699_v53  ;;  %v4700_v58 = vunpack.i.l.bf16 %v4699_v53  ;;  %4868 = vset.pattern.permute.xlu1 %v5057_v18  ;;  %v4890_v53 = vld [vmem:[#allocation2 + $0x28] sm:$0xff]  }
  0xbf   : > { %4870 = vperm.xlu1 %4868, %v4847_v20   ;;  %v4649_v37 = vpop.permute.xlu1 %4648  ;;  %4206 = vmatprep.subr.bf16.mxu1 %v4890_v53 }
  0xc0   : > { %v556_v59 = vmul.f32 %v4701_v57, %v5268_v30  ;;  %v555_v60 = vmul.f32 %v4700_v58, %v5268_v30  ;;  %v4651_v18 = vunpack.i.h.bf16 %v4649_v37  ;;  %v4650_v8 = vunpack.i.l.bf16 %v4649_v37  ;;  %4207 = vmatpush3.bf16.msra.mxu1 %v4890_v53 }
  0xc1   : > { %v4704_v5 = vpop.permute.xlu0 %4703 }
  0xc2   : > { %v751_v6 = vadd.f32 %v719_v56, %v555_v60  ;;  %v752_v7 = vadd.f32 %v720_v55, %v556_v59  ;;  %v4706_v12 = vunpack.i.h.bf16 %v4704_v5  ;;  %v4705_v13 = vunpack.i.l.bf16 %v4704_v5 }
  0xc3   : > { %v4654_v11 = vpop.permute.xlu1 %4653  ;;  %v724_v23 = vmul.f32 %v4651_v18, %v5265_v25  ;;  %v723_v24 = vmul.f32 %v4650_v8, %v5265_v25 }
  0xc4   : > { %v949_v14 = vadd.f32 %v917_v2, %v751_v6  ;;  %v950_v15 = vadd.f32 %v918_v63, %v752_v7  ;;  %v4656_v19 = vunpack.i.h.bf16 %v4654_v11  ;;  %v4655_v20 = vunpack.i.l.bf16 %v4654_v11  ;;  %v4891_v2 = vld [vmem:[#allocation2 + $0x20] sm:$0xff]  }
  0xc5   : > { %v562_v21 = vmul.f32 %v4706_v12, %v5268_v30  ;;  %v561_v22 = vmul.f32 %v4705_v13, %v5268_v30  ;;  %v755_v45 = vadd.f32 %v723_v24, %v559_v35  ;;  %v756_v47 = vadd.f32 %v724_v23, %v560_v34  ;;  %v4709_v61 = vpop.permute.xlu0 %4708  ;;  %4208 = vmatprep.subr.bf16.mxu1 %v4891_v2 }
  0xc6   : > { %v988_v26 = vadd.f32 %v5285_v54, %v949_v14  ;;  %v989_v27 = vadd.f32 %v5285_v54, %v950_v15  ;;  %v726_v31 = vmul.f32 %v4656_v19, %v5265_v25  ;;  %v725_v32 = vmul.f32 %v4655_v20, %v5265_v25  ;;  %4209 = vmatpush3.bf16.msra.mxu1 %v4891_v2 }
  0xc7   : > { %v4711_v7 = vunpack.i.h.bf16 %v4709_v61  ;;  %v4710_v18 = vunpack.i.l.bf16 %v4709_v61  ;;  %v4695_v11 = vunpack.i.h.bf16 %v5279_v46  ;;  %v4694_v12 = vunpack.i.l.bf16 %v5279_v46  ;;  %4210 = vmatprep.subr.bf16.mxu1 %v4892_v10 }
  0xc8   : > { %v4660_v36 = vpop.permute.xlu1 %4659  ;;  %v1020_v38 = vmax.f32 %v988_v26, 0.0  ;;  %v1021_v39 = vmax.f32 %v989_v27, 0.0  ;;  %v758_v41 = vadd.f32 %v726_v31, %v562_v21  ;;  %v757_v42 = vadd.f32 %v725_v32, %v561_v22 }
  0xc9   : > { %v4662_v43 = vunpack.i.h.bf16 %v4660_v36  ;;  %v4661_v44 = vunpack.i.l.bf16 %v4660_v36  ;;  %v5322_v8 = vpop.permute.xlu0 %4725  ;;  %v566_v19 = vmul.f32 %v4711_v7, %v5268_v30  ;;  %v565_v20 = vmul.f32 %v4710_v18, %v5268_v30 }
  0xca   : > { %v5308_v48 = vpack.c.bf16 %v1021_v39, %v1020_v38  ;;  %v955_v0 = vadd.f32 %v923_v29, %v757_v42  ;;  %v956_v50 = vadd.f32 %v924_v28, %v758_v41  ;;  %v928_v23 = vmul.f32 %v4695_v11, %v5270_v33  ;;  %4211 = vmatpush3.bf16.msra.mxu1 %v4892_v10 }
  0xcb   : > { %v922_v51 = vmul.f32 %v4662_v43, %v5270_v33  ;;  %v921_v52 = vmul.f32 %v4661_v44, %v5270_v33  ;;  %v927_v46 = vmul.f32 %v4694_v12, %v5270_v33  ;;  %v4728_v61 = vunpack.i.h.bf16 %v5322_v8 }
  0xcc   : > { %4170 = vmatprep.mubr.bf16.mxu0 %v5308_v48  ;;  %v994_v58 = vadd.f32 %v5285_v54, %v955_v0  ;;  %v995_v37 = vadd.f32 %v5285_v54, %v956_v50 }
  0xcd   : > { %v953_v55 = vadd.f32 %v921_v52, %v755_v45  ;;  %v954_v56 = vadd.f32 %v922_v51, %v756_v47  ;;  %v4671_v57 = vpop.permute.xlu1 %4670  ;;  %4171 = vmatmul.mubr.bf16.vlgmr.msra.gmra.mxu0 %v5310_v49  ;;  %v5336_v27 = vpop.permute.xlu0 %4753  ;;  %v570_v10 = vmul.f32 %v4728_v61, %v5268_v30 }
  0xce   : > { %v1026_v62 = vmax.f32 %v994_v58, 0.0  ;;  %v1027_v63 = vmax.f32 %v995_v37, 0.0  ;;  %v4673_v21 = vunpack.i.h.bf16 %v4671_v57  ;;  %v4672_v22 = vunpack.i.l.bf16 %v4671_v57 }
  0xcf   : > { %v992_v59 = vadd.f32 %v5285_v54, %v953_v55  ;;  %v993_v60 = vadd.f32 %v5285_v54, %v954_v56 }
  0xd0   : > { %v5324_v9 = vpack.c.bf16 %v1027_v63, %v1026_v62  ;;  %v564_v35 = vmul.f32 %v4673_v21, %v5268_v30  ;;  %v563_v36 = vmul.f32 %v4672_v22, %v5268_v30  ;;  %v4727_v62 = vunpack.i.l.bf16 %v5322_v8 }
  0xd1   : > { %v1024_v3 = vmax.f32 %v992_v59, 0.0  ;;  %v1025_v4 = vmax.f32 %v993_v60, 0.0  ;;  %v5344_v45 = vpop.permute.xlu0 %4781 }
  0xd2   : > { %v4677_v5 = vpop.permute.xlu1 %4676  ;;  %v569_v11 = vmul.f32 %v4727_v62, %v5268_v30 }
  0xd3   : > { %v5320_v6 = vpack.c.bf16 %v1025_v4, %v1024_v3  ;;  %v4679_v13 = vunpack.i.h.bf16 %v4677_v5  ;;  %v4678_v14 = vunpack.i.l.bf16 %v4677_v5 }
  0xd5   : > { %4174 = vmatprep.mubr.bf16.mxu0 %v5320_v6  ;;  %v728_v28 = vmul.f32 %v4679_v13, %v5265_v25  ;;  %v727_v29 = vmul.f32 %v4678_v14, %v5265_v25 }
  0xd6   : > { %v4682_v15 = vpop.permute.xlu1 %4681  ;;  %4175 = vmatmul.mubr.bf16.gmra.mxu0 %v5324_v9  ;;  %v4788_v60 = vpop.permute.xlu0 %4787 }
  0xd7   : > { %v4684_v16 = vunpack.i.h.bf16 %v4682_v15  ;;  %v4683_v17 = vunpack.i.l.bf16 %v4682_v15  ;;  %v759_v41 = vadd.f32 %v727_v29, %v563_v36  ;;  %v760_v42 = vadd.f32 %v728_v28, %v564_v35 }
  0xd8   : > { %v4790_v3 = vunpack.i.h.bf16 %v4788_v60  ;;  %v4789_v4 = vunpack.i.l.bf16 %v4788_v60 }
  0xd9   : > { %v730_v24 = vmul.f32 %v4684_v16, %v5265_v25  ;;  %v729_v26 = vmul.f32 %v4683_v17, %v5265_v25 }
  0xda   : > { %v932_v17 = vmul.f32 %v4790_v3, %v5270_v33 }
  0xdb   : > { %v762_v31 = vadd.f32 %v730_v24, %v566_v19  ;;  %v761_v32 = vadd.f32 %v729_v26, %v565_v20  ;;  %v4688_v34 = vpop.permute.xlu1 %4687  ;;  %v931_v19 = vmul.f32 %v4789_v4, %v5270_v33 }
  0xdc   : > { %v4690_v38 = vunpack.i.h.bf16 %v4688_v34  ;;  %v4689_v39 = vunpack.i.l.bf16 %v4688_v34 }
  0xdd   : > { %v959_v1 = vadd.f32 %v927_v46, %v761_v32  ;;  %v960_v40 = vadd.f32 %v928_v23, %v762_v31 }
  0xde   : > { %v926_v43 = vmul.f32 %v4690_v38, %v5270_v33  ;;  %v925_v44 = vmul.f32 %v4689_v39, %v5270_v33 }
  0xdf   : > { %v998_v47 = vadd.f32 %v5285_v54, %v959_v1  ;;  %v999_v0 = vadd.f32 %v5285_v54, %v960_v40 }
  0xe0   : > { %v957_v50 = vadd.f32 %v925_v44, %v759_v41  ;;  %v958_v51 = vadd.f32 %v926_v43, %v760_v42  ;;  %v4715_v52 = vpop.permute.xlu1 %4714 }
  0xe1   : > { %v1030_v56 = vmax.f32 %v998_v47, 0.0  ;;  %v1031_v57 = vmax.f32 %v999_v0, 0.0  ;;  %v4717_v8 = vunpack.i.h.bf16 %v4715_v52  ;;  %v4716_v14 = vunpack.i.l.bf16 %v4715_v52 }
  0xe2   : > { %v996_v53 = vadd.f32 %v5285_v54, %v957_v50  ;;  %v997_v55 = vadd.f32 %v5285_v54, %v958_v51 }
  0xe3   : > { %v5354_v2 = vpack.c.bf16 %v1031_v57, %v1030_v56  ;;  %v568_v24 = vmul.f32 %v4717_v8, %v5268_v30  ;;  %v567_v26 = vmul.f32 %v4716_v14, %v5268_v30  ;;  %v4755_v56 = vunpack.i.l.bf16 %v5336_v27 }
  0xe4   : > { %v1028_v58 = vmax.f32 %v996_v53, 0.0  ;;  %v1029_v37 = vmax.f32 %v997_v55, 0.0  ;;  %v4793_v53 = vpop.permute.xlu0 %4792  ;;  %v4756_v55 = vunpack.i.h.bf16 %v5336_v27 }
  0xe5   : > { %v4721_v59 = vpop.permute.xlu1 %4720  ;;  %v573_v4 = vmul.f32 %v4755_v56, %v5268_v30 }
  0xe6   : > { %v5352_v63 = vpack.c.bf16 %v1029_v37, %v1028_v58  ;;  %v4723_v5 = vunpack.i.h.bf16 %v4721_v59  ;;  %v4722_v7 = vunpack.i.l.bf16 %v4721_v59  ;;  %v4795_v37 = vunpack.i.h.bf16 %v4793_v53 }
  0xe7   : > { %v4794_v59 = vunpack.i.l.bf16 %v4793_v53  ;;  %v574_v3 = vmul.f32 %v4756_v55, %v5268_v30  ;;  %v4893_v55 = vld [vmem:[#allocation2 + $0x10] sm:$0xff]  }
  0xe8   : > { %4178 = vmatprep.mubr.bf16.mxu0 %v5352_v63  ;;  %v732_v20 = vmul.f32 %v4723_v5, %v5265_v25  ;;  %v731_v21 = vmul.f32 %v4722_v7, %v5265_v25  ;;  %4212 = vmatprep.subr.bf16.mxu1 %v4893_v55 }
  0xe9   : > { %v4731_v18 = vpop.permute.xlu1 %4730  ;;  %4179 = vmatmul.mubr.bf16.gmra.mxu0 %v5354_v2  ;;  %4213 = vmatpush3.bf16.msra.mxu1 %v4893_v55 }
  0xea   : > { %v4733_v12 = vunpack.i.h.bf16 %v4731_v18  ;;  %v4732_v13 = vunpack.i.l.bf16 %v4731_v18  ;;  %v763_v34 = vadd.f32 %v731_v21, %v567_v26  ;;  %v764_v35 = vadd.f32 %v732_v20, %v568_v24 }
  0xec   : > { %v734_v15 = vmul.f32 %v4733_v12, %v5265_v25  ;;  %v733_v16 = vmul.f32 %v4732_v13, %v5265_v25  ;;  %v936_v12 = vmul.f32 %v4795_v37, %v5270_v33  ;;  %v935_v13 = vmul.f32 %v4794_v59, %v5270_v33 }
  0xee   : > { %v765_v22 = vadd.f32 %v733_v16, %v569_v11  ;;  %v766_v23 = vadd.f32 %v734_v15, %v570_v10  ;;  %v4737_v46 = vpop.permute.xlu1 %4736 }
  0xef   : > { %v4739_v28 = vunpack.i.h.bf16 %v4737_v46  ;;  %v4738_v29 = vunpack.i.l.bf16 %v4737_v46 }
  0xf0   : > { %v963_v31 = vadd.f32 %v931_v19, %v765_v22  ;;  %v964_v32 = vadd.f32 %v932_v17, %v766_v23 }
  0xf1   : > { %v930_v36 = vmul.f32 %v4739_v28, %v5270_v33  ;;  %v929_v38 = vmul.f32 %v4738_v29, %v5270_v33 }
  0xf2   : > { %v1002_v39 = vadd.f32 %v5285_v54, %v963_v31  ;;  %v1003_v1 = vadd.f32 %v5285_v54, %v964_v32 }
  0xf3   : > { %v961_v40 = vadd.f32 %v929_v38, %v763_v34  ;;  %v962_v41 = vadd.f32 %v930_v36, %v764_v35  ;;  %v4743_v42 = vpop.permute.xlu1 %4742 }
  0xf4   : > { %v1034_v47 = vmax.f32 %v1002_v39, 0.0  ;;  %v1035_v0 = vmax.f32 %v1003_v1, 0.0  ;;  %v4745_v27 = vunpack.i.h.bf16 %v4743_v42  ;;  %v4744_v18 = vunpack.i.l.bf16 %v4743_v42 }
  0xf5   : > { %v1000_v43 = vadd.f32 %v5285_v54, %v961_v40  ;;  %v1001_v44 = vadd.f32 %v5285_v54, %v962_v41 }
  0xf6   : > { %v5378_v58 = vpack.c.bf16 %v1035_v0, %v1034_v47  ;;  %v572_v19 = vmul.f32 %v4745_v27, %v5268_v30  ;;  %v571_v20 = vmul.f32 %v4744_v18, %v5268_v30  ;;  %v4784_v0 = vunpack.i.h.bf16 %v5344_v45 }
  0xf7   : > { %v1032_v50 = vmax.f32 %v1000_v43, 0.0  ;;  %v1033_v51 = vmax.f32 %v1001_v44, 0.0  ;;  %v4809_v44 = vpop.permute.xlu0 %4808 }
  0xf8   : > { %v4749_v52 = vpop.permute.xlu1 %4748  ;;  %v4810_v53 = vunpack.i.l.bf16 %v4809_v44 }
  0xf9   : > { %v5376_v57 = vpack.c.bf16 %v1033_v51, %v1032_v50  ;;  %v4751_v60 = vunpack.i.h.bf16 %v4749_v52  ;;  %v4750_v61 = vunpack.i.l.bf16 %v4749_v52  ;;  %v4783_v50 = vunpack.i.l.bf16 %v5344_v45 }
  0xfa   : > { %v4811_v52 = vunpack.i.h.bf16 %v4809_v44  ;;  %v939_v18 = vmul.f32 %v4810_v53, %v5270_v33 }
  0xfb   : > { %4182 = vmatprep.mubr.bf16.mxu0 %v5376_v57  ;;  %v736_v8 = vmul.f32 %v4751_v60, %v5265_v25  ;;  %v735_v14 = vmul.f32 %v4750_v61, %v5265_v25 }
  0xfc   : > { %v4759_v62 = vpop.permute.xlu1 %4758  ;;  %4183 = vmatmul.mubr.bf16.gmra.mxu0 %v5378_v58  ;;  %v940_v27 = vmul.f32 %v4811_v52, %v5270_v33 }
  0xfd   : > { %v4761_v5 = vunpack.i.h.bf16 %v4759_v62  ;;  %v4760_v7 = vunpack.i.l.bf16 %v4759_v62  ;;  %v767_v24 = vadd.f32 %v735_v14, %v571_v20  ;;  %v768_v26 = vadd.f32 %v736_v8, %v572_v19 }
  0xfe   : > { %v578_v62 = vmul.f32 %v4784_v0, %v5268_v30 }
  0xff   : > { %v738_v10 = vmul.f32 %v4761_v5, %v5265_v25  ;;  %v737_v11 = vmul.f32 %v4760_v7, %v5265_v25 }
 0x101   : > { %v769_v15 = vadd.f32 %v737_v11, %v573_v4  ;;  %v770_v16 = vadd.f32 %v738_v10, %v574_v3  ;;  %v4765_v17 = vpop.permute.xlu1 %4764  ;;  %v577_v3 = vmul.f32 %v4783_v50, %v5268_v30  ;;  %v4894_v10 = vld [vmem:[#allocation2 + $0x8] sm:$0xff]  }
 0x102   : > { %v4767_v21 = vunpack.i.h.bf16 %v4765_v17  ;;  %v4766_v22 = vunpack.i.l.bf16 %v4765_v17  ;;  %4214 = vmatprep.subr.bf16.mxu1 %v4894_v10 }
 0x103   : > { %v967_v23 = vadd.f32 %v935_v13, %v769_v15  ;;  %v968_v46 = vadd.f32 %v936_v12, %v770_v16  ;;  %4215 = vmatpush3.bf16.msra.mxu1 %v4894_v10 }
 0x104   : > { %v934_v28 = vmul.f32 %v4767_v21, %v5270_v33  ;;  %v933_v29 = vmul.f32 %v4766_v22, %v5270_v33  ;;  %v4895_v22 = vld [vmem:[#allocation2] sm:$0xff]  }
 0x105   : > { %v1006_v31 = vadd.f32 %v5285_v54, %v967_v23  ;;  %v1007_v32 = vadd.f32 %v5285_v54, %v968_v46  ;;  %4216 = vmatprep.subr.bf16.mxu1 %v4895_v22 }
 0x106   : > { %v965_v34 = vadd.f32 %v933_v29, %v767_v24  ;;  %v966_v35 = vadd.f32 %v934_v28, %v768_v26  ;;  %v4771_v36 = vpop.permute.xlu1 %4770  ;;  %v4837_v28 = vpop.permute.xlu0 %4836 }
 0x107   : > { %v1038_v1 = vmax.f32 %v1006_v31, 0.0  ;;  %v1039_v40 = vmax.f32 %v1007_v32, 0.0  ;;  %v4773_v45 = vunpack.i.h.bf16 %v4771_v36  ;;  %v4772_v4 = vunpack.i.l.bf16 %v4771_v36  ;;  %4217 = vmatpush3.bf16.msra.mxu1 %v4895_v22 }
 0x108   : > { %v1004_v38 = vadd.f32 %v5285_v54, %v965_v34  ;;  %v1005_v39 = vadd.f32 %v5285_v54, %v966_v35  ;;  %v4839_v53 = vunpack.i.h.bf16 %v4837_v28  ;;  %v4838_v55 = vunpack.i.l.bf16 %v4837_v28 }
 0x109   : > { %v5402_v51 = vpack.c.bf16 %v1039_v40, %v1038_v1  ;;  %v576_v15 = vmul.f32 %v4773_v45, %v5268_v30  ;;  %v575_v16 = vmul.f32 %v4772_v4, %v5268_v30 }
 0x10a   : > { %v1036_v41 = vmax.f32 %v1004_v38, 0.0  ;;  %v1037_v42 = vmax.f32 %v1005_v39, 0.0  ;;  %v4843_v39 = vpop.permute.xlu0 %4842  ;;  %v944_v10 = vmul.f32 %v4839_v53, %v5270_v33 }
 0x10b   : > { %v4777_v43 = vpop.permute.xlu1 %4776  ;;  %v4845_v0 = vunpack.i.h.bf16 %v4843_v39  ;;  %v4844_v50 = vunpack.i.l.bf16 %v4843_v39 }
 0x10c   : > { %v5398_v47 = vpack.c.bf16 %v1037_v42, %v1036_v41  ;;  %v4779_v56 = vunpack.i.h.bf16 %v4777_v43  ;;  %v4778_v37 = vunpack.i.l.bf16 %v4777_v43 }
 0x10e   : > { %4186 = vmatprep.mubr.bf16.mxu0 %v5398_v47  ;;  %v740_v11 = vmul.f32 %v4779_v56, %v5265_v25  ;;  %v739_v12 = vmul.f32 %v4778_v37, %v5265_v25 }
 0x10f   : > { %v4798_v59 = vpop.permute.xlu1 %4797  ;;  %4187 = vmatmul.mubr.bf16.gmra.mxu0 %v5402_v51 }
 0x110   : > { %v4800_v60 = vunpack.i.h.bf16 %v4798_v59  ;;  %v4799_v61 = vunpack.i.l.bf16 %v4798_v59  ;;  %v771_v23 = vadd.f32 %v739_v12, %v575_v16  ;;  %v772_v46 = vadd.f32 %v740_v11, %v576_v15 }
 0x111   : > { %v943_v11 = vmul.f32 %v4838_v55, %v5270_v33 }
 0x112   : > { %v742_v5 = vmul.f32 %v4800_v60, %v5265_v25  ;;  %v741_v7 = vmul.f32 %v4799_v61, %v5265_v25 }
 0x114   : > { %v773_v13 = vadd.f32 %v741_v7, %v577_v3  ;;  %v774_v8 = vadd.f32 %v742_v5, %v578_v62  ;;  %v4804_v14 = vpop.permute.xlu1 %4803  ;;  %v582_v62 = vmul.f32 %v4845_v0, %v5268_v30  ;;  %v581_v3 = vmul.f32 %v4844_v50, %v5268_v30 }
 0x115   : > { %v4806_v17 = vunpack.i.h.bf16 %v4804_v14  ;;  %v4805_v19 = vunpack.i.l.bf16 %v4804_v14 }
 0x116   : > { %v971_v20 = vadd.f32 %v939_v18, %v773_v13  ;;  %v972_v21 = vadd.f32 %v940_v27, %v774_v8 }
 0x117   : > { %v938_v24 = vmul.f32 %v4806_v17, %v5270_v33  ;;  %v937_v26 = vmul.f32 %v4805_v19, %v5270_v33 }
 0x118   : > { %v1010_v29 = vadd.f32 %v5285_v54, %v971_v20  ;;  %v1011_v31 = vadd.f32 %v5285_v54, %v972_v21 }
 0x119   : > { %v969_v32 = vadd.f32 %v937_v26, %v771_v23  ;;  %v970_v34 = vadd.f32 %v938_v24, %v772_v46  ;;  %v4815_v35 = vpop.permute.xlu1 %4814 }
 0x11a   : > { %v1042_v1 = vmax.f32 %v1010_v29, 0.0  ;;  %v1043_v40 = vmax.f32 %v1011_v31, 0.0  ;;  %v4817_v45 = vunpack.i.h.bf16 %v4815_v35  ;;  %v4816_v4 = vunpack.i.l.bf16 %v4815_v35 }
 0x11b   : > { %v1008_v36 = vadd.f32 %v5285_v54, %v969_v32  ;;  %v1009_v38 = vadd.f32 %v5285_v54, %v970_v34  ;;  %v4860_v32 = vpop.permute.xlu0 %4859 }
 0x11c   : > { %v5424_v52 = vpack.c.bf16 %v1043_v40, %v1042_v1  ;;  %v580_v14 = vmul.f32 %v4817_v45, %v5268_v30  ;;  %v579_v15 = vmul.f32 %v4816_v4, %v5268_v30  ;;  %v4861_v0 = vunpack.i.l.bf16 %v4860_v32 }
 0x11d   : > { %v1040_v41 = vmax.f32 %v1008_v36, 0.0  ;;  %v1041_v42 = vmax.f32 %v1009_v38, 0.0 }
 0x11e   : > { %v4821_v43 = vpop.permute.xlu1 %4820  ;;  %v585_v4 = vmul.f32 %v4861_v0, %v5268_v30 }
 0x11f   : > { %v5422_v44 = vpack.c.bf16 %v1041_v42, %v1040_v41  ;;  %v4823_v56 = vunpack.i.h.bf16 %v4821_v43  ;;  %v4822_v37 = vunpack.i.l.bf16 %v4821_v43  ;;  %v4877_v41 = vpop.permute.xlu0 %4876  ;;  %v4862_v43 = vunpack.i.h.bf16 %v4860_v32 }
 0x120   : > { %v4879_v53 = vunpack.i.h.bf16 %v4877_v41  ;;  %v4878_v55 = vunpack.i.l.bf16 %v4877_v41 }
 0x121   : > { %4190 = vmatprep.mubr.bf16.mxu0 %v5422_v44  ;;  %v744_v27 = vmul.f32 %v4823_v56, %v5265_v25  ;;  %v743_v18 = vmul.f32 %v4822_v37, %v5265_v25  ;;  %v586_v45 = vmul.f32 %v4862_v43, %v5268_v30 }
 0x122   : > { %v4826_v59 = vpop.permute.xlu1 %4825  ;;  %4191 = vmatmul.mubr.bf16.gmra.mxu0 %v5424_v52 }
 0x123   : > { %v4828_v60 = vunpack.i.h.bf16 %v4826_v59  ;;  %v4827_v61 = vunpack.i.l.bf16 %v4826_v59  ;;  %v775_v21 = vadd.f32 %v743_v18, %v579_v15  ;;  %v776_v22 = vadd.f32 %v744_v27, %v580_v14 }
 0x124   : > { %v948_v27 = vmul.f32 %v4879_v53, %v5270_v33  ;;  %v947_v18 = vmul.f32 %v4878_v55, %v5270_v33 }
 0x125   : > { %v746_v5 = vmul.f32 %v4828_v60, %v5265_v25  ;;  %v745_v7 = vmul.f32 %v4827_v61, %v5265_v25 }
 0x127   : > { %v778_v12 = vadd.f32 %v746_v5, %v582_v62  ;;  %v777_v13 = vadd.f32 %v745_v7, %v581_v3  ;;  %v4832_v8 = vpop.permute.xlu1 %4831 }
 0x128   : > { %v4834_v16 = vunpack.i.h.bf16 %v4832_v8  ;;  %v4833_v17 = vunpack.i.l.bf16 %v4832_v8 }
 0x129   : > { %v975_v19 = vadd.f32 %v943_v11, %v777_v13  ;;  %v976_v20 = vadd.f32 %v944_v10, %v778_v12 }
 0x12a   : > { %v942_v23 = vmul.f32 %v4834_v16, %v5270_v33  ;;  %v941_v46 = vmul.f32 %v4833_v17, %v5270_v33 }
 0x12b   : > { %v1014_v24 = vadd.f32 %v5285_v54, %v975_v19  ;;  %v1015_v26 = vadd.f32 %v5285_v54, %v976_v20 }
 0x12c   : > { %v973_v28 = vadd.f32 %v941_v46, %v775_v21  ;;  %v974_v29 = vadd.f32 %v942_v23, %v776_v22  ;;  %v4849_v31 = vpop.permute.xlu1 %4848 }
 0x12d   : > { %v1046_v36 = vmax.f32 %v1014_v24, 0.0  ;;  %v1047_v38 = vmax.f32 %v1015_v26, 0.0  ;;  %v4851_v62 = vunpack.i.h.bf16 %v4849_v31  ;;  %v4850_v3 = vunpack.i.l.bf16 %v4849_v31 }
 0x12e   : > { %v1012_v34 = vadd.f32 %v5285_v54, %v973_v28  ;;  %v1013_v35 = vadd.f32 %v5285_v54, %v974_v29 }
 0x12f   : > { %v5446_v50 = vpack.c.bf16 %v1047_v38, %v1046_v36  ;;  %v584_v14 = vmul.f32 %v4851_v62, %v5268_v30  ;;  %v583_v15 = vmul.f32 %v4850_v3, %v5268_v30 }
 0x130   : > { %v1044_v39 = vmax.f32 %v1012_v34, 0.0  ;;  %v1045_v1 = vmax.f32 %v1013_v35, 0.0 }
 0x131   : > { %v4855_v40 = vpop.permute.xlu1 %4854 }
 0x132   : > { %v5444_v42 = vpack.c.bf16 %v1045_v1, %v1044_v39  ;;  %v4857_v56 = vunpack.i.h.bf16 %v4855_v40  ;;  %v4856_v37 = vunpack.i.l.bf16 %v4855_v40  ;;  %v5475_v1 = vld [vmem:[%s6165_s4] ss:$0 sm:$0xff] }
 0x134   : > { %4194 = vmatprep.mubr.bf16.mxu0 %v5444_v42  ;;  %v748_v10 = vmul.f32 %v4857_v56, %v5265_v25  ;;  %v747_v11 = vmul.f32 %v4856_v37, %v5265_v25 }
 0x135   : > { %v4865_v59 = vpop.permute.xlu1 %4864  ;;  %4195 = vmatmul.mubr.bf16.gmra.mxu0 %v5446_v50 }
 0x136   : > { %v4867_v60 = vunpack.i.h.bf16 %v4865_v59  ;;  %v4866_v61 = vunpack.i.l.bf16 %v4865_v59  ;;  %v779_v21 = vadd.f32 %v747_v11, %v583_v15  ;;  %v780_v22 = vadd.f32 %v748_v10, %v584_v14 }
 0x138   : > { %v750_v5 = vmul.f32 %v4867_v60, %v5265_v25  ;;  %v749_v7 = vmul.f32 %v4866_v61, %v5265_v25  ;;  %v4896_v60 = vld [vmem:[%s6164_s3 + $0x78] sm:$0xff]   ;;  %v4897_v61 = vld [vmem:[%s6164_s3 + $0x70] sm:$0xff]  }
 0x139   : > { %4250 = vmatprep.subr.bf16.mxu0 %v4896_v60 }
 0x13a   : > { %v781_v12 = vadd.f32 %v749_v7, %v585_v4  ;;  %v782_v13 = vadd.f32 %v750_v5, %v586_v45  ;;  %v4871_v8 = vpop.permute.xlu1 %4870  ;;  %4251 = vmatpush3.bf16.msra.mxu0 %v4896_v60  ;;  %v4898_v7 = vld [vmem:[%s6164_s3 + $0x68] sm:$0xff]  }
 0x13b   : > { %v4873_v16 = vunpack.i.h.bf16 %v4871_v8  ;;  %v4872_v17 = vunpack.i.l.bf16 %v4871_v8  ;;  %4252 = vmatprep.subr.bf16.mxu0 %v4897_v61  ;;  %v4899_v8 = vld [vmem:[%s6164_s3 + $0x60] sm:$0xff]  }
 0x13c   : > { %v979_v19 = vadd.f32 %v947_v18, %v781_v12  ;;  %v980_v20 = vadd.f32 %v948_v27, %v782_v13 }
 0x13d   : > { %v946_v23 = vmul.f32 %v4873_v16, %v5270_v33  ;;  %v945_v46 = vmul.f32 %v4872_v17, %v5270_v33 }
 0x13e   : > { %v1018_v24 = vadd.f32 %v5285_v54, %v979_v19  ;;  %v1019_v25 = vadd.f32 %v5285_v54, %v980_v20  ;;  %4253 = vmatpush3.bf16.msra.mxu0 %v4897_v61 }
 0x13f   : > { %v977_v26 = vadd.f32 %v945_v46, %v779_v21  ;;  %v978_v28 = vadd.f32 %v946_v23, %v780_v22  ;;  %4254 = vmatprep.subr.bf16.mxu0 %v4898_v7 }
 0x140   : > { %v1050_v31 = vmax.f32 %v1018_v24, 0.0  ;;  %v1051_v32 = vmax.f32 %v1019_v25, 0.0 }
 0x141   : > { %v1016_v29 = vadd.f32 %v5285_v54, %v977_v26  ;;  %v1017_v30 = vadd.f32 %v5285_v54, %v978_v28 }
 0x142   : > { %v5468_v38 = vpack.c.bf16 %v1051_v32, %v1050_v31  ;;  %4255 = vmatpush3.bf16.msra.mxu0 %v4898_v7 }
 0x143   : > { %v1048_v34 = vmax.f32 %v1016_v29, 0.0  ;;  %v1049_v35 = vmax.f32 %v1017_v30, 0.0  ;;  %4256 = vmatprep.subr.bf16.mxu0 %v4899_v8 }
 0x145   : > { %v5466_v36 = vpack.c.bf16 %v1049_v35, %v1048_v34 }
 0x146   : > { %4257 = vmatpush3.bf16.msra.mxu0 %v4899_v8 }
 0x147   : > { %4198 = vmatprep.mubr.bf16.mxu0 %v5466_v36 }
 0x148   : > { %4199 = vmatmul.mubr.bf16.gmra.mxu0 %v5468_v38 }
 0x18d   : > { %v4172_v33 = vpop.f32.mrf.mxu0 }
 0x18e   : > { %v1182_v43 = vadd.f32 %v4172_v33, %v5475_v1 }
 0x18f   : > { %v1173_v39 = vpop.f32.mrf.mxu0 }
 0x190   : > { %v1174_v40 = vadd.f32 %v5475_v1, %v1173_v39  ;;  %v1302_v62 = vmax.f32 %v1182_v43, 0.0 }
 0x191   : > { %v4173_v54 = vpop.f32.mrf.mxu0 }
 0x192   : > { %v1185_v41 = vadd.f32 %v4173_v54, %v5475_v1  ;;  %v1300_v56 = vmax.f32 %v1174_v40, 0.0 }
 0x193   : > { %v1176_v0 = vpop.f32.mrf.mxu0 }
 0x194   : > { %v1177_v53 = vadd.f32 %v5475_v1, %v1176_v0  ;;  %v1303_v55 = vmax.f32 %v1185_v41, 0.0 }
 0x196   : > { %v4176_v37 = vpop.f32.mrf.mxu0  ;;  %v1301_v59 = vmax.f32 %v1177_v53, 0.0  ;;  %v1333_v4 = vpack.c.bf16 %v1303_v55, %v1302_v62 }
 0x197   : > { %v1198_v10 = vadd.f32 %v4176_v37, %v5475_v1 }
 0x198   : > { %v1189_v3 = vpop.f32.mrf.mxu0  ;;  %v1332_v45 = vpack.c.bf16 %v1301_v59, %v1300_v56 }
 0x199   : > { %v1190_v27 = vadd.f32 %v5475_v1, %v1189_v3  ;;  %v1306_v16 = vmax.f32 %v1198_v10, 0.0 }
 0x19a   : > { %v4177_v5 = vpop.f32.mrf.mxu0  ;;  %4218 = vmatprep.mubr.bf16.mxu1 %v1332_v45 }
 0x19b   : > { %v1201_v18 = vadd.f32 %v4177_v5, %v5475_v1  ;;  %4219 = vmatmul.mubr.bf16.vlgmr.msra.gmra.mxu1 %v1333_v4  ;;  %v1304_v14 = vmax.f32 %v1190_v27, 0.0 }
 0x19c   : > { %v1192_v11 = vpop.f32.mrf.mxu0 }
 0x19d   : > { %v1193_v12 = vadd.f32 %v5475_v1, %v1192_v11  ;;  %v1307_v13 = vmax.f32 %v1201_v18, 0.0 }
 0x19f   : > { %v1305_v15 = vmax.f32 %v1193_v12, 0.0  ;;  %v1335_v19 = vpack.c.bf16 %v1307_v13, %v1306_v16 }
 0x1a1   : > { %v1334_v17 = vpack.c.bf16 %v1305_v15, %v1304_v14  ;;  %v4900_v14 = vld [vmem:[%s6164_s3 + $0x58] sm:$0xff]   ;;  %v4901_v15 = vld [vmem:[%s6164_s3 + $0x50] sm:$0xff]  }
 0x1a2   : > { %4258 = vmatprep.subr.bf16.mxu0 %v4900_v14 }
 0x1a3   : > { %4222 = vmatprep.mubr.bf16.mxu1 %v1334_v17  ;;  %4259 = vmatpush3.bf16.msra.mxu0 %v4900_v14  ;;  %v4902_v17 = vld [vmem:[%s6164_s3 + $0x48] sm:$0xff]   ;;  %v5536_v14 = vld [vmem:[%s6167_s6] ss:$0 sm:$0xff] }
 0x1a4   : > { %4223 = vmatmul.mubr.bf16.gmra.mxu1 %v1335_v19  ;;  %4260 = vmatprep.subr.bf16.mxu0 %v4901_v15 }
 0x1a7   : > { %4261 = vmatpush3.bf16.msra.mxu0 %v4901_v15 }
 0x1a8   : > { %4262 = vmatprep.subr.bf16.mxu0 %v4902_v17 }
 0x1a9   : > { %v4180_v20 = vpop.f32.mrf.mxu0 }
 0x1aa   : > { %v1214_v24 = vadd.f32 %v4180_v20, %v5475_v1 }
 0x1ab   : > { %v1205_v21 = vpop.f32.mrf.mxu0  ;;  %4263 = vmatpush3.bf16.msra.mxu0 %v4902_v17 }
 0x1ac   : > { %v1206_v23 = vadd.f32 %v5475_v1, %v1205_v21  ;;  %v1310_v31 = vmax.f32 %v1214_v24, 0.0 }
 0x1ad   : > { %v4181_v22 = vpop.f32.mrf.mxu0 }
 0x1ae   : > { %v1217_v46 = vadd.f32 %v4181_v22, %v5475_v1  ;;  %v1308_v29 = vmax.f32 %v1206_v23, 0.0  ;;  %v4903_v23 = vld [vmem:[%s6164_s3 + $0x40] sm:$0xff]  }
 0x1af   : > { %v1208_v25 = vpop.f32.mrf.mxu0  ;;  %4264 = vmatprep.subr.bf16.mxu0 %v4903_v23 }
 0x1b0   : > { %v1209_v26 = vadd.f32 %v5475_v1, %v1208_v25  ;;  %v1311_v28 = vmax.f32 %v1217_v46, 0.0  ;;  %4265 = vmatpush3.bf16.msra.mxu0 %v4903_v23 }
 0x1b2   : > { %v1309_v30 = vmax.f32 %v1209_v26, 0.0  ;;  %v1337_v34 = vpack.c.bf16 %v1311_v28, %v1310_v31 }
 0x1b4   : > { %v1336_v32 = vpack.c.bf16 %v1309_v30, %v1308_v29 }
 0x1b6   : > { %4226 = vmatprep.mubr.bf16.mxu1 %v1336_v32 }
 0x1b7   : > { %4227 = vmatmul.mubr.bf16.gmra.mxu1 %v1337_v34 }
 0x1bc   : > { %v4184_v35 = vpop.f32.mrf.mxu0 }
 0x1bd   : > { %v1230_v41 = vadd.f32 %v4184_v35, %v5475_v1 }
 0x1be   : > { %v1221_v33 = vpop.f32.mrf.mxu0 }
 0x1bf   : > { %v1222_v54 = vadd.f32 %v5475_v1, %v1221_v33  ;;  %v1314_v37 = vmax.f32 %v1230_v41, 0.0 }
 0x1c0   : > { %v4185_v39 = vpop.f32.mrf.mxu0 }
 0x1c1   : > { %v1233_v40 = vadd.f32 %v4185_v39, %v5475_v1  ;;  %v1312_v55 = vmax.f32 %v1222_v54, 0.0 }
 0x1c2   : > { %v1224_v43 = vpop.f32.mrf.mxu0 }
 0x1c3   : > { %v1225_v0 = vadd.f32 %v5475_v1, %v1224_v43  ;;  %v1315_v53 = vmax.f32 %v1233_v40, 0.0 }
 0x1c5   : > { %v1313_v56 = vmax.f32 %v1225_v0, 0.0  ;;  %v1339_v60 = vpack.c.bf16 %v1315_v53, %v1314_v37 }
 0x1c7   : > { %v1338_v59 = vpack.c.bf16 %v1313_v56, %v1312_v55 }
 0x1c9   : > { %4230 = vmatprep.mubr.bf16.mxu1 %v1338_v59 }
 0x1ca   : > { %4231 = vmatmul.mubr.bf16.gmra.mxu1 %v1339_v60 }
 0x1cf   : > { %v4188_v61 = vpop.f32.mrf.mxu0 }
 0x1d0   : > { %v1246_v5 = vadd.f32 %v4188_v61, %v5475_v1 }
 0x1d1   : > { %v1237_v62 = vpop.f32.mrf.mxu0 }
 0x1d2   : > { %v1238_v45 = vadd.f32 %v5475_v1, %v1237_v62  ;;  %v1318_v12 = vmax.f32 %v1246_v5, 0.0 }
 0x1d3   : > { %v4189_v3 = vpop.f32.mrf.mxu0 }
 0x1d4   : > { %v1249_v4 = vadd.f32 %v4189_v3, %v5475_v1  ;;  %v1316_v10 = vmax.f32 %v1238_v45, 0.0 }
 0x1d5   : > { %v1240_v7 = vpop.f32.mrf.mxu0 }
 0x1d6   : > { %v1241_v27 = vadd.f32 %v5475_v1, %v1240_v7  ;;  %v1319_v18 = vmax.f32 %v1249_v4, 0.0 }
 0x1d8   : > { %v1317_v11 = vmax.f32 %v1241_v27, 0.0  ;;  %v1341_v8 = vpack.c.bf16 %v1319_v18, %v1318_v12 }
 0x1da   : > { %v1340_v13 = vpack.c.bf16 %v1317_v11, %v1316_v10 }
 0x1dc   : > { %4234 = vmatprep.mubr.bf16.mxu1 %v1340_v13 }
 0x1dd   : > { %4235 = vmatmul.mubr.bf16.gmra.mxu1 %v1341_v8 }
 0x1e2   : > { %v4192_v16 = vpop.f32.mrf.mxu0 }
 0x1e3   : > { %v1262_v46 = vadd.f32 %v4192_v16, %v5475_v1 }
 0x1e4   : > { %v1253_v19 = vpop.f32.mrf.mxu0 }
 0x1e5   : > { %v1254_v21 = vadd.f32 %v5475_v1, %v1253_v19  ;;  %v1322_v30 = vmax.f32 %v1262_v46, 0.0  ;;  %v1580_v19 = vunpack.c.l.bf16 %v5308_v48 }
 0x1e6   : > { %v4193_v20 = vpop.f32.mrf.mxu0 }
 0x1e7   : > { %v1265_v22 = vadd.f32 %v4193_v20, %v5475_v1  ;;  %v1320_v28 = vmax.f32 %v1254_v21, 0.0  ;;  %v1583_v21 = vunpack.c.h.bf16 %v5310_v49 }
 0x1e8   : > { %v1256_v24 = vpop.f32.mrf.mxu0 }
 0x1e9   : > { %v1257_v25 = vadd.f32 %v5475_v1, %v1256_v24  ;;  %v1323_v26 = vmax.f32 %v1265_v22, 0.0  ;;  %v1582_v22 = vunpack.c.l.bf16 %v5310_v49 }
 0x1eb   : > { %v1321_v29 = vmax.f32 %v1257_v25, 0.0  ;;  %v1343_v32 = vpack.c.bf16 %v1323_v26, %v1322_v30  ;;  %v1581_v26 = vunpack.c.h.bf16 %v5308_v48  ;;  %v1584_v48 = vunpack.c.l.bf16 %v5320_v6 }
 0x1ed   : > { %v1342_v31 = vpack.c.bf16 %v1321_v29, %v1320_v28 }
 0x1ef   : > { %4238 = vmatprep.mubr.bf16.mxu1 %v1342_v31 }
 0x1f0   : > { %4239 = vmatmul.mubr.bf16.gmra.mxu1 %v1343_v32 }
 0x1f5   : > { %v4196_v34 = vpop.f32.mrf.mxu0 }
 0x1f6   : > { %v1278_v40 = vadd.f32 %v4196_v34, %v5475_v1 }
 0x1f7   : > { %v1269_v35 = vpop.f32.mrf.mxu0 }
 0x1f8   : > { %v1270_v39 = vadd.f32 %v5475_v1, %v1269_v35  ;;  %v1326_v56 = vmax.f32 %v1278_v40, 0.0 }
 0x1f9   : > { %v4197_v33 = vpop.f32.mrf.mxu0 }
 0x1fa   : > { %v1281_v54 = vadd.f32 %v4197_v33, %v5475_v1  ;;  %v1324_v53 = vmax.f32 %v1270_v39, 0.0  ;;  %v4904_v33 = vld [vmem:[#allocation2 + $0x78] sm:$0xff]   ;;  %v4905_v39 = vld [vmem:[#allocation2 + $0x70] sm:$0xff]  }
 0x1fb   : > { %v1272_v41 = vpop.f32.mrf.mxu0  ;;  %4298 = vmatprep.subr.bf16.mxu1 %v4904_v33 }
 0x1fc   : > { %v1273_v43 = vadd.f32 %v5475_v1, %v1272_v41  ;;  %v1327_v0 = vmax.f32 %v1281_v54, 0.0  ;;  %4299 = vmatpush3.bf16.msra.mxu1 %v4904_v33 }
 0x1fd   : > { %4300 = vmatprep.subr.bf16.mxu1 %v4905_v39 }
 0x1fe   : > { %v1325_v55 = vmax.f32 %v1273_v43, 0.0  ;;  %v1345_v59 = vpack.c.bf16 %v1327_v0, %v1326_v56  ;;  %v1586_v56 = vunpack.c.l.bf16 %v5324_v9 }
 0x200   : > { %v1344_v37 = vpack.c.bf16 %v1325_v55, %v1324_v53  ;;  %v1587_v55 = vunpack.c.h.bf16 %v5324_v9  ;;  %4301 = vmatpush3.bf16.msra.mxu1 %v4905_v39 }
 0x202   : > { %4242 = vmatprep.mubr.bf16.mxu1 %v1344_v37 }
 0x203   : > { %4243 = vmatmul.mubr.bf16.gmra.mxu1 %v1345_v59  ;;  %v4906_v59 = vld [vmem:[#allocation2 + $0x68] sm:$0xff]  }
 0x204   : > { %4302 = vmatprep.subr.bf16.mxu1 %v4906_v59 }
 0x205   : > { %4303 = vmatpush3.bf16.msra.mxu1 %v4906_v59 }
 0x208   : > { %v4200_v60 = vpop.f32.mrf.mxu0 }
 0x209   : > { %v1294_v4 = vadd.f32 %v4200_v60, %v5475_v1 }
 0x20a   : > { %v1285_v61 = vpop.f32.mrf.mxu0 }
 0x20b   : > { %v1286_v3 = vadd.f32 %v5475_v1, %v1285_v61  ;;  %v1330_v11 = vmax.f32 %v1294_v4, 0.0 }
 0x20c   : > { %v4201_v62 = vpop.f32.mrf.mxu0 }
 0x20d   : > { %v1297_v45 = vadd.f32 %v4201_v62, %v5475_v1  ;;  %v1328_v18 = vmax.f32 %v1286_v3, 0.0  ;;  %v1585_v3 = vunpack.c.h.bf16 %v5320_v6 }
 0x20e   : > { %v1288_v5 = vpop.f32.mrf.mxu0 }
 0x20f   : > { %v1289_v7 = vadd.f32 %v5475_v1, %v1288_v5  ;;  %v1331_v27 = vmax.f32 %v1297_v45, 0.0 }
 0x211   : > { %v1329_v10 = vmax.f32 %v1289_v7, 0.0  ;;  %v1347_v13 = vpack.c.bf16 %v1331_v27, %v1330_v11  ;;  %v4907_v7 = vld [vmem:[#allocation2 + $0x60] sm:$0xff]  }
 0x212   : > { %4304 = vmatprep.subr.bf16.mxu1 %v4907_v7 }
 0x213   : > { %v1346_v12 = vpack.c.bf16 %v1329_v10, %v1328_v18  ;;  %4305 = vmatpush3.bf16.msra.mxu1 %v4907_v7 }
 0x215   : > { %4246 = vmatprep.mubr.bf16.mxu1 %v1346_v12  ;;  %v4908_v12 = vld [vmem:[#allocation2 + $0x58] sm:$0xff]  }
 0x216   : > { %4247 = vmatmul.mubr.bf16.gmra.mxu1 %v1347_v13  ;;  %4306 = vmatprep.subr.bf16.mxu1 %v4908_v12 }
 0x217   : > { %4307 = vmatpush3.bf16.msra.mxu1 %v4908_v12 }
 0x25b   : > { %v4220_v8 = vpop.f32.mrf.mxu1 }
 0x25c   : > { %v1462_v17 = vadd.f32 %v4220_v8, %v5536_v14 }
 0x25d   : > { %v1453_v15 = vpop.f32.mrf.mxu1 }
 0x25e   : > { %v1454_v16 = vadd.f32 %v5536_v14, %v1453_v15  ;;  %v1614_v28 = vadd.f32 %v1582_v22, %v1462_v17  ;;  %v1588_v17 = vunpack.c.l.bf16 %v5352_v63 }
 0x25f   : > { %v4221_v1 = vpop.f32.mrf.mxu1 }
 0x260   : > { %v1465_v20 = vadd.f32 %v4221_v1, %v5536_v14  ;;  %v1612_v46 = vadd.f32 %v1580_v19, %v1454_v16  ;;  %v1646_v54 = vmax.f32 %v1614_v28, 0.0  ;;  %v1591_v19 = vunpack.c.h.bf16 %v5354_v2 }
 0x261   : > { %v1456_v23 = vpop.f32.mrf.mxu1 }
 0x262   : > { %v1615_v24 = vadd.f32 %v1583_v21, %v1465_v20  ;;  %v1457_v25 = vadd.f32 %v5536_v14, %v1456_v23  ;;  %v1644_v32 = vmax.f32 %v1612_v46, 0.0  ;;  %v1590_v20 = vunpack.c.l.bf16 %v5354_v2 }
 0x264   : > { %v1613_v29 = vadd.f32 %v1581_v26, %v1457_v25  ;;  %v4224_v30 = vpop.f32.mrf.mxu1  ;;  %v1647_v31 = vmax.f32 %v1615_v24, 0.0  ;;  %v1589_v24 = vunpack.c.h.bf16 %v5352_v63 }
 0x265   : > { %v1478_v49 = vadd.f32 %v4224_v30, %v5536_v14 }
 0x266   : > { %v1645_v34 = vmax.f32 %v1613_v29, 0.0  ;;  %v1469_v35 = vpop.f32.mrf.mxu1  ;;  %v5550_v0 = vpack.c.bf16 %v1647_v31, %v1646_v54  ;;  %v1592_v54 = vunpack.c.l.bf16 %v5376_v57 }
 0x267   : > { %v1470_v40 = vadd.f32 %v5536_v14, %v1469_v35  ;;  %v1618_v45 = vadd.f32 %v1586_v56, %v1478_v49  ;;  %v1595_v49 = vunpack.c.h.bf16 %v5378_v58 }
 0x268   : > { %v4225_v41 = vpop.f32.mrf.mxu1  ;;  %v5548_v43 = vpack.c.bf16 %v1645_v34, %v1644_v32 }
 0x269   : > { %v1481_v53 = vadd.f32 %v4225_v41, %v5536_v14  ;;  %v1616_v60 = vadd.f32 %v1584_v48, %v1470_v40  ;;  %v1650_v18 = vmax.f32 %v1618_v45, 0.0  ;;  %v1594_v41 = vunpack.c.l.bf16 %v5378_v58 }
 0x26a   : > { %v1472_v37 = vpop.f32.mrf.mxu1  ;;  %4266 = vmatprep.mubr.bf16.mxu0 %v5548_v43 }
 0x26b   : > { %v1619_v61 = vadd.f32 %v1587_v55, %v1481_v53  ;;  %v1473_v62 = vadd.f32 %v5536_v14, %v1472_v37  ;;  %4267 = vmatmul.mubr.bf16.vlgmr.msra.gmra.mxu0 %v5550_v0  ;;  %v1648_v9 = vmax.f32 %v1616_v60, 0.0  ;;  %v1593_v37 = vunpack.c.h.bf16 %v5376_v57 }
 0x26d   : > { %v1617_v4 = vadd.f32 %v1585_v3, %v1473_v62  ;;  %v1651_v5 = vmax.f32 %v1619_v61, 0.0 }
 0x26f   : > { %v1649_v27 = vmax.f32 %v1617_v4, 0.0  ;;  %v5562_v11 = vpack.c.bf16 %v1651_v5, %v1650_v18  ;;  %v1596_v18 = vunpack.c.l.bf16 %v5398_v47 }
 0x271   : > { %v5560_v10 = vpack.c.bf16 %v1649_v27, %v1648_v9 }
 0x273   : > { %4270 = vmatprep.mubr.bf16.mxu0 %v5560_v10 }
 0x274   : > { %4271 = vmatmul.mubr.bf16.gmra.mxu0 %v5562_v11 }
 0x277   : > { %v4228_v6 = vpop.f32.mrf.mxu1 }
 0x278   : > { %v1494_v15 = vadd.f32 %v4228_v6, %v5536_v14  ;;  %v1599_v6 = vunpack.c.h.bf16 %v5402_v51 }
 0x279   : > { %v1485_v13 = vpop.f32.mrf.mxu1 }
 0x27a   : > { %v1486_v8 = vadd.f32 %v5536_v14, %v1485_v13  ;;  %v1622_v25 = vadd.f32 %v1590_v20, %v1494_v15  ;;  %v1598_v13 = vunpack.c.l.bf16 %v5402_v51  ;;  %v4909_v51 = vld [vmem:[#allocation2 + $0x50] sm:$0xff]  }
 0x27b   : > { %v4229_v16 = vpop.f32.mrf.mxu1  ;;  %4308 = vmatprep.subr.bf16.mxu1 %v4909_v51 }
 0x27c   : > { %v1497_v1 = vadd.f32 %v4229_v16, %v5536_v14  ;;  %v1620_v22 = vadd.f32 %v1588_v17, %v1486_v8  ;;  %v1654_v31 = vmax.f32 %v1622_v25, 0.0  ;;  %4309 = vmatpush3.bf16.msra.mxu1 %v4909_v51 }
 0x27d   : > { %v1488_v21 = vpop.f32.mrf.mxu1 }
 0x27e   : > { %v1623_v23 = vadd.f32 %v1591_v19, %v1497_v1  ;;  %v1489_v46 = vadd.f32 %v5536_v14, %v1488_v21  ;;  %v1652_v29 = vmax.f32 %v1620_v22, 0.0  ;;  %v1597_v1 = vunpack.c.h.bf16 %v5398_v47 }
 0x280   : > { %v1621_v26 = vadd.f32 %v1589_v24, %v1489_v46  ;;  %v1655_v28 = vmax.f32 %v1623_v23, 0.0 }
 0x282   : > { %v1653_v30 = vmax.f32 %v1621_v26, 0.0  ;;  %v5576_v34 = vpack.c.bf16 %v1655_v28, %v1654_v31  ;;  %v4910_v28 = vld [vmem:[#allocation2 + $0x48] sm:$0xff]  }
 0x283   : > { %4310 = vmatprep.subr.bf16.mxu1 %v4910_v28 }
 0x284   : > { %v5574_v32 = vpack.c.bf16 %v1653_v30, %v1652_v29  ;;  %4311 = vmatpush3.bf16.msra.mxu1 %v4910_v28 }
 0x286   : > { %4274 = vmatprep.mubr.bf16.mxu0 %v5574_v32 }
 0x287   : > { %4275 = vmatmul.mubr.bf16.gmra.mxu0 %v5576_v34 }
 0x28a   : > { %v4232_v2 = vpop.f32.mrf.mxu1 }
 0x28b   : > { %v1510_v63 = vadd.f32 %v4232_v2, %v5536_v14  ;;  %v1600_v2 = vunpack.c.l.bf16 %v5422_v44 }
 0x28c   : > { %v1501_v35 = vpop.f32.mrf.mxu1 }
 0x28d   : > { %v1502_v33 = vadd.f32 %v5536_v14, %v1501_v35  ;;  %v1626_v59 = vadd.f32 %v1594_v41, %v1510_v63  ;;  %v4911_v63 = vld [vmem:[#allocation2 + $0x40] sm:$0xff]  }
 0x28e   : > { %v4233_v39 = vpop.f32.mrf.mxu1  ;;  %4312 = vmatprep.subr.bf16.mxu1 %v4911_v63 }
 0x28f   : > { %v1513_v40 = vadd.f32 %v4233_v39, %v5536_v14  ;;  %v1624_v53 = vadd.f32 %v1592_v54, %v1502_v33  ;;  %v1658_v45 = vmax.f32 %v1626_v59, 0.0  ;;  %v1603_v33 = vunpack.c.h.bf16 %v5424_v52  ;;  %4313 = vmatpush3.bf16.msra.mxu1 %v4911_v63 }
 0x290   : > { %v1504_v48 = vpop.f32.mrf.mxu1  ;;  %v1602_v39 = vunpack.c.l.bf16 %v5424_v52 }
 0x291   : > { %v1627_v55 = vadd.f32 %v1595_v49, %v1513_v40  ;;  %v1505_v56 = vadd.f32 %v5536_v14, %v1504_v48  ;;  %v1656_v62 = vmax.f32 %v1624_v53, 0.0  ;;  %v1601_v48 = vunpack.c.h.bf16 %v5422_v44 }
 0x293   : > { %v1625_v60 = vadd.f32 %v1593_v37, %v1505_v56  ;;  %v1659_v61 = vmax.f32 %v1627_v55, 0.0 }
 0x295   : > { %v1657_v3 = vmax.f32 %v1625_v60, 0.0  ;;  %v5590_v5 = vpack.c.bf16 %v1659_v61, %v1658_v45 }
 0x297   : > { %v5588_v4 = vpack.c.bf16 %v1657_v3, %v1656_v62 }
 0x299   : > { %4278 = vmatprep.mubr.bf16.mxu0 %v5588_v4 }
 0x29a   : > { %4279 = vmatmul.mubr.bf16.gmra.mxu0 %v5590_v5 }
 0x29d   : > { %v4236_v58 = vpop.f32.mrf.mxu1 }
 0x29e   : > { %v1526_v57 = vadd.f32 %v4236_v58, %v5536_v14 }
 0x29f   : > { %v1517_v7 = vpop.f32.mrf.mxu1 }
 0x2a0   : > { %v1518_v9 = vadd.f32 %v5536_v14, %v1517_v7  ;;  %v1630_v19 = vadd.f32 %v1598_v13, %v1526_v57  ;;  %v1604_v7 = vunpack.c.l.bf16 %v5444_v42  ;;  %v1607_v57 = vunpack.c.h.bf16 %v5446_v50 }
 0x2a1   : > { %v4237_v27 = vpop.f32.mrf.mxu1 }
 0x2a2   : > { %v1529_v12 = vadd.f32 %v4237_v27, %v5536_v14  ;;  %v1628_v15 = vadd.f32 %v1596_v18, %v1518_v9  ;;  %v1662_v46 = vmax.f32 %v1630_v19, 0.0  ;;  %v1606_v27 = vunpack.c.l.bf16 %v5446_v50 }
 0x2a3   : > { %v1520_v8 = vpop.f32.mrf.mxu1 }
 0x2a4   : > { %v1631_v16 = vadd.f32 %v1599_v6, %v1529_v12  ;;  %v1521_v17 = vadd.f32 %v5536_v14, %v1520_v8  ;;  %v1660_v22 = vmax.f32 %v1628_v15, 0.0  ;;  %v1605_v8 = vunpack.c.h.bf16 %v5444_v42 }
 0x2a6   : > { %v1629_v20 = vadd.f32 %v1597_v1, %v1521_v17  ;;  %v1663_v21 = vmax.f32 %v1631_v16, 0.0 }
 0x2a8   : > { %v1661_v23 = vmax.f32 %v1629_v20, 0.0  ;;  %v5604_v25 = vpack.c.bf16 %v1663_v21, %v1662_v46 }
 0x2aa   : > { %v5602_v24 = vpack.c.bf16 %v1661_v23, %v1660_v22 }
 0x2ac   : > { %4282 = vmatprep.mubr.bf16.mxu0 %v5602_v24 }
 0x2ad   : > { %4283 = vmatmul.mubr.bf16.gmra.mxu0 %v5604_v25 }
 0x2b0   : > { %v4240_v26 = vpop.f32.mrf.mxu1 }
 0x2b1   : > { %v1542_v30 = vadd.f32 %v4240_v26, %v5536_v14  ;;  %v1608_v26 = vunpack.c.l.bf16 %v5466_v36 }
 0x2b2   : > { %v1533_v47 = vpop.f32.mrf.mxu1 }
 0x2b3   : > { %v1534_v29 = vadd.f32 %v5536_v14, %v1533_v47  ;;  %v1634_v53 = vadd.f32 %v1602_v39, %v1542_v30  ;;  %v1611_v47 = vunpack.c.h.bf16 %v5468_v38 }
 0x2b4   : > { %v4241_v31 = vpop.f32.mrf.mxu1 }
 0x2b5   : > { %v1545_v35 = vadd.f32 %v4241_v31, %v5536_v14  ;;  %v1632_v40 = vadd.f32 %v1600_v2, %v1534_v29  ;;  %v1666_v60 = vmax.f32 %v1634_v53, 0.0  ;;  %v1610_v29 = vunpack.c.l.bf16 %v5468_v38 }
 0x2b6   : > { %v1536_v54 = vpop.f32.mrf.mxu1 }
 0x2b7   : > { %v1635_v49 = vadd.f32 %v1603_v33, %v1545_v35  ;;  %v1537_v41 = vadd.f32 %v5536_v14, %v1536_v54  ;;  %v1664_v37 = vmax.f32 %v1632_v40, 0.0  ;;  %v1609_v33 = vunpack.c.h.bf16 %v5466_v36  ;;  %v5653_v36 = vld [vmem:[%s6165_s4 + $0x1] ss:$0 sm:$0xff] }
 0x2b9   : > { %v1633_v55 = vadd.f32 %v1601_v48, %v1537_v41  ;;  %v1667_v56 = vmax.f32 %v1635_v49, 0.0 }
 0x2bb   : > { %v1665_v59 = vmax.f32 %v1633_v55, 0.0  ;;  %v5618_v62 = vpack.c.bf16 %v1667_v56, %v1666_v60 }
 0x2bd   : > { %v5616_v61 = vpack.c.bf16 %v1665_v59, %v1664_v37 }
 0x2bf   : > { %4286 = vmatprep.mubr.bf16.mxu0 %v5616_v61 }
 0x2c0   : > { %4287 = vmatmul.mubr.bf16.gmra.mxu0 %v5618_v62 }
 0x2c3   : > { %v4244_v52 = vpop.f32.mrf.mxu1 }
 0x2c4   : > { %v1558_v45 = vadd.f32 %v4244_v52, %v5536_v14 }
 0x2c5   : > { %v1549_v3 = vpop.f32.mrf.mxu1 }
 0x2c6   : > { %v1550_v44 = vadd.f32 %v5536_v14, %v1549_v3  ;;  %v1638_v15 = vadd.f32 %v1606_v27, %v1558_v45 }
 0x2c7   : > { %v4245_v58 = vpop.f32.mrf.mxu1 }
 0x2c8   : > { %v1561_v9 = vadd.f32 %v4245_v58, %v5536_v14  ;;  %v1636_v12 = vadd.f32 %v1604_v7, %v1550_v44  ;;  %v1670_v20 = vmax.f32 %v1638_v15, 0.0  ;;  %v4912_v7 = vld [vmem:[%s6164_s3 + $0xb8] sm:$0xff]  }
 0x2c9   : > { %v1552_v18 = vpop.f32.mrf.mxu1  ;;  %4346 = vmatprep.subr.bf16.mxu0 %v4912_v7 }
 0x2ca   : > { %v1639_v6 = vadd.f32 %v1607_v57, %v1561_v9  ;;  %v1553_v13 = vadd.f32 %v5536_v14, %v1552_v18  ;;  %v1668_v1 = vmax.f32 %v1636_v12, 0.0  ;;  %v4913_v9 = vld [vmem:[%s6164_s3 + $0xb0] sm:$0xff]   ;;  %4347 = vmatpush3.bf16.msra.mxu0 %v4912_v7 }
 0x2cb   : > { %4348 = vmatprep.subr.bf16.mxu0 %v4913_v9 }
 0x2cc   : > { %v1637_v16 = vadd.f32 %v1605_v8, %v1553_v13  ;;  %v1671_v17 = vmax.f32 %v1639_v6, 0.0  ;;  %v4914_v13 = vld [vmem:[%s6164_s3 + $0xa8] sm:$0xff]  }
 0x2ce   : > { %v1669_v19 = vmax.f32 %v1637_v16, 0.0  ;;  %v5632_v22 = vpack.c.bf16 %v1671_v17, %v1670_v20  ;;  %4349 = vmatpush3.bf16.msra.mxu0 %v4913_v9  ;;  %v4915_v20 = vld [vmem:[%s6164_s3 + $0xa0] sm:$0xff]  }
 0x2cf   : > { %4350 = vmatprep.subr.bf16.mxu0 %v4914_v13 }
 0x2d0   : > { %v5630_v21 = vpack.c.bf16 %v1669_v19, %v1668_v1 }
 0x2d2   : > { %4290 = vmatprep.mubr.bf16.mxu0 %v5630_v21  ;;  %4351 = vmatpush3.bf16.msra.mxu0 %v4914_v13 }
 0x2d3   : > { %4291 = vmatmul.mubr.bf16.gmra.mxu0 %v5632_v22  ;;  %4352 = vmatprep.subr.bf16.mxu0 %v4915_v20 }
 0x2d6   : > { %v4248_v50 = vpop.f32.mrf.mxu1  ;;  %4353 = vmatpush3.bf16.msra.mxu0 %v4915_v20 }
 0x2d7   : > { %v1574_v42 = vadd.f32 %v4248_v50, %v5536_v14 }
 0x2d8   : > { %v1565_v23 = vpop.f32.mrf.mxu1 }
 0x2d9   : > { %v1566_v46 = vadd.f32 %v5536_v14, %v1565_v23  ;;  %v1642_v63 = vadd.f32 %v1610_v29, %v1574_v42 }
 0x2da   : > { %v4249_v51 = vpop.f32.mrf.mxu1 }
 0x2db   : > { %v1577_v28 = vadd.f32 %v4249_v51, %v5536_v14  ;;  %v1640_v31 = vadd.f32 %v1608_v26, %v1566_v46  ;;  %v1674_v41 = vmax.f32 %v1642_v63, 0.0 }
 0x2dc   : > { %v1568_v30 = vpop.f32.mrf.mxu1 }
 0x2dd   : > { %v1643_v2 = vadd.f32 %v1611_v47, %v1577_v28  ;;  %v1569_v35 = vadd.f32 %v5536_v14, %v1568_v30  ;;  %v1672_v40 = vmax.f32 %v1640_v31, 0.0 }
 0x2df   : > { %v1641_v39 = vadd.f32 %v1609_v33, %v1569_v35  ;;  %v1675_v54 = vmax.f32 %v1643_v2, 0.0 }
 0x2e1   : > { %v1673_v49 = vmax.f32 %v1641_v39, 0.0  ;;  %v5646_v53 = vpack.c.bf16 %v1675_v54, %v1674_v41 }
 0x2e3   : > { %v5644_v48 = vpack.c.bf16 %v1673_v49, %v1672_v40 }
 0x2e5   : > { %4294 = vmatprep.mubr.bf16.mxu0 %v5644_v48 }
 0x2e6   : > { %4295 = vmatmul.mubr.bf16.gmra.mxu0 %v5646_v53 }
 0x32b   : > { %v4268_v38 = vpop.f32.mrf.mxu0 }
 0x32c   : > { %v1808_v59 = vadd.f32 %v4268_v38, %v5653_v36 }
 0x32d   : > { %v1799_v55 = vpop.f32.mrf.mxu0 }
 0x32e   : > { %v1800_v56 = vadd.f32 %v5653_v36, %v1799_v55  ;;  %v1928_v57 = vmax.f32 %v1808_v59, 0.0 }
 0x32f   : > { %v4269_v14 = vpop.f32.mrf.mxu0 }
 0x330   : > { %v1811_v37 = vadd.f32 %v4269_v14, %v5653_v36  ;;  %v1926_v44 = vmax.f32 %v1800_v56, 0.0 }
 0x331   : > { %v1802_v60 = vpop.f32.mrf.mxu0 }
 0x332   : > { %v1803_v52 = vadd.f32 %v5653_v36, %v1802_v60  ;;  %v1929_v3 = vmax.f32 %v1811_v37, 0.0 }
 0x334   : > { %v1927_v45 = vmax.f32 %v1803_v52, 0.0  ;;  %v4272_v58 = vpop.f32.mrf.mxu0  ;;  %v1959_v12 = vpack.c.bf16 %v1929_v3, %v1928_v57 }
 0x335   : > { %v1824_v16 = vadd.f32 %v4272_v58, %v5653_v36 }
 0x336   : > { %v1958_v27 = vpack.c.bf16 %v1927_v45, %v1926_v44  ;;  %v1815_v18 = vpop.f32.mrf.mxu0 }
 0x337   : > { %v1816_v8 = vadd.f32 %v5653_v36, %v1815_v18  ;;  %v1932_v46 = vmax.f32 %v1824_v16, 0.0 }
 0x338   : > { %v4273_v6 = vpop.f32.mrf.mxu0  ;;  %4314 = vmatprep.mubr.bf16.mxu1 %v1958_v27 }
 0x339   : > { %v1827_v15 = vadd.f32 %v4273_v6, %v5653_v36  ;;  %4315 = vmatmul.mubr.bf16.vlgmr.msra.gmra.mxu1 %v1959_v12  ;;  %v1930_v50 = vmax.f32 %v1816_v8, 0.0 }
 0x33a   : > { %v1818_v17 = vpop.f32.mrf.mxu0 }
 0x33b   : > { %v1819_v1 = vadd.f32 %v5653_v36, %v1818_v17  ;;  %v1933_v19 = vmax.f32 %v1827_v15, 0.0 }
 0x33d   : > { %v1931_v23 = vmax.f32 %v1819_v1, 0.0  ;;  %v1961_v51 = vpack.c.bf16 %v1933_v19, %v1932_v46 }
 0x33f   : > { %v1960_v42 = vpack.c.bf16 %v1931_v23, %v1930_v50  ;;  %v4916_v50 = vld [vmem:[%s6164_s3 + $0x98] sm:$0xff]   ;;  %v4917_v23 = vld [vmem:[%s6164_s3 + $0x90] sm:$0xff]  }
 0x340   : > { %4354 = vmatprep.subr.bf16.mxu0 %v4916_v50 }
 0x341   : > { %4318 = vmatprep.mubr.bf16.mxu1 %v1960_v42  ;;  %4355 = vmatpush3.bf16.msra.mxu0 %v4916_v50  ;;  %v4918_v42 = vld [vmem:[%s6164_s3 + $0x88] sm:$0xff]   ;;  %v5714_v50 = vld [vmem:[%s6167_s6 + $0x1] ss:$0 sm:$0xff] }
 0x342   : > { %4319 = vmatmul.mubr.bf16.gmra.mxu1 %v1961_v51  ;;  %4356 = vmatprep.subr.bf16.mxu0 %v4917_v23 }
 0x345   : > { %4357 = vmatpush3.bf16.msra.mxu0 %v4917_v23 }
 0x346   : > { %4358 = vmatprep.subr.bf16.mxu0 %v4918_v42 }
 0x347   : > { %v4276_v26 = vpop.f32.mrf.mxu0 }
 0x348   : > { %v1840_v31 = vadd.f32 %v4276_v26, %v5653_v36 }
 0x349   : > { %v1831_v28 = vpop.f32.mrf.mxu0  ;;  %4359 = vmatpush3.bf16.msra.mxu0 %v4918_v42 }
 0x34a   : > { %v1832_v29 = vadd.f32 %v5653_v36, %v1831_v28  ;;  %v1936_v54 = vmax.f32 %v1840_v31, 0.0 }
 0x34b   : > { %v4277_v47 = vpop.f32.mrf.mxu0 }
 0x34c   : > { %v1843_v30 = vadd.f32 %v4277_v47, %v5653_v36  ;;  %v1934_v63 = vmax.f32 %v1832_v29, 0.0  ;;  %v4919_v29 = vld [vmem:[%s6164_s3 + $0x80] sm:$0xff]  }
 0x34d   : > { %v1834_v2 = vpop.f32.mrf.mxu0  ;;  %4360 = vmatprep.subr.bf16.mxu0 %v4919_v29 }
 0x34e   : > { %v1835_v35 = vadd.f32 %v5653_v36, %v1834_v2  ;;  %v1937_v33 = vmax.f32 %v1843_v30, 0.0  ;;  %4361 = vmatpush3.bf16.msra.mxu0 %v4919_v29 }
 0x350   : > { %v1935_v39 = vmax.f32 %v1835_v35, 0.0  ;;  %v1963_v49 = vpack.c.bf16 %v1937_v33, %v1936_v54 }
 0x352   : > { %v1962_v40 = vpack.c.bf16 %v1935_v39, %v1934_v63 }
 0x354   : > { %4322 = vmatprep.mubr.bf16.mxu1 %v1962_v40 }
 0x355   : > { %4323 = vmatmul.mubr.bf16.gmra.mxu1 %v1963_v49 }
 0x35a   : > { %v4280_v41 = vpop.f32.mrf.mxu0 }
 0x35b   : > { %v1856_v37 = vadd.f32 %v4280_v41, %v5653_v36 }
 0x35c   : > { %v1847_v38 = vpop.f32.mrf.mxu0 }
 0x35d   : > { %v1848_v14 = vadd.f32 %v5653_v36, %v1847_v38  ;;  %v1940_v45 = vmax.f32 %v1856_v37, 0.0 }
 0x35e   : > { %v4281_v55 = vpop.f32.mrf.mxu0 }
 0x35f   : > { %v1859_v56 = vadd.f32 %v4281_v55, %v5653_v36  ;;  %v1938_v3 = vmax.f32 %v1848_v14, 0.0 }
 0x360   : > { %v1850_v59 = vpop.f32.mrf.mxu0 }
 0x361   : > { %v1851_v60 = vadd.f32 %v5653_v36, %v1850_v59  ;;  %v1941_v52 = vmax.f32 %v1859_v56, 0.0 }
 0x363   : > { %v1939_v44 = vmax.f32 %v1851_v60, 0.0  ;;  %v1965_v7 = vpack.c.bf16 %v1941_v52, %v1940_v45 }
 0x365   : > { %v1964_v58 = vpack.c.bf16 %v1939_v44, %v1938_v3 }
 0x367   : > { %4326 = vmatprep.mubr.bf16.mxu1 %v1964_v58 }
 0x368   : > { %4327 = vmatmul.mubr.bf16.gmra.mxu1 %v1965_v7 }
 0x36d   : > { %v4284_v9 = vpop.f32.mrf.mxu0 }
 0x36e   : > { %v1872_v6 = vadd.f32 %v4284_v9, %v5653_v36 }
 0x36f   : > { %v1863_v57 = vpop.f32.mrf.mxu0 }
 0x370   : > { %v1864_v18 = vadd.f32 %v5653_v36, %v1863_v57  ;;  %v1944_v1 = vmax.f32 %v1872_v6, 0.0 }
 0x371   : > { %v4285_v27 = vpop.f32.mrf.mxu0 }
 0x372   : > { %v1875_v12 = vadd.f32 %v4285_v27, %v5653_v36  ;;  %v1942_v16 = vmax.f32 %v1864_v18, 0.0 }
 0x373   : > { %v1866_v13 = vpop.f32.mrf.mxu0 }
 0x374   : > { %v1867_v8 = vadd.f32 %v5653_v36, %v1866_v13  ;;  %v1945_v15 = vmax.f32 %v1875_v12, 0.0 }
 0x376   : > { %v1943_v17 = vmax.f32 %v1867_v8, 0.0  ;;  %v1967_v20 = vpack.c.bf16 %v1945_v15, %v1944_v1 }
 0x378   : > { %v1966_v19 = vpack.c.bf16 %v1943_v17, %v1942_v16 }
 0x37a   : > { %4330 = vmatprep.mubr.bf16.mxu1 %v1966_v19 }
 0x37b   : > { %4331 = vmatmul.mubr.bf16.gmra.mxu1 %v1967_v20 }
 0x380   : > { %v4288_v46 = vpop.f32.mrf.mxu0 }
 0x381   : > { %v1888_v30 = vadd.f32 %v4288_v46, %v5653_v36 }
 0x382   : > { %v1879_v51 = vpop.f32.mrf.mxu0 }
 0x383   : > { %v1880_v28 = vadd.f32 %v5653_v36, %v1879_v51  ;;  %v1948_v39 = vmax.f32 %v1888_v30, 0.0  ;;  %v2208_v51 = vunpack.c.l.bf16 %v5548_v43 }
 0x384   : > { %v4289_v26 = vpop.f32.mrf.mxu0 }
 0x385   : > { %v1891_v47 = vadd.f32 %v4289_v26, %v5653_v36  ;;  %v1946_v33 = vmax.f32 %v1880_v28, 0.0  ;;  %v2211_v28 = vunpack.c.h.bf16 %v5550_v0 }
 0x386   : > { %v1882_v31 = vpop.f32.mrf.mxu0 }
 0x387   : > { %v1883_v2 = vadd.f32 %v5653_v36, %v1882_v31  ;;  %v1949_v35 = vmax.f32 %v1891_v47, 0.0  ;;  %v2210_v47 = vunpack.c.l.bf16 %v5550_v0 }
 0x389   : > { %v1947_v63 = vmax.f32 %v1883_v2, 0.0  ;;  %v1969_v40 = vpack.c.bf16 %v1949_v35, %v1948_v39  ;;  %v2209_v35 = vunpack.c.h.bf16 %v5548_v43  ;;  %v2212_v43 = vunpack.c.l.bf16 %v5560_v10 }
 0x38b   : > { %v1968_v54 = vpack.c.bf16 %v1947_v63, %v1946_v33 }
 0x38d   : > { %4334 = vmatprep.mubr.bf16.mxu1 %v1968_v54 }
 0x38e   : > { %4335 = vmatmul.mubr.bf16.gmra.mxu1 %v1969_v40 }
 0x393   : > { %v4292_v49 = vpop.f32.mrf.mxu0 }
 0x394   : > { %v1904_v56 = vadd.f32 %v4292_v49, %v5653_v36 }
 0x395   : > { %v1895_v41 = vpop.f32.mrf.mxu0 }
 0x396   : > { %v1896_v55 = vadd.f32 %v5653_v36, %v1895_v41  ;;  %v1952_v44 = vmax.f32 %v1904_v56, 0.0 }
 0x397   : > { %v4293_v38 = vpop.f32.mrf.mxu0 }
 0x398   : > { %v1907_v14 = vadd.f32 %v4293_v38, %v5653_v36  ;;  %v1950_v52 = vmax.f32 %v1896_v55, 0.0  ;;  %v4920_v38 = vld [vmem:[#allocation2 + $0xb8] sm:$0xff]   ;;  %v4921_v55 = vld [vmem:[#allocation2 + $0xb0] sm:$0xff]  }
 0x399   : > { %v1898_v37 = vpop.f32.mrf.mxu0  ;;  %4394 = vmatprep.subr.bf16.mxu1 %v4920_v38 }
 0x39a   : > { %v1899_v59 = vadd.f32 %v5653_v36, %v1898_v37  ;;  %v1953_v60 = vmax.f32 %v1907_v14, 0.0  ;;  %4395 = vmatpush3.bf16.msra.mxu1 %v4920_v38 }
 0x39b   : > { %4396 = vmatprep.subr.bf16.mxu1 %v4921_v55 }
 0x39c   : > { %v1951_v3 = vmax.f32 %v1899_v59, 0.0  ;;  %v1971_v58 = vpack.c.bf16 %v1953_v60, %v1952_v44  ;;  %v2214_v44 = vunpack.c.l.bf16 %v5562_v11 }
 0x39e   : > { %v1970_v45 = vpack.c.bf16 %v1951_v3, %v1950_v52  ;;  %v2215_v3 = vunpack.c.h.bf16 %v5562_v11  ;;  %4397 = vmatpush3.bf16.msra.mxu1 %v4921_v55 }
 0x3a0   : > { %4338 = vmatprep.mubr.bf16.mxu1 %v1970_v45 }
 0x3a1   : > { %4339 = vmatmul.mubr.bf16.gmra.mxu1 %v1971_v58  ;;  %v4922_v58 = vld [vmem:[#allocation2 + $0xa8] sm:$0xff]  }
 0x3a2   : > { %4398 = vmatprep.subr.bf16.mxu1 %v4922_v58 }
 0x3a3   : > { %4399 = vmatpush3.bf16.msra.mxu1 %v4922_v58 }
 0x3a6   : > { %v4296_v7 = vpop.f32.mrf.mxu0 }
 0x3a7   : > { %v1920_v12 = vadd.f32 %v4296_v7, %v5653_v36 }
 0x3a8   : > { %v1911_v9 = vpop.f32.mrf.mxu0 }
 0x3a9   : > { %v1912_v27 = vadd.f32 %v5653_v36, %v1911_v9  ;;  %v1956_v17 = vmax.f32 %v1920_v12, 0.0 }
 0x3aa   : > { %v4297_v57 = vpop.f32.mrf.mxu0 }
 0x3ab   : > { %v1923_v18 = vadd.f32 %v4297_v57, %v5653_v36  ;;  %v1954_v15 = vmax.f32 %v1912_v27, 0.0  ;;  %v2213_v27 = vunpack.c.h.bf16 %v5560_v10 }
 0x3ac   : > { %v1914_v6 = vpop.f32.mrf.mxu0 }
 0x3ad   : > { %v1915_v13 = vadd.f32 %v5653_v36, %v1914_v6  ;;  %v1957_v8 = vmax.f32 %v1923_v18, 0.0 }
 0x3af   : > { %v1955_v16 = vmax.f32 %v1915_v13, 0.0  ;;  %v1973_v19 = vpack.c.bf16 %v1957_v8, %v1956_v17  ;;  %v4923_v13 = vld [vmem:[#allocation2 + $0xa0] sm:$0xff]  }
 0x3b0   : > { %4400 = vmatprep.subr.bf16.mxu1 %v4923_v13 }
 0x3b1   : > { %v1972_v1 = vpack.c.bf16 %v1955_v16, %v1954_v15  ;;  %4401 = vmatpush3.bf16.msra.mxu1 %v4923_v13 }
 0x3b3   : > { %4342 = vmatprep.mubr.bf16.mxu1 %v1972_v1  ;;  %v4924_v1 = vld [vmem:[#allocation2 + $0x98] sm:$0xff]  }
 0x3b4   : > { %4343 = vmatmul.mubr.bf16.gmra.mxu1 %v1973_v19  ;;  %4402 = vmatprep.subr.bf16.mxu1 %v4924_v1 }
 0x3b5   : > { %4403 = vmatpush3.bf16.msra.mxu1 %v4924_v1 }
 0x3f9   : > { %v4316_v20 = vpop.f32.mrf.mxu1 }
 0x3fa   : > { %v2090_v42 = vadd.f32 %v4316_v20, %v5714_v50 }
 0x3fb   : > { %v2081_v23 = vpop.f32.mrf.mxu1 }
 0x3fc   : > { %v2082_v46 = vadd.f32 %v5714_v50, %v2081_v23  ;;  %v2242_v33 = vadd.f32 %v2210_v47, %v2090_v42  ;;  %v2216_v42 = vunpack.c.l.bf16 %v5574_v32 }
 0x3fd   : > { %v4317_v36 = vpop.f32.mrf.mxu1 }
 0x3fe   : > { %v2093_v26 = vadd.f32 %v4317_v36, %v5714_v50  ;;  %v2240_v30 = vadd.f32 %v2208_v51, %v2082_v46  ;;  %v2274_v14 = vmax.f32 %v2242_v33, 0.0  ;;  %v2219_v51 = vunpack.c.h.bf16 %v5576_v34 }
 0x3ff   : > { %v2084_v29 = vpop.f32.mrf.mxu1 }
 0x400   : > { %v2243_v31 = vadd.f32 %v2211_v28, %v2093_v26  ;;  %v2085_v2 = vadd.f32 %v5714_v50, %v2084_v29  ;;  %v2272_v40 = vmax.f32 %v2240_v30, 0.0  ;;  %v2218_v26 = vunpack.c.l.bf16 %v5576_v34 }
 0x402   : > { %v2241_v63 = vadd.f32 %v2209_v35, %v2085_v2  ;;  %v4320_v39 = vpop.f32.mrf.mxu1  ;;  %v2275_v54 = vmax.f32 %v2243_v31, 0.0  ;;  %v2217_v31 = vunpack.c.h.bf16 %v5574_v32 }
 0x403   : > { %v2106_v0 = vadd.f32 %v4320_v39, %v5714_v50 }
 0x404   : > { %v2273_v49 = vmax.f32 %v2241_v63, 0.0  ;;  %v2097_v41 = vpop.f32.mrf.mxu1  ;;  %v5728_v60 = vpack.c.bf16 %v2275_v54, %v2274_v14  ;;  %v2220_v14 = vunpack.c.l.bf16 %v5588_v4 }
 0x405   : > { %v2098_v56 = vadd.f32 %v5714_v50, %v2097_v41  ;;  %v2246_v18 = vadd.f32 %v2214_v44, %v2106_v0  ;;  %v2223_v0 = vunpack.c.h.bf16 %v5590_v5 }
 0x406   : > { %v4321_v37 = vpop.f32.mrf.mxu1  ;;  %v5726_v59 = vpack.c.bf16 %v2273_v49, %v2272_v40 }
 0x407   : > { %v2109_v52 = vadd.f32 %v4321_v37, %v5714_v50  ;;  %v2244_v7 = vadd.f32 %v2212_v43, %v2098_v56  ;;  %v2278_v15 = vmax.f32 %v2246_v18, 0.0  ;;  %v2222_v37 = vunpack.c.l.bf16 %v5590_v5 }
 0x408   : > { %v2100_v45 = vpop.f32.mrf.mxu1  ;;  %4362 = vmatprep.mubr.bf16.mxu0 %v5726_v59 }
 0x409   : > { %v2247_v9 = vadd.f32 %v2215_v3, %v2109_v52  ;;  %v2101_v57 = vadd.f32 %v5714_v50, %v2100_v45  ;;  %4363 = vmatmul.mubr.bf16.vlgmr.msra.gmra.mxu0 %v5728_v60  ;;  %v2276_v11 = vmax.f32 %v2244_v7, 0.0  ;;  %v2221_v45 = vunpack.c.h.bf16 %v5588_v4 }
 0x40b   : > { %v2245_v12 = vadd.f32 %v2213_v27, %v2101_v57  ;;  %v2279_v6 = vmax.f32 %v2247_v9, 0.0 }
 0x40d   : > { %v2277_v8 = vmax.f32 %v2245_v12, 0.0  ;;  %v5740_v17 = vpack.c.bf16 %v2279_v6, %v2278_v15  ;;  %v2224_v15 = vunpack.c.l.bf16 %v5602_v24 }
 0x40f   : > { %v5738_v16 = vpack.c.bf16 %v2277_v8, %v2276_v11 }
 0x411   : > { %4366 = vmatprep.mubr.bf16.mxu0 %v5738_v16 }
 0x412   : > { %4367 = vmatmul.mubr.bf16.gmra.mxu0 %v5740_v17 }
 0x415   : > { %v4324_v10 = vpop.f32.mrf.mxu1 }
 0x416   : > { %v2122_v23 = vadd.f32 %v4324_v10, %v5714_v50  ;;  %v2227_v10 = vunpack.c.h.bf16 %v5604_v25 }
 0x417   : > { %v2113_v19 = vpop.f32.mrf.mxu1 }
 0x418   : > { %v2114_v20 = vadd.f32 %v5714_v50, %v2113_v19  ;;  %v2250_v2 = vadd.f32 %v2218_v26, %v2122_v23  ;;  %v2226_v19 = vunpack.c.l.bf16 %v5604_v25  ;;  %v4925_v25 = vld [vmem:[#allocation2 + $0x90] sm:$0xff]  }
 0x419   : > { %v4325_v46 = vpop.f32.mrf.mxu1  ;;  %4404 = vmatprep.subr.bf16.mxu1 %v4925_v25 }
 0x41a   : > { %v2125_v36 = vadd.f32 %v4325_v46, %v5714_v50  ;;  %v2248_v47 = vadd.f32 %v2216_v42, %v2114_v20  ;;  %v2282_v54 = vmax.f32 %v2250_v2, 0.0  ;;  %4405 = vmatpush3.bf16.msra.mxu1 %v4925_v25 }
 0x41b   : > { %v2116_v28 = vpop.f32.mrf.mxu1 }
 0x41c   : > { %v2251_v29 = vadd.f32 %v2219_v51, %v2125_v36  ;;  %v2117_v30 = vadd.f32 %v5714_v50, %v2116_v28  ;;  %v2280_v63 = vmax.f32 %v2248_v47, 0.0  ;;  %v2225_v36 = vunpack.c.h.bf16 %v5602_v24 }
 0x41e   : > { %v2249_v35 = vadd.f32 %v2217_v31, %v2117_v30  ;;  %v2283_v33 = vmax.f32 %v2251_v29, 0.0 }
 0x420   : > { %v2281_v39 = vmax.f32 %v2249_v35, 0.0  ;;  %v5754_v49 = vpack.c.bf16 %v2283_v33, %v2282_v54  ;;  %v4926_v33 = vld [vmem:[#allocation2 + $0x88] sm:$0xff]  }
 0x421   : > { %4406 = vmatprep.subr.bf16.mxu1 %v4926_v33 }
 0x422   : > { %v5752_v40 = vpack.c.bf16 %v2281_v39, %v2280_v63  ;;  %4407 = vmatpush3.bf16.msra.mxu1 %v4926_v33 }
 0x424   : > { %4370 = vmatprep.mubr.bf16.mxu0 %v5752_v40 }
 0x425   : > { %4371 = vmatmul.mubr.bf16.gmra.mxu0 %v5754_v49 }
 0x428   : > { %v4328_v34 = vpop.f32.mrf.mxu1 }
 0x429   : > { %v2138_v32 = vadd.f32 %v4328_v34, %v5714_v50  ;;  %v2228_v34 = vunpack.c.l.bf16 %v5616_v61 }
 0x42a   : > { %v2129_v41 = vpop.f32.mrf.mxu1 }
 0x42b   : > { %v2130_v38 = vadd.f32 %v5714_v50, %v2129_v41  ;;  %v2254_v58 = vadd.f32 %v2222_v37, %v2138_v32  ;;  %v4927_v32 = vld [vmem:[#allocation2 + $0x80] sm:$0xff]  }
 0x42c   : > { %v4329_v55 = vpop.f32.mrf.mxu1  ;;  %4408 = vmatprep.subr.bf16.mxu1 %v4927_v32 }
 0x42d   : > { %v2141_v56 = vadd.f32 %v4329_v55, %v5714_v50  ;;  %v2252_v52 = vadd.f32 %v2220_v14, %v2130_v38  ;;  %v2286_v18 = vmax.f32 %v2254_v58, 0.0  ;;  %v2231_v38 = vunpack.c.h.bf16 %v5618_v62  ;;  %4409 = vmatpush3.bf16.msra.mxu1 %v4927_v32 }
 0x42e   : > { %v2132_v43 = vpop.f32.mrf.mxu1  ;;  %v2230_v55 = vunpack.c.l.bf16 %v5618_v62 }
 0x42f   : > { %v2255_v3 = vadd.f32 %v2223_v0, %v2141_v56  ;;  %v2133_v44 = vadd.f32 %v5714_v50, %v2132_v43  ;;  %v2284_v57 = vmax.f32 %v2252_v52, 0.0  ;;  %v2229_v43 = vunpack.c.h.bf16 %v5616_v61 }
 0x431   : > { %v2253_v7 = vadd.f32 %v2221_v45, %v2133_v44  ;;  %v2287_v9 = vmax.f32 %v2255_v3, 0.0 }
 0x433   : > { %v2285_v27 = vmax.f32 %v2253_v7, 0.0  ;;  %v5768_v6 = vpack.c.bf16 %v2287_v9, %v2286_v18 }
 0x435   : > { %v5766_v12 = vpack.c.bf16 %v2285_v27, %v2284_v57 }
 0x437   : > { %4374 = vmatprep.mubr.bf16.mxu0 %v5766_v12 }
 0x438   : > { %4375 = vmatmul.mubr.bf16.gmra.mxu0 %v5768_v6 }
 0x43b   : > { %v4332_v5 = vpop.f32.mrf.mxu1 }
 0x43c   : > { %v2154_v4 = vadd.f32 %v4332_v5, %v5714_v50 }
 0x43d   : > { %v2145_v13 = vpop.f32.mrf.mxu1 }
 0x43e   : > { %v2146_v11 = vadd.f32 %v5714_v50, %v2145_v13  ;;  %v2258_v51 = vadd.f32 %v2226_v19, %v2154_v4  ;;  %v2232_v13 = vunpack.c.l.bf16 %v5630_v21  ;;  %v2235_v4 = vunpack.c.h.bf16 %v5632_v22 }
 0x43f   : > { %v4333_v8 = vpop.f32.mrf.mxu1 }
 0x440   : > { %v2157_v1 = vadd.f32 %v4333_v8, %v5714_v50  ;;  %v2256_v23 = vadd.f32 %v2224_v15, %v2146_v11  ;;  %v2290_v30 = vmax.f32 %v2258_v51, 0.0  ;;  %v2234_v8 = vunpack.c.l.bf16 %v5632_v22 }
 0x441   : > { %v2148_v20 = vpop.f32.mrf.mxu1 }
 0x442   : > { %v2259_v46 = vadd.f32 %v2227_v10, %v2157_v1  ;;  %v2149_v42 = vadd.f32 %v5714_v50, %v2148_v20  ;;  %v2288_v47 = vmax.f32 %v2256_v23, 0.0  ;;  %v2233_v20 = vunpack.c.h.bf16 %v5630_v21 }
 0x444   : > { %v2257_v26 = vadd.f32 %v2225_v36, %v2149_v42  ;;  %v2291_v28 = vmax.f32 %v2259_v46, 0.0 }
 0x446   : > { %v2289_v29 = vmax.f32 %v2257_v26, 0.0  ;;  %v5782_v2 = vpack.c.bf16 %v2291_v28, %v2290_v30 }
 0x448   : > { %v5780_v31 = vpack.c.bf16 %v2289_v29, %v2288_v47 }
 0x44a   : > { %4378 = vmatprep.mubr.bf16.mxu0 %v5780_v31 }
 0x44b   : > { %4379 = vmatmul.mubr.bf16.gmra.mxu0 %v5782_v2 }
 0x44e   : > { %v4336_v35 = vpop.f32.mrf.mxu1 }
 0x44f   : > { %v2170_v39 = vadd.f32 %v4336_v35, %v5714_v50  ;;  %v2236_v35 = vunpack.c.l.bf16 %v5644_v48 }
 0x450   : > { %v2161_v24 = vpop.f32.mrf.mxu1 }
 0x451   : > { %v2162_v63 = vadd.f32 %v5714_v50, %v2161_v24  ;;  %v2262_v52 = vadd.f32 %v2230_v55, %v2170_v39  ;;  %v2239_v24 = vunpack.c.h.bf16 %v5646_v53 }
 0x452   : > { %v4337_v54 = vpop.f32.mrf.mxu1 }
 0x453   : > { %v2173_v41 = vadd.f32 %v4337_v54, %v5714_v50  ;;  %v2260_v56 = vadd.f32 %v2228_v34, %v2162_v63  ;;  %v2294_v7 = vmax.f32 %v2262_v52, 0.0  ;;  %v2238_v63 = vunpack.c.l.bf16 %v5646_v53 }
 0x454   : > { %v2164_v14 = vpop.f32.mrf.mxu1 }
 0x455   : > { %v2263_v0 = vadd.f32 %v2231_v38, %v2173_v41  ;;  %v2165_v37 = vadd.f32 %v5714_v50, %v2164_v14  ;;  %v2292_v45 = vmax.f32 %v2260_v56, 0.0  ;;  %v2237_v38 = vunpack.c.h.bf16 %v5644_v48  ;;  %v5831_v48 = vld [vmem:[%s6165_s4 + $0x2] ss:$0 sm:$0xff] }
 0x457   : > { %v2261_v3 = vadd.f32 %v2229_v43, %v2165_v37  ;;  %v2295_v44 = vmax.f32 %v2263_v0, 0.0 }
 0x459   : > { %v2293_v58 = vmax.f32 %v2261_v3, 0.0  ;;  %v5796_v57 = vpack.c.bf16 %v2295_v44, %v2294_v7 }
 0x45b   : > { %v5794_v9 = vpack.c.bf16 %v2293_v58, %v2292_v45 }
 0x45d   : > { %4382 = vmatprep.mubr.bf16.mxu0 %v5794_v9 }
 0x45e   : > { %4383 = vmatmul.mubr.bf16.gmra.mxu0 %v5796_v57 }
 0x461   : > { %v4340_v62 = vpop.f32.mrf.mxu1 }
 0x462   : > { %v2186_v18 = vadd.f32 %v4340_v62, %v5714_v50 }
 0x463   : > { %v2177_v27 = vpop.f32.mrf.mxu1 }
 0x464   : > { %v2178_v61 = vadd.f32 %v5714_v50, %v2177_v27  ;;  %v2266_v23 = vadd.f32 %v2234_v8, %v2186_v18 }
 0x465   : > { %v4341_v5 = vpop.f32.mrf.mxu1 }
 0x466   : > { %v2189_v11 = vadd.f32 %v4341_v5, %v5714_v50  ;;  %v2264_v1 = vadd.f32 %v2232_v13, %v2178_v61  ;;  %v2298_v26 = vmax.f32 %v2266_v23, 0.0  ;;  %v4928_v13 = vld [vmem:[%s6164_s3 + $0xf8] sm:$0xff]  }
 0x467   : > { %v2180_v15 = vpop.f32.mrf.mxu1  ;;  %4442 = vmatprep.subr.bf16.mxu0 %v4928_v13 }
 0x468   : > { %v2267_v10 = vadd.f32 %v2235_v4, %v2189_v11  ;;  %v2181_v19 = vadd.f32 %v5714_v50, %v2180_v15  ;;  %v2296_v36 = vmax.f32 %v2264_v1, 0.0  ;;  %v4929_v11 = vld [vmem:[%s6164_s3 + $0xf0] sm:$0xff]   ;;  %4443 = vmatpush3.bf16.msra.mxu0 %v4928_v13 }
 0x469   : > { %4444 = vmatprep.subr.bf16.mxu0 %v4929_v11 }
 0x46a   : > { %v2265_v46 = vadd.f32 %v2233_v20, %v2181_v19  ;;  %v2299_v42 = vmax.f32 %v2267_v10, 0.0  ;;  %v4930_v19 = vld [vmem:[%s6164_s3 + $0xe8] sm:$0xff]  }
 0x46c   : > { %v2297_v51 = vmax.f32 %v2265_v46, 0.0  ;;  %v5810_v47 = vpack.c.bf16 %v2299_v42, %v2298_v26  ;;  %4445 = vmatpush3.bf16.msra.mxu0 %v4929_v11  ;;  %v4931_v26 = vld [vmem:[%s6164_s3 + $0xe0] sm:$0xff]  }
 0x46d   : > { %4446 = vmatprep.subr.bf16.mxu0 %v4930_v19 }
 0x46e   : > { %v5808_v28 = vpack.c.bf16 %v2297_v51, %v2296_v36 }
 0x470   : > { %4386 = vmatprep.mubr.bf16.mxu0 %v5808_v28  ;;  %4447 = vmatpush3.bf16.msra.mxu0 %v4930_v19 }
 0x471   : > { %4387 = vmatmul.mubr.bf16.gmra.mxu0 %v5810_v47  ;;  %4448 = vmatprep.subr.bf16.mxu0 %v4931_v26 }
 0x474   : > { %v4344_v22 = vpop.f32.mrf.mxu1  ;;  %4449 = vmatpush3.bf16.msra.mxu0 %v4931_v26 }
 0x475   : > { %v2202_v21 = vadd.f32 %v4344_v22, %v5714_v50 }
 0x476   : > { %v2193_v29 = vpop.f32.mrf.mxu1 }
 0x477   : > { %v2194_v30 = vadd.f32 %v5714_v50, %v2193_v29  ;;  %v2270_v32 = vadd.f32 %v2238_v63, %v2202_v21 }
 0x478   : > { %v4345_v25 = vpop.f32.mrf.mxu1 }
 0x479   : > { %v2205_v33 = vadd.f32 %v4345_v25, %v5714_v50  ;;  %v2268_v54 = vadd.f32 %v2236_v35, %v2194_v30  ;;  %v2302_v37 = vmax.f32 %v2270_v32, 0.0 }
 0x47a   : > { %v2196_v39 = vpop.f32.mrf.mxu1 }
 0x47b   : > { %v2271_v34 = vadd.f32 %v2239_v24, %v2205_v33  ;;  %v2197_v41 = vadd.f32 %v5714_v50, %v2196_v39  ;;  %v2300_v56 = vmax.f32 %v2268_v54, 0.0 }
 0x47d   : > { %v2269_v55 = vadd.f32 %v2237_v38, %v2197_v41  ;;  %v2303_v14 = vmax.f32 %v2271_v34, 0.0 }
 0x47f   : > { %v2301_v0 = vmax.f32 %v2269_v55, 0.0  ;;  %v5824_v52 = vpack.c.bf16 %v2303_v14, %v2302_v37 }
 0x481   : > { %v5822_v43 = vpack.c.bf16 %v2301_v0, %v2300_v56 }
 0x483   : > { %4390 = vmatprep.mubr.bf16.mxu0 %v5822_v43 }
 0x484   : > { %4391 = vmatmul.mubr.bf16.gmra.mxu0 %v5824_v52 }
 0x4c9   : > { %v4364_v53 = vpop.f32.mrf.mxu0 }
 0x4ca   : > { %v2436_v58 = vadd.f32 %v4364_v53, %v5831_v48 }
 0x4cb   : > { %v2427_v3 = vpop.f32.mrf.mxu0 }
 0x4cc   : > { %v2428_v44 = vadd.f32 %v5831_v48, %v2427_v3  ;;  %v2556_v4 = vmax.f32 %v2436_v58, 0.0 }
 0x4cd   : > { %v4365_v50 = vpop.f32.mrf.mxu0 }
 0x4ce   : > { %v2439_v45 = vadd.f32 %v4365_v50, %v5831_v48  ;;  %v2554_v61 = vmax.f32 %v2428_v44, 0.0 }
 0x4cf   : > { %v2430_v7 = vpop.f32.mrf.mxu0 }
 0x4d0   : > { %v2431_v62 = vadd.f32 %v5831_v48, %v2430_v7  ;;  %v2557_v27 = vmax.f32 %v2439_v45, 0.0 }
 0x4d2   : > { %v2555_v18 = vmax.f32 %v2431_v62, 0.0  ;;  %v4368_v5 = vpop.f32.mrf.mxu0  ;;  %v2587_v1 = vpack.c.bf16 %v2557_v27, %v2556_v4 }
 0x4d3   : > { %v2452_v46 = vadd.f32 %v4368_v5, %v5831_v48 }
 0x4d4   : > { %v2586_v8 = vpack.c.bf16 %v2555_v18, %v2554_v61  ;;  %v2443_v15 = vpop.f32.mrf.mxu0 }
 0x4d5   : > { %v2444_v20 = vadd.f32 %v5831_v48, %v2443_v15  ;;  %v2560_v30 = vmax.f32 %v2452_v46, 0.0 }
 0x4d6   : > { %v4369_v10 = vpop.f32.mrf.mxu0  ;;  %4410 = vmatprep.mubr.bf16.mxu1 %v2586_v8 }
 0x4d7   : > { %v2455_v23 = vadd.f32 %v4369_v10, %v5831_v48  ;;  %4411 = vmatmul.mubr.bf16.vlgmr.msra.gmra.mxu1 %v2587_v1  ;;  %v2558_v22 = vmax.f32 %v2444_v20, 0.0 }
 0x4d8   : > { %v2446_v42 = vpop.f32.mrf.mxu0 }
 0x4d9   : > { %v2447_v36 = vadd.f32 %v5831_v48, %v2446_v42  ;;  %v2561_v51 = vmax.f32 %v2455_v23, 0.0 }
 0x4db   : > { %v2559_v29 = vmax.f32 %v2447_v36, 0.0  ;;  %v2589_v25 = vpack.c.bf16 %v2561_v51, %v2560_v30 }
 0x4dd   : > { %v2588_v21 = vpack.c.bf16 %v2559_v29, %v2558_v22  ;;  %v4932_v22 = vld [vmem:[%s6164_s3 + $0xd8] sm:$0xff]   ;;  %v4933_v29 = vld [vmem:[%s6164_s3 + $0xd0] sm:$0xff]  }
 0x4de   : > { %4450 = vmatprep.subr.bf16.mxu0 %v4932_v22 }
 0x4df   : > { %4414 = vmatprep.mubr.bf16.mxu1 %v2588_v21  ;;  %4451 = vmatpush3.bf16.msra.mxu0 %v4932_v22  ;;  %v4934_v21 = vld [vmem:[%s6164_s3 + $0xc8] sm:$0xff]   ;;  %v5892_v22 = vld [vmem:[%s6167_s6 + $0x2] ss:$0 sm:$0xff] }
 0x4e0   : > { %4415 = vmatmul.mubr.bf16.gmra.mxu1 %v2589_v25  ;;  %4452 = vmatprep.subr.bf16.mxu0 %v4933_v29 }
 0x4e3   : > { %4453 = vmatpush3.bf16.msra.mxu0 %v4933_v29 }
 0x4e4   : > { %4454 = vmatprep.subr.bf16.mxu0 %v4934_v21 }
 0x4e5   : > { %v4372_v35 = vpop.f32.mrf.mxu0 }
 0x4e6   : > { %v2468_v54 = vadd.f32 %v4372_v35, %v5831_v48 }
 0x4e7   : > { %v2459_v33 = vpop.f32.mrf.mxu0  ;;  %4455 = vmatpush3.bf16.msra.mxu0 %v4934_v21 }
 0x4e8   : > { %v2460_v63 = vadd.f32 %v5831_v48, %v2459_v33  ;;  %v2564_v14 = vmax.f32 %v2468_v54, 0.0 }
 0x4e9   : > { %v4373_v24 = vpop.f32.mrf.mxu0 }
 0x4ea   : > { %v2471_v39 = vadd.f32 %v4373_v24, %v5831_v48  ;;  %v2562_v32 = vmax.f32 %v2460_v63, 0.0  ;;  %v4935_v63 = vld [vmem:[%s6164_s3 + $0xc0] sm:$0xff]  }
 0x4eb   : > { %v2462_v34 = vpop.f32.mrf.mxu0  ;;  %4456 = vmatprep.subr.bf16.mxu0 %v4935_v63 }
 0x4ec   : > { %v2463_v41 = vadd.f32 %v5831_v48, %v2462_v34  ;;  %v2565_v38 = vmax.f32 %v2471_v39, 0.0  ;;  %4457 = vmatpush3.bf16.msra.mxu0 %v4935_v63 }
 0x4ee   : > { %v2563_v55 = vmax.f32 %v2463_v41, 0.0  ;;  %v2591_v0 = vpack.c.bf16 %v2565_v38, %v2564_v14 }
 0x4f0   : > { %v2590_v56 = vpack.c.bf16 %v2563_v55, %v2562_v32 }
 0x4f2   : > { %4418 = vmatprep.mubr.bf16.mxu1 %v2590_v56 }
 0x4f3   : > { %4419 = vmatmul.mubr.bf16.gmra.mxu1 %v2591_v0 }
 0x4f8   : > { %v4376_v37 = vpop.f32.mrf.mxu0 }
 0x4f9   : > { %v2484_v45 = vadd.f32 %v4376_v37, %v5831_v48 }
 0x4fa   : > { %v2475_v53 = vpop.f32.mrf.mxu0 }
 0x4fb   : > { %v2476_v50 = vadd.f32 %v5831_v48, %v2475_v53  ;;  %v2568_v18 = vmax.f32 %v2484_v45, 0.0 }
 0x4fc   : > { %v4377_v3 = vpop.f32.mrf.mxu0 }
 0x4fd   : > { %v2487_v44 = vadd.f32 %v4377_v3, %v5831_v48  ;;  %v2566_v27 = vmax.f32 %v2476_v50, 0.0 }
 0x4fe   : > { %v2478_v58 = vpop.f32.mrf.mxu0 }
 0x4ff   : > { %v2479_v7 = vadd.f32 %v5831_v48, %v2478_v58  ;;  %v2569_v62 = vmax.f32 %v2487_v44, 0.0 }
 0x501   : > { %v2567_v61 = vmax.f32 %v2479_v7, 0.0  ;;  %v2593_v13 = vpack.c.bf16 %v2569_v62, %v2568_v18 }
 0x503   : > { %v2592_v5 = vpack.c.bf16 %v2567_v61, %v2566_v27 }
 0x505   : > { %4422 = vmatprep.mubr.bf16.mxu1 %v2592_v5 }
 0x506   : > { %4423 = vmatmul.mubr.bf16.gmra.mxu1 %v2593_v13 }
 0x50b   : > { %v4380_v11 = vpop.f32.mrf.mxu0 }
 0x50c   : > { %v2500_v10 = vadd.f32 %v4380_v11, %v5831_v48 }
 0x50d   : > { %v2491_v4 = vpop.f32.mrf.mxu0 }
 0x50e   : > { %v2492_v15 = vadd.f32 %v5831_v48, %v2491_v4  ;;  %v2572_v36 = vmax.f32 %v2500_v10, 0.0 }
 0x50f   : > { %v4381_v8 = vpop.f32.mrf.mxu0 }
 0x510   : > { %v2503_v1 = vadd.f32 %v4381_v8, %v5831_v48  ;;  %v2570_v46 = vmax.f32 %v2492_v15, 0.0 }
 0x511   : > { %v2494_v19 = vpop.f32.mrf.mxu0 }
 0x512   : > { %v2495_v20 = vadd.f32 %v5831_v48, %v2494_v19  ;;  %v2573_v23 = vmax.f32 %v2503_v1, 0.0 }
 0x514   : > { %v2571_v42 = vmax.f32 %v2495_v20, 0.0  ;;  %v2595_v26 = vpack.c.bf16 %v2573_v23, %v2572_v36 }
 0x516   : > { %v2594_v51 = vpack.c.bf16 %v2571_v42, %v2570_v46 }
 0x518   : > { %4426 = vmatprep.mubr.bf16.mxu1 %v2594_v51 }
 0x519   : > { %4427 = vmatmul.mubr.bf16.gmra.mxu1 %v2595_v26 }
 0x51e   : > { %v4384_v30 = vpop.f32.mrf.mxu0 }
 0x51f   : > { %v2516_v39 = vadd.f32 %v4384_v30, %v5831_v48 }
 0x520   : > { %v2507_v25 = vpop.f32.mrf.mxu0 }
 0x521   : > { %v2508_v33 = vadd.f32 %v5831_v48, %v2507_v25  ;;  %v2576_v55 = vmax.f32 %v2516_v39, 0.0  ;;  %v2836_v25 = vunpack.c.l.bf16 %v5726_v59 }
 0x522   : > { %v4385_v35 = vpop.f32.mrf.mxu0 }
 0x523   : > { %v2519_v24 = vadd.f32 %v4385_v35, %v5831_v48  ;;  %v2574_v38 = vmax.f32 %v2508_v33, 0.0  ;;  %v2839_v33 = vunpack.c.h.bf16 %v5728_v60 }
 0x524   : > { %v2510_v54 = vpop.f32.mrf.mxu0 }
 0x525   : > { %v2511_v34 = vadd.f32 %v5831_v48, %v2510_v54  ;;  %v2577_v41 = vmax.f32 %v2519_v24, 0.0  ;;  %v2838_v24 = vunpack.c.l.bf16 %v5728_v60 }
 0x527   : > { %v2575_v32 = vmax.f32 %v2511_v34, 0.0  ;;  %v2597_v56 = vpack.c.bf16 %v2577_v41, %v2576_v55  ;;  %v2837_v41 = vunpack.c.h.bf16 %v5726_v59  ;;  %v2840_v59 = vunpack.c.l.bf16 %v5738_v16 }
 0x529   : > { %v2596_v14 = vpack.c.bf16 %v2575_v32, %v2574_v38 }
 0x52b   : > { %4430 = vmatprep.mubr.bf16.mxu1 %v2596_v14 }
 0x52c   : > { %4431 = vmatmul.mubr.bf16.gmra.mxu1 %v2597_v56 }
 0x531   : > { %v4388_v0 = vpop.f32.mrf.mxu0 }
 0x532   : > { %v2532_v44 = vadd.f32 %v4388_v0, %v5831_v48 }
 0x533   : > { %v2523_v37 = vpop.f32.mrf.mxu0 }
 0x534   : > { %v2524_v3 = vadd.f32 %v5831_v48, %v2523_v37  ;;  %v2580_v61 = vmax.f32 %v2532_v44, 0.0 }
 0x535   : > { %v4389_v53 = vpop.f32.mrf.mxu0 }
 0x536   : > { %v2535_v50 = vadd.f32 %v4389_v53, %v5831_v48  ;;  %v2578_v62 = vmax.f32 %v2524_v3, 0.0  ;;  %v4936_v53 = vld [vmem:[#allocation2 + $0xf8] sm:$0xff]   ;;  %v4937_v3 = vld [vmem:[#allocation2 + $0xf0] sm:$0xff]  }
 0x537   : > { %v2526_v45 = vpop.f32.mrf.mxu0  ;;  %4490 = vmatprep.subr.bf16.mxu1 %v4936_v53 }
 0x538   : > { %v2527_v58 = vadd.f32 %v5831_v48, %v2526_v45  ;;  %v2581_v7 = vmax.f32 %v2535_v50, 0.0  ;;  %4491 = vmatpush3.bf16.msra.mxu1 %v4936_v53 }
 0x539   : > { %4492 = vmatprep.subr.bf16.mxu1 %v4937_v3 }
 0x53a   : > { %v2579_v27 = vmax.f32 %v2527_v58, 0.0  ;;  %v2599_v5 = vpack.c.bf16 %v2581_v7, %v2580_v61  ;;  %v2842_v61 = vunpack.c.l.bf16 %v5740_v17 }
 0x53c   : > { %v2598_v18 = vpack.c.bf16 %v2579_v27, %v2578_v62  ;;  %v2843_v27 = vunpack.c.h.bf16 %v5740_v17  ;;  %4493 = vmatpush3.bf16.msra.mxu1 %v4937_v3 }
 0x53e   : > { %4434 = vmatprep.mubr.bf16.mxu1 %v2598_v18 }
 0x53f   : > { %4435 = vmatmul.mubr.bf16.gmra.mxu1 %v2599_v5  ;;  %v4938_v5 = vld [vmem:[#allocation2 + $0xe8] sm:$0xff]  }
 0x540   : > { %4494 = vmatprep.subr.bf16.mxu1 %v4938_v5 }
 0x541   : > { %4495 = vmatpush3.bf16.msra.mxu1 %v4938_v5 }
 0x544   : > { %v4392_v13 = vpop.f32.mrf.mxu0 }
 0x545   : > { %v2548_v1 = vadd.f32 %v4392_v13, %v5831_v48 }
 0x546   : > { %v2539_v11 = vpop.f32.mrf.mxu0 }
 0x547   : > { %v2540_v8 = vadd.f32 %v5831_v48, %v2539_v11  ;;  %v2584_v42 = vmax.f32 %v2548_v1, 0.0 }
 0x548   : > { %v4393_v4 = vpop.f32.mrf.mxu0 }
 0x549   : > { %v2551_v15 = vadd.f32 %v4393_v4, %v5831_v48  ;;  %v2582_v23 = vmax.f32 %v2540_v8, 0.0  ;;  %v2841_v8 = vunpack.c.h.bf16 %v5738_v16 }
 0x54a   : > { %v2542_v10 = vpop.f32.mrf.mxu0 }
 0x54b   : > { %v2543_v19 = vadd.f32 %v5831_v48, %v2542_v10  ;;  %v2585_v20 = vmax.f32 %v2551_v15, 0.0 }
 0x54d   : > { %v2583_v46 = vmax.f32 %v2543_v19, 0.0  ;;  %v2601_v51 = vpack.c.bf16 %v2585_v20, %v2584_v42  ;;  %v4939_v19 = vld [vmem:[#allocation2 + $0xe0] sm:$0xff]  }
 0x54e   : > { %4496 = vmatprep.subr.bf16.mxu1 %v4939_v19 }
 0x54f   : > { %v2600_v36 = vpack.c.bf16 %v2583_v46, %v2582_v23  ;;  %4497 = vmatpush3.bf16.msra.mxu1 %v4939_v19 }
 0x551   : > { %4438 = vmatprep.mubr.bf16.mxu1 %v2600_v36  ;;  %v4940_v36 = vld [vmem:[#allocation2 + $0xd8] sm:$0xff]  }
 0x552   : > { %4439 = vmatmul.mubr.bf16.gmra.mxu1 %v2601_v51  ;;  %4498 = vmatprep.subr.bf16.mxu1 %v4940_v36 }
 0x553   : > { %4499 = vmatpush3.bf16.msra.mxu1 %v4940_v36 }
 0x597   : > { %v4412_v26 = vpop.f32.mrf.mxu1 }
 0x598   : > { %v2718_v21 = vadd.f32 %v4412_v26, %v5892_v22 }
 0x599   : > { %v2709_v29 = vpop.f32.mrf.mxu1 }
 0x59a   : > { %v2710_v30 = vadd.f32 %v5892_v22, %v2709_v29  ;;  %v2870_v38 = vadd.f32 %v2838_v24, %v2718_v21  ;;  %v2844_v21 = vunpack.c.l.bf16 %v5752_v40 }
 0x59b   : > { %v4413_v48 = vpop.f32.mrf.mxu1 }
 0x59c   : > { %v2721_v35 = vadd.f32 %v4413_v48, %v5892_v22  ;;  %v2868_v39 = vadd.f32 %v2836_v25, %v2710_v30  ;;  %v2902_v50 = vmax.f32 %v2870_v38, 0.0  ;;  %v2847_v25 = vunpack.c.h.bf16 %v5754_v49 }
 0x59d   : > { %v2712_v63 = vpop.f32.mrf.mxu1 }
 0x59e   : > { %v2871_v54 = vadd.f32 %v2839_v33, %v2721_v35  ;;  %v2713_v34 = vadd.f32 %v5892_v22, %v2712_v63  ;;  %v2900_v56 = vmax.f32 %v2868_v39, 0.0  ;;  %v2846_v35 = vunpack.c.l.bf16 %v5754_v49 }
 0x5a0   : > { %v2869_v32 = vadd.f32 %v2837_v41, %v2713_v34  ;;  %v4416_v55 = vpop.f32.mrf.mxu1  ;;  %v2903_v14 = vmax.f32 %v2871_v54, 0.0  ;;  %v2845_v54 = vunpack.c.h.bf16 %v5752_v40 }
 0x5a1   : > { %v2734_v60 = vadd.f32 %v4416_v55, %v5892_v22 }
 0x5a2   : > { %v2901_v0 = vmax.f32 %v2869_v32, 0.0  ;;  %v2725_v37 = vpop.f32.mrf.mxu1  ;;  %v5906_v7 = vpack.c.bf16 %v2903_v14, %v2902_v50  ;;  %v2848_v50 = vunpack.c.l.bf16 %v5766_v12 }
 0x5a3   : > { %v2726_v44 = vadd.f32 %v5892_v22, %v2725_v37  ;;  %v2874_v15 = vadd.f32 %v2842_v61, %v2734_v60  ;;  %v2851_v60 = vunpack.c.h.bf16 %v5768_v6 }
 0x5a4   : > { %v4417_v45 = vpop.f32.mrf.mxu1  ;;  %v5904_v58 = vpack.c.bf16 %v2901_v0, %v2900_v56 }
 0x5a5   : > { %v2737_v62 = vadd.f32 %v4417_v45, %v5892_v22  ;;  %v2872_v13 = vadd.f32 %v2840_v59, %v2726_v44  ;;  %v2906_v23 = vmax.f32 %v2874_v15, 0.0  ;;  %v2850_v45 = vunpack.c.l.bf16 %v5768_v6 }
 0x5a6   : > { %v2728_v18 = vpop.f32.mrf.mxu1  ;;  %4458 = vmatprep.mubr.bf16.mxu0 %v5904_v58 }
 0x5a7   : > { %v2875_v11 = vadd.f32 %v2843_v27, %v2737_v62  ;;  %v2729_v4 = vadd.f32 %v5892_v22, %v2728_v18  ;;  %4459 = vmatmul.mubr.bf16.vlgmr.msra.gmra.mxu0 %v5906_v7  ;;  %v2904_v17 = vmax.f32 %v2872_v13, 0.0  ;;  %v2849_v18 = vunpack.c.h.bf16 %v5766_v12 }
 0x5a9   : > { %v2873_v1 = vadd.f32 %v2841_v8, %v2729_v4  ;;  %v2907_v10 = vmax.f32 %v2875_v11, 0.0 }
 0x5ab   : > { %v2905_v20 = vmax.f32 %v2873_v1, 0.0  ;;  %v5918_v42 = vpack.c.bf16 %v2907_v10, %v2906_v23  ;;  %v2852_v23 = vunpack.c.l.bf16 %v5780_v31 }
 0x5ad   : > { %v5916_v46 = vpack.c.bf16 %v2905_v20, %v2904_v17 }
 0x5af   : > { %4462 = vmatprep.mubr.bf16.mxu0 %v5916_v46 }
 0x5b0   : > { %4463 = vmatmul.mubr.bf16.gmra.mxu0 %v5918_v42 }
 0x5b3   : > { %v4420_v16 = vpop.f32.mrf.mxu1 }
 0x5b4   : > { %v2750_v29 = vadd.f32 %v4420_v16, %v5892_v22  ;;  %v2855_v16 = vunpack.c.h.bf16 %v5782_v2 }
 0x5b5   : > { %v2741_v51 = vpop.f32.mrf.mxu1 }
 0x5b6   : > { %v2742_v26 = vadd.f32 %v5892_v22, %v2741_v51  ;;  %v2878_v34 = vadd.f32 %v2846_v35, %v2750_v29  ;;  %v2854_v51 = vunpack.c.l.bf16 %v5782_v2  ;;  %v4941_v2 = vld [vmem:[#allocation2 + $0xd0] sm:$0xff]  }
 0x5b7   : > { %v4421_v30 = vpop.f32.mrf.mxu1  ;;  %4500 = vmatprep.subr.bf16.mxu1 %v4941_v2 }
 0x5b8   : > { %v2753_v48 = vadd.f32 %v4421_v30, %v5892_v22  ;;  %v2876_v24 = vadd.f32 %v2844_v21, %v2742_v26  ;;  %v2910_v14 = vmax.f32 %v2878_v34, 0.0  ;;  %4501 = vmatpush3.bf16.msra.mxu1 %v4941_v2 }
 0x5b9   : > { %v2744_v33 = vpop.f32.mrf.mxu1 }
 0x5ba   : > { %v2879_v63 = vadd.f32 %v2847_v25, %v2753_v48  ;;  %v2745_v39 = vadd.f32 %v5892_v22, %v2744_v33  ;;  %v2908_v32 = vmax.f32 %v2876_v24, 0.0  ;;  %v2853_v48 = vunpack.c.h.bf16 %v5780_v31 }
 0x5bc   : > { %v2877_v41 = vadd.f32 %v2845_v54, %v2745_v39  ;;  %v2911_v38 = vmax.f32 %v2879_v63, 0.0 }
 0x5be   : > { %v2909_v55 = vmax.f32 %v2877_v41, 0.0  ;;  %v5932_v0 = vpack.c.bf16 %v2911_v38, %v2910_v14  ;;  %v4942_v38 = vld [vmem:[#allocation2 + $0xc8] sm:$0xff]  }
 0x5bf   : > { %4502 = vmatprep.subr.bf16.mxu1 %v4942_v38 }
 0x5c0   : > { %v5930_v56 = vpack.c.bf16 %v2909_v55, %v2908_v32  ;;  %4503 = vmatpush3.bf16.msra.mxu1 %v4942_v38 }
 0x5c2   : > { %4466 = vmatprep.mubr.bf16.mxu0 %v5930_v56 }
 0x5c3   : > { %4467 = vmatmul.mubr.bf16.gmra.mxu0 %v5932_v0 }
 0x5c6   : > { %v4424_v49 = vpop.f32.mrf.mxu1 }
 0x5c7   : > { %v2766_v40 = vadd.f32 %v4424_v49, %v5892_v22  ;;  %v2856_v49 = vunpack.c.l.bf16 %v5794_v9 }
 0x5c8   : > { %v2757_v37 = vpop.f32.mrf.mxu1 }
 0x5c9   : > { %v2758_v53 = vadd.f32 %v5892_v22, %v2757_v37  ;;  %v2882_v5 = vadd.f32 %v2850_v45, %v2766_v40  ;;  %v4943_v40 = vld [vmem:[#allocation2 + $0xc0] sm:$0xff]  }
 0x5ca   : > { %v4425_v3 = vpop.f32.mrf.mxu1  ;;  %4504 = vmatprep.subr.bf16.mxu1 %v4943_v40 }
 0x5cb   : > { %v2769_v44 = vadd.f32 %v4425_v3, %v5892_v22  ;;  %v2880_v62 = vadd.f32 %v2848_v50, %v2758_v53  ;;  %v2914_v15 = vmax.f32 %v2882_v5, 0.0  ;;  %v2859_v53 = vunpack.c.h.bf16 %v5796_v57  ;;  %4505 = vmatpush3.bf16.msra.mxu1 %v4943_v40 }
 0x5cc   : > { %v2760_v59 = vpop.f32.mrf.mxu1  ;;  %v2858_v3 = vunpack.c.l.bf16 %v5796_v57 }
 0x5cd   : > { %v2883_v27 = vadd.f32 %v2851_v60, %v2769_v44  ;;  %v2761_v61 = vadd.f32 %v5892_v22, %v2760_v59  ;;  %v2912_v4 = vmax.f32 %v2880_v62, 0.0  ;;  %v2857_v59 = vunpack.c.h.bf16 %v5794_v9 }
 0x5cf   : > { %v2881_v13 = vadd.f32 %v2849_v18, %v2761_v61  ;;  %v2915_v11 = vmax.f32 %v2883_v27, 0.0 }
 0x5d1   : > { %v2913_v8 = vmax.f32 %v2881_v13, 0.0  ;;  %v5946_v10 = vpack.c.bf16 %v2915_v11, %v2914_v15 }
 0x5d3   : > { %v5944_v1 = vpack.c.bf16 %v2913_v8, %v2912_v4 }
 0x5d5   : > { %4470 = vmatprep.mubr.bf16.mxu0 %v5944_v1 }
 0x5d6   : > { %4471 = vmatmul.mubr.bf16.gmra.mxu0 %v5946_v10 }
 0x5d9   : > { %v4428_v6 = vpop.f32.mrf.mxu1 }
 0x5da   : > { %v2782_v12 = vadd.f32 %v4428_v6, %v5892_v22 }
 0x5db   : > { %v2773_v19 = vpop.f32.mrf.mxu1 }
 0x5dc   : > { %v2774_v17 = vadd.f32 %v5892_v22, %v2773_v19  ;;  %v2886_v25 = vadd.f32 %v2854_v51, %v2782_v12  ;;  %v2860_v19 = vunpack.c.l.bf16 %v5808_v28  ;;  %v2863_v12 = vunpack.c.h.bf16 %v5810_v47 }
 0x5dd   : > { %v4429_v20 = vpop.f32.mrf.mxu1 }
 0x5de   : > { %v2785_v36 = vadd.f32 %v4429_v20, %v5892_v22  ;;  %v2884_v29 = vadd.f32 %v2852_v23, %v2774_v17  ;;  %v2918_v39 = vmax.f32 %v2886_v25, 0.0  ;;  %v2862_v20 = vunpack.c.l.bf16 %v5810_v47 }
 0x5df   : > { %v2776_v26 = vpop.f32.mrf.mxu1 }
 0x5e0   : > { %v2887_v30 = vadd.f32 %v2855_v16, %v2785_v36  ;;  %v2777_v21 = vadd.f32 %v5892_v22, %v2776_v26  ;;  %v2916_v24 = vmax.f32 %v2884_v29, 0.0  ;;  %v2861_v26 = vunpack.c.h.bf16 %v5808_v28 }
 0x5e2   : > { %v2885_v35 = vadd.f32 %v2853_v48, %v2777_v21  ;;  %v2919_v33 = vmax.f32 %v2887_v30, 0.0 }
 0x5e4   : > { %v2917_v63 = vmax.f32 %v2885_v35, 0.0  ;;  %v5960_v34 = vpack.c.bf16 %v2919_v33, %v2918_v39 }
 0x5e6   : > { %v5958_v54 = vpack.c.bf16 %v2917_v63, %v2916_v24 }
 0x5e8   : > { %4474 = vmatprep.mubr.bf16.mxu0 %v5958_v54 }
 0x5e9   : > { %4475 = vmatmul.mubr.bf16.gmra.mxu0 %v5960_v34 }
 0x5ec   : > { %v4432_v41 = vpop.f32.mrf.mxu1 }
 0x5ed   : > { %v2798_v55 = vadd.f32 %v4432_v41, %v5892_v22  ;;  %v2864_v41 = vunpack.c.l.bf16 %v5822_v43 }
 0x5ee   : > { %v2789_v31 = vpop.f32.mrf.mxu1 }
 0x5ef   : > { %v2790_v32 = vadd.f32 %v5892_v22, %v2789_v31  ;;  %v2890_v62 = vadd.f32 %v2858_v3, %v2798_v55  ;;  %v2867_v31 = vunpack.c.h.bf16 %v5824_v52 }
 0x5f0   : > { %v4433_v14 = vpop.f32.mrf.mxu1 }
 0x5f1   : > { %v2801_v37 = vadd.f32 %v4433_v14, %v5892_v22  ;;  %v2888_v44 = vadd.f32 %v2856_v49, %v2790_v32  ;;  %v2922_v13 = vmax.f32 %v2890_v62, 0.0  ;;  %v2866_v32 = vunpack.c.l.bf16 %v5824_v52 }
 0x5f2   : > { %v2792_v50 = vpop.f32.mrf.mxu1 }
 0x5f3   : > { %v2891_v60 = vadd.f32 %v2859_v53, %v2801_v37  ;;  %v2793_v45 = vadd.f32 %v5892_v22, %v2792_v50  ;;  %v2920_v18 = vmax.f32 %v2888_v44, 0.0  ;;  %v2865_v53 = vunpack.c.h.bf16 %v5822_v43  ;;  %v6009_v43 = vld [vmem:[%s6165_s4 + $0x3] ss:$0 sm:$0xff] }
 0x5f5   : > { %v2889_v27 = vadd.f32 %v2857_v59, %v2793_v45  ;;  %v2923_v61 = vmax.f32 %v2891_v60, 0.0 }
 0x5f7   : > { %v2921_v5 = vmax.f32 %v2889_v27, 0.0  ;;  %v5974_v4 = vpack.c.bf16 %v2923_v61, %v2922_v13 }
 0x5f9   : > { %v5972_v11 = vpack.c.bf16 %v2921_v5, %v2920_v18 }
 0x5fb   : > { %4478 = vmatprep.mubr.bf16.mxu0 %v5972_v11 }
 0x5fc   : > { %4479 = vmatmul.mubr.bf16.gmra.mxu0 %v5974_v4 }
 0x5ff   : > { %v4436_v57 = vpop.f32.mrf.mxu1 }
 0x600   : > { %v2814_v15 = vadd.f32 %v4436_v57, %v5892_v22 }
 0x601   : > { %v2805_v8 = vpop.f32.mrf.mxu1 }
 0x602   : > { %v2806_v9 = vadd.f32 %v5892_v22, %v2805_v8  ;;  %v2894_v29 = vadd.f32 %v2862_v20, %v2814_v15 }
 0x603   : > { %v4437_v6 = vpop.f32.mrf.mxu1 }
 0x604   : > { %v2817_v17 = vadd.f32 %v4437_v6, %v5892_v22  ;;  %v2892_v36 = vadd.f32 %v2860_v19, %v2806_v9  ;;  %v2926_v35 = vmax.f32 %v2894_v29, 0.0 }
 0x605   : > { %v2808_v23 = vpop.f32.mrf.mxu1 }
 0x606   : > { %v2895_v16 = vadd.f32 %v2863_v12, %v2817_v17  ;;  %v2809_v51 = vadd.f32 %v5892_v22, %v2808_v23  ;;  %v2924_v48 = vmax.f32 %v2892_v36, 0.0 }
 0x608   : > { %v2893_v30 = vadd.f32 %v2861_v26, %v2809_v51  ;;  %v2927_v21 = vmax.f32 %v2895_v16, 0.0 }
 0x60a   : > { %v2925_v25 = vmax.f32 %v2893_v30, 0.0  ;;  %v5988_v24 = vpack.c.bf16 %v2927_v21, %v2926_v35 }
 0x60c   : > { %v5986_v33 = vpack.c.bf16 %v2925_v25, %v2924_v48 }
 0x60e   : > { %4482 = vmatprep.mubr.bf16.mxu0 %v5986_v33 }
 0x60f   : > { %4483 = vmatmul.mubr.bf16.gmra.mxu0 %v5988_v24 }
 0x612   : > { %v4440_v47 = vpop.f32.mrf.mxu1 }
 0x613   : > { %v2830_v28 = vadd.f32 %v4440_v47, %v5892_v22 }
 0x614   : > { %v2821_v63 = vpop.f32.mrf.mxu1 }
 0x615   : > { %v2822_v39 = vadd.f32 %v5892_v22, %v2821_v63  ;;  %v2898_v40 = vadd.f32 %v2866_v32, %v2830_v28 }
 0x616   : > { %v4441_v2 = vpop.f32.mrf.mxu1 }
 0x617   : > { %v2833_v38 = vadd.f32 %v4441_v2, %v5892_v22  ;;  %v2896_v14 = vadd.f32 %v2864_v41, %v2822_v39  ;;  %v2930_v45 = vmax.f32 %v2898_v40, 0.0 }
 0x618   : > { %v2824_v55 = vpop.f32.mrf.mxu1 }
 0x619   : > { %v2899_v49 = vadd.f32 %v2867_v31, %v2833_v38  ;;  %v2825_v37 = vadd.f32 %v5892_v22, %v2824_v55  ;;  %v2928_v44 = vmax.f32 %v2896_v14, 0.0 }
 0x61b   : > { %v2897_v3 = vadd.f32 %v2865_v53, %v2825_v37  ;;  %v2931_v50 = vmax.f32 %v2899_v49, 0.0 }
 0x61d   : > { %v2929_v60 = vmax.f32 %v2897_v3, 0.0  ;;  %v6002_v62 = vpack.c.bf16 %v2931_v50, %v2930_v45 }
 0x61f   : > { %v6000_v59 = vpack.c.bf16 %v2929_v60, %v2928_v44 }
 0x621   : > { %4486 = vmatprep.mubr.bf16.mxu0 %v6000_v59 }
 0x622   : > { %4487 = vmatmul.mubr.bf16.gmra.mxu0 %v6002_v62 }
 0x667   : > { %v4460_v52 = vpop.f32.mrf.mxu0 }
 0x668   : > { %v3064_v5 = vadd.f32 %v4460_v52, %v6009_v43 }
 0x669   : > { %v3055_v27 = vpop.f32.mrf.mxu0 }
 0x66a   : > { %v3056_v61 = vadd.f32 %v6009_v43, %v3055_v27  ;;  %v3184_v19 = vmax.f32 %v3064_v5, 0.0 }
 0x66b   : > { %v4461_v22 = vpop.f32.mrf.mxu0 }
 0x66c   : > { %v3067_v18 = vadd.f32 %v4461_v22, %v6009_v43  ;;  %v3182_v9 = vmax.f32 %v3056_v61, 0.0 }
 0x66d   : > { %v3058_v13 = vpop.f32.mrf.mxu0 }
 0x66e   : > { %v3059_v57 = vadd.f32 %v6009_v43, %v3058_v13  ;;  %v3185_v8 = vmax.f32 %v3067_v18, 0.0 }
 0x670   : > { %v3183_v15 = vmax.f32 %v3059_v57, 0.0  ;;  %v4464_v6 = vpop.f32.mrf.mxu0  ;;  %v3215_v20 = vpack.c.bf16 %v3185_v8, %v3184_v19 }
 0x671   : > { %v3080_v51 = vadd.f32 %v4464_v6, %v6009_v43 }
 0x672   : > { %v3214_v17 = vpack.c.bf16 %v3183_v15, %v3182_v9  ;;  %v3071_v12 = vpop.f32.mrf.mxu0 }
 0x673   : > { %v3072_v36 = vadd.f32 %v6009_v43, %v3071_v12  ;;  %v3188_v25 = vmax.f32 %v3080_v51, 0.0 }
 0x674   : > { %v4465_v23 = vpop.f32.mrf.mxu0  ;;  %4506 = vmatprep.mubr.bf16.mxu1 %v3214_v17 }
 0x675   : > { %v3083_v16 = vadd.f32 %v4465_v23, %v6009_v43  ;;  %4507 = vmatmul.mubr.bf16.vlgmr.msra.gmra.mxu1 %v3215_v20  ;;  %v3186_v21 = vmax.f32 %v3072_v36, 0.0 }
 0x676   : > { %v3074_v26 = vpop.f32.mrf.mxu0 }
 0x677   : > { %v3075_v29 = vadd.f32 %v6009_v43, %v3074_v26  ;;  %v3189_v30 = vmax.f32 %v3083_v16, 0.0 }
 0x679   : > { %v3187_v48 = vmax.f32 %v3075_v29, 0.0  ;;  %v3217_v47 = vpack.c.bf16 %v3189_v30, %v3188_v25 }
 0x67b   : > { %v3216_v35 = vpack.c.bf16 %v3187_v48, %v3186_v21 }
 0x67d   : > { %4510 = vmatprep.mubr.bf16.mxu1 %v3216_v35 }
 0x67e   : > { %4511 = vmatmul.mubr.bf16.gmra.mxu1 %v3217_v47 }
 0x683   : > { %v4468_v63 = vpop.f32.mrf.mxu0 }
 0x684   : > { %v3096_v38 = vadd.f32 %v4468_v63, %v6009_v43 }
 0x685   : > { %v3087_v39 = vpop.f32.mrf.mxu0 }
 0x686   : > { %v3088_v2 = vadd.f32 %v6009_v43, %v3087_v39  ;;  %v3192_v37 = vmax.f32 %v3096_v38, 0.0 }
 0x687   : > { %v4469_v28 = vpop.f32.mrf.mxu0 }
 0x688   : > { %v3099_v41 = vadd.f32 %v4469_v28, %v6009_v43  ;;  %v3190_v14 = vmax.f32 %v3088_v2, 0.0 }
 0x689   : > { %v3090_v31 = vpop.f32.mrf.mxu0 }
 0x68a   : > { %v3091_v32 = vadd.f32 %v6009_v43, %v3090_v31  ;;  %v3193_v55 = vmax.f32 %v3099_v41, 0.0 }
 0x68c   : > { %v3191_v49 = vmax.f32 %v3091_v32, 0.0  ;;  %v3219_v40 = vpack.c.bf16 %v3193_v55, %v3192_v37 }
 0x68e   : > { %v3218_v53 = vpack.c.bf16 %v3191_v49, %v3190_v14 }
 0x690   : > { %4514 = vmatprep.mubr.bf16.mxu1 %v3218_v53 }
 0x691   : > { %4515 = vmatmul.mubr.bf16.gmra.mxu1 %v3219_v40 }
 0x696   : > { %v4472_v3 = vpop.f32.mrf.mxu0 }
 0x697   : > { %v3112_v52 = vadd.f32 %v4472_v3, %v6009_v43 }
 0x698   : > { %v3103_v50 = vpop.f32.mrf.mxu0 }
 0x699   : > { %v3104_v60 = vadd.f32 %v6009_v43, %v3103_v50  ;;  %v3196_v13 = vmax.f32 %v3112_v52, 0.0 }
 0x69a   : > { %v4473_v44 = vpop.f32.mrf.mxu0 }
 0x69b   : > { %v3115_v45 = vadd.f32 %v4473_v44, %v6009_v43  ;;  %v3194_v18 = vmax.f32 %v3104_v60, 0.0 }
 0x69c   : > { %v3106_v27 = vpop.f32.mrf.mxu0 }
 0x69d   : > { %v3107_v22 = vadd.f32 %v6009_v43, %v3106_v27  ;;  %v3197_v61 = vmax.f32 %v3115_v45, 0.0 }
 0x69f   : > { %v3195_v5 = vmax.f32 %v3107_v22, 0.0  ;;  %v3221_v8 = vpack.c.bf16 %v3197_v61, %v3196_v13 }
 0x6a1   : > { %v3220_v57 = vpack.c.bf16 %v3195_v5, %v3194_v18 }
 0x6a3   : > { %4518 = vmatprep.mubr.bf16.mxu1 %v3220_v57 }
 0x6a4   : > { %4519 = vmatmul.mubr.bf16.gmra.mxu1 %v3221_v8 }
 0x6a9   : > { %v4476_v9 = vpop.f32.mrf.mxu0 }
 0x6aa   : > { %v3128_v12 = vadd.f32 %v4476_v9, %v6009_v43 }
 0x6ab   : > { %v3119_v15 = vpop.f32.mrf.mxu0 }
 0x6ac   : > { %v3120_v19 = vadd.f32 %v6009_v43, %v3119_v15  ;;  %v3200_v26 = vmax.f32 %v3128_v12, 0.0 }
 0x6ad   : > { %v4477_v6 = vpop.f32.mrf.mxu0 }
 0x6ae   : > { %v3131_v17 = vadd.f32 %v4477_v6, %v6009_v43  ;;  %v3198_v16 = vmax.f32 %v3120_v19, 0.0 }
 0x6af   : > { %v3122_v20 = vpop.f32.mrf.mxu0 }
 0x6b0   : > { %v3123_v23 = vadd.f32 %v6009_v43, %v3122_v20  ;;  %v3201_v36 = vmax.f32 %v3131_v17, 0.0 }
 0x6b2   : > { %v3199_v51 = vmax.f32 %v3123_v23, 0.0  ;;  %v3223_v30 = vpack.c.bf16 %v3201_v36, %v3200_v26 }
 0x6b4   : > { %v3222_v29 = vpack.c.bf16 %v3199_v51, %v3198_v16  ;;  %v6046_v51 = vld [vmem:[%s6167_s6 + $0x3] ss:$0 sm:$0xff] }
 0x6b6   : > { %4522 = vmatprep.mubr.bf16.mxu1 %v3222_v29 }
 0x6b7   : > { %4523 = vmatmul.mubr.bf16.gmra.mxu1 %v3223_v30 }
 0x6bc   : > { %v4480_v21 = vpop.f32.mrf.mxu0 }
 0x6bd   : > { %v3144_v63 = vadd.f32 %v4480_v21, %v6009_v43  ;;  %v3466_v21 = vunpack.c.l.bf16 %v5906_v7 }
 0x6be   : > { %v3135_v48 = vpop.f32.mrf.mxu0 }
 0x6bf   : > { %v3136_v35 = vadd.f32 %v6009_v43, %v3135_v48  ;;  %v3204_v31 = vmax.f32 %v3144_v63, 0.0  ;;  %v3464_v48 = vunpack.c.l.bf16 %v5904_v58  ;;  %v3465_v63 = vunpack.c.h.bf16 %v5904_v58 }
 0x6c0   : > { %v4481_v25 = vpop.f32.mrf.mxu0  ;;  %v3468_v58 = vunpack.c.l.bf16 %v5916_v46 }
 0x6c1   : > { %v3147_v47 = vadd.f32 %v4481_v25, %v6009_v43  ;;  %v3202_v41 = vmax.f32 %v3136_v35, 0.0  ;;  %v3467_v35 = vunpack.c.h.bf16 %v5906_v7 }
 0x6c2   : > { %v3138_v39 = vpop.f32.mrf.mxu0 }
 0x6c3   : > { %v3139_v28 = vadd.f32 %v6009_v43, %v3138_v39  ;;  %v3205_v2 = vmax.f32 %v3147_v47, 0.0 }
 0x6c5   : > { %v3203_v38 = vmax.f32 %v3139_v28, 0.0  ;;  %v3225_v55 = vpack.c.bf16 %v3205_v2, %v3204_v31 }
 0x6c7   : > { %v3224_v32 = vpack.c.bf16 %v3203_v38, %v3202_v41 }
 0x6c9   : > { %4526 = vmatprep.mubr.bf16.mxu1 %v3224_v32 }
 0x6ca   : > { %4527 = vmatmul.mubr.bf16.gmra.mxu1 %v3225_v55 }
 0x6cf   : > { %v4484_v14 = vpop.f32.mrf.mxu0 }
 0x6d0   : > { %v3160_v3 = vadd.f32 %v4484_v14, %v6009_v43 }
 0x6d1   : > { %v3151_v49 = vpop.f32.mrf.mxu0 }
 0x6d2   : > { %v3152_v53 = vadd.f32 %v6009_v43, %v3151_v49  ;;  %v3208_v27 = vmax.f32 %v3160_v3, 0.0 }
 0x6d3   : > { %v4485_v37 = vpop.f32.mrf.mxu0 }
 0x6d4   : > { %v3163_v40 = vadd.f32 %v4485_v37, %v6009_v43  ;;  %v3206_v45 = vmax.f32 %v3152_v53, 0.0 }
 0x6d5   : > { %v3154_v50 = vpop.f32.mrf.mxu0 }
 0x6d6   : > { %v3155_v44 = vadd.f32 %v6009_v43, %v3154_v50  ;;  %v3209_v60 = vmax.f32 %v3163_v40, 0.0 }
 0x6d8   : > { %v3207_v52 = vmax.f32 %v3155_v44, 0.0  ;;  %v3227_v61 = vpack.c.bf16 %v3209_v60, %v3208_v27  ;;  %v3471_v60 = vunpack.c.h.bf16 %v5918_v42  ;;  %v3470_v27 = vunpack.c.l.bf16 %v5918_v42 }
 0x6da   : > { %v3226_v22 = vpack.c.bf16 %v3207_v52, %v3206_v45 }
 0x6dc   : > { %4530 = vmatprep.mubr.bf16.mxu1 %v3226_v22 }
 0x6dd   : > { %4531 = vmatmul.mubr.bf16.gmra.mxu1 %v3227_v61 }
 0x6e2   : > { %v4488_v18 = vpop.f32.mrf.mxu0 }
 0x6e3   : > { %v3176_v9 = vadd.f32 %v4488_v18, %v6009_v43 }
 0x6e4   : > { %v3167_v5 = vpop.f32.mrf.mxu0 }
 0x6e5   : > { %v3168_v57 = vadd.f32 %v6009_v43, %v3167_v5  ;;  %v3212_v20 = vmax.f32 %v3176_v9, 0.0 }
 0x6e6   : > { %v4489_v13 = vpop.f32.mrf.mxu0 }
 0x6e7   : > { %v3179_v8 = vadd.f32 %v4489_v13, %v6009_v43  ;;  %v3210_v17 = vmax.f32 %v3168_v57, 0.0  ;;  %v3469_v13 = vunpack.c.h.bf16 %v5916_v46 }
 0x6e8   : > { %v3170_v15 = vpop.f32.mrf.mxu0 }
 0x6e9   : > { %v3171_v6 = vadd.f32 %v6009_v43, %v3170_v15  ;;  %v3213_v19 = vmax.f32 %v3179_v8, 0.0 }
 0x6eb   : > { %v3211_v12 = vmax.f32 %v3171_v6, 0.0  ;;  %v3229_v36 = vpack.c.bf16 %v3213_v19, %v3212_v20 }
 0x6ed   : > { %v3228_v23 = vpack.c.bf16 %v3211_v12, %v3210_v17 }
 0x6ef   : > { %4534 = vmatprep.mubr.bf16.mxu1 %v3228_v23 }
 0x6f0   : > { %4535 = vmatmul.mubr.bf16.gmra.mxu1 %v3229_v36 }
 0x735   : > { %v4508_v16 = vpop.f32.mrf.mxu1 }
 0x736   : > { %v3346_v29 = vadd.f32 %v4508_v16, %v6046_v51 }
 0x737   : > { %v3337_v26 = vpop.f32.mrf.mxu1 }
 0x738   : > { %v3338_v30 = vadd.f32 %v6046_v51, %v3337_v26  ;;  %v3498_v39 = vadd.f32 %v3466_v21, %v3346_v29 }
 0x739   : > { %v4509_v43 = vpop.f32.mrf.mxu1 }
 0x73a   : > { %v3349_v25 = vadd.f32 %v4509_v43, %v6046_v51  ;;  %v3496_v28 = vadd.f32 %v3464_v48, %v3338_v30  ;;  %v3530_v55 = vmax.f32 %v3498_v39, 0.0  ;;  %v5058_v48 = vmov 0.0  }
 0x73b   : > { %v3340_v47 = vpop.f32.mrf.mxu1  ;;  %324 = vst [vmem:[%s6067_s8] sm:$0x1] %v5058_v48 }
 0x73c   : > { %v3499_v2 = vadd.f32 %v3467_v35, %v3349_v25  ;;  %v3341_v41 = vadd.f32 %v6046_v51, %v3340_v47  ;;  %v3528_v14 = vmax.f32 %v3496_v28, 0.0 }
 0x73e   : > { %v3531_v38 = vmax.f32 %v3499_v2, 0.0  ;;  %v3497_v31 = vadd.f32 %v3465_v63, %v3341_v41  ;;  %v4512_v32 = vpop.f32.mrf.mxu1  ;;  %v3472_v41 = vunpack.c.l.bf16 %v5930_v56 }
 0x73f   : > { %v3362_v50 = vadd.f32 %v4512_v32, %v6046_v51  ;;  %v3474_v32 = vunpack.c.l.bf16 %v5932_v0 }
 0x740   : > { %v3529_v49 = vmax.f32 %v3497_v31, 0.0  ;;  %v3353_v37 = vpop.f32.mrf.mxu1  ;;  %v3561_v40 = vpack.c.bf16 %v3531_v38, %v3530_v55  ;;  %v3475_v31 = vunpack.c.h.bf16 %v5932_v0 }
 0x741   : > { %v3354_v53 = vadd.f32 %v6046_v51, %v3353_v37  ;;  %v3502_v9 = vadd.f32 %v3470_v27, %v3362_v50 }
 0x742   : > { %v3560_v3 = vpack.c.bf16 %v3529_v49, %v3528_v14  ;;  %v4513_v7 = vpop.f32.mrf.mxu1  ;;  %v3578_v57 = vunpack.c.l.bf16 %v3561_v40  ;;  %v3579_v6 = vunpack.c.h.bf16 %v3561_v40 }
 0x743   : > { %v3365_v44 = vadd.f32 %v4513_v7, %v6046_v51  ;;  %v3500_v61 = vadd.f32 %v3468_v58, %v3354_v53  ;;  %v3534_v42 = vmax.f32 %v3502_v9, 0.0  ;;  %v3473_v53 = vunpack.c.h.bf16 %v5930_v56 }
 0x744   : > { %v3576_v45 = vunpack.c.l.bf16 %v3560_v3  ;;  %v3577_v52 = vunpack.c.h.bf16 %v3560_v3  ;;  %v3356_v22 = vpop.f32.mrf.mxu1 }
 0x745   : > { %v3503_v18 = vadd.f32 %v3471_v60, %v3365_v44  ;;  %v3357_v5 = vadd.f32 %v6046_v51, %v3356_v22  ;;  %v3532_v17 = vmax.f32 %v3500_v61, 0.0 }
 0x746   : > { %v3608_v8 = vadd.f32 %v3577_v52, %v3576_v45 }
 0x747   : > { %v3501_v15 = vadd.f32 %v3469_v13, %v3357_v5  ;;  %v3535_v12 = vmax.f32 %v3503_v18, 0.0 }
 0x748   : > { %v3609_v19 = vadd.f32 %v3608_v8, %v3578_v57 }
 0x749   : > { %v3533_v20 = vmax.f32 %v3501_v15, 0.0  ;;  %v3563_v16 = vpack.c.bf16 %v3535_v12, %v3534_v42  ;;  %v3478_v12 = vunpack.c.l.bf16 %v5946_v10 }
 0x74a   : > { %v3610_v23 = vadd.f32 %v3609_v19, %v3579_v6  ;;  %v3476_v6 = vunpack.c.l.bf16 %v5944_v1 }
 0x74b   : > { %v3562_v36 = vpack.c.bf16 %v3533_v20, %v3532_v17  ;;  %v3582_v46 = vunpack.c.l.bf16 %v3563_v16  ;;  %v3583_v25 = vunpack.c.h.bf16 %v3563_v16  ;;  %v3479_v17 = vunpack.c.h.bf16 %v5946_v10 }
 0x74c   : > { %v3477_v16 = vunpack.c.h.bf16 %v5944_v1 }
 0x74d   : > { %v3580_v26 = vunpack.c.l.bf16 %v3562_v36  ;;  %v3581_v29 = vunpack.c.h.bf16 %v3562_v36 }
 0x74f   : > { %v3611_v30 = vadd.f32 %v3610_v23, %v3580_v26 }
 0x751   : > { %v3612_v43 = vadd.f32 %v3611_v30, %v3581_v29  ;;  %v4516_v21 = vpop.f32.mrf.mxu1 }
 0x752   : > { %v3378_v2 = vadd.f32 %v4516_v21, %v6046_v51 }
 0x753   : > { %v3613_v35 = vadd.f32 %v3612_v43, %v3582_v46  ;;  %v3369_v47 = vpop.f32.mrf.mxu1 }
 0x754   : > { %v3370_v63 = vadd.f32 %v6046_v51, %v3369_v47  ;;  %v3506_v40 = vadd.f32 %v3474_v32, %v3378_v2 }
 0x755   : > { %v4517_v39 = vpop.f32.mrf.mxu1  ;;  %v3614_v28 = vadd.f32 %v3613_v35, %v3583_v25 }
 0x756   : > { %v3381_v38 = vadd.f32 %v4517_v39, %v6046_v51  ;;  %v3504_v14 = vadd.f32 %v3472_v41, %v3370_v63  ;;  %v3538_v44 = vmax.f32 %v3506_v40, 0.0 }
 0x757   : > { %v3372_v55 = vpop.f32.mrf.mxu1 }
 0x758   : > { %v3507_v49 = vadd.f32 %v3475_v31, %v3381_v38  ;;  %v3373_v37 = vadd.f32 %v6046_v51, %v3372_v55  ;;  %v3536_v7 = vmax.f32 %v3504_v14, 0.0  ;;  %v3480_v14 = vunpack.c.l.bf16 %v5958_v54 }
 0x75a   : > { %v3505_v3 = vadd.f32 %v3473_v53, %v3373_v37  ;;  %v3539_v50 = vmax.f32 %v3507_v49, 0.0  ;;  %v3483_v37 = vunpack.c.h.bf16 %v5960_v34  ;;  %v3482_v53 = vunpack.c.l.bf16 %v5960_v34 }
 0x75c   : > { %v3537_v58 = vmax.f32 %v3505_v3, 0.0  ;;  %v3565_v45 = vpack.c.bf16 %v3539_v50, %v3538_v44 }
 0x75e   : > { %v3564_v60 = vpack.c.bf16 %v3537_v58, %v3536_v7  ;;  %v3586_v61 = vunpack.c.l.bf16 %v3565_v45  ;;  %v3587_v5 = vunpack.c.h.bf16 %v3565_v45  ;;  %v3481_v58 = vunpack.c.h.bf16 %v5958_v54 }
 0x760   : > { %v3584_v52 = vunpack.c.l.bf16 %v3564_v60  ;;  %v3585_v27 = vunpack.c.h.bf16 %v3564_v60 }
 0x762   : > { %v3615_v22 = vadd.f32 %v3614_v28, %v3584_v52 }
 0x764   : > { %v3616_v0 = vadd.f32 %v3615_v22, %v3585_v27  ;;  %v4520_v18 = vpop.f32.mrf.mxu1 }
 0x765   : > { %v3394_v15 = vadd.f32 %v4520_v18, %v6046_v51 }
 0x766   : > { %v3617_v13 = vadd.f32 %v3616_v0, %v3586_v61  ;;  %v3385_v57 = vpop.f32.mrf.mxu1 }
 0x767   : > { %v3386_v8 = vadd.f32 %v6046_v51, %v3385_v57  ;;  %v3510_v26 = vadd.f32 %v3478_v12, %v3394_v15  ;;  %v3484_v12 = vunpack.c.l.bf16 %v5972_v11 }
 0x768   : > { %v4521_v56 = vpop.f32.mrf.mxu1  ;;  %v3618_v9 = vadd.f32 %v3617_v13, %v3587_v5 }
 0x769   : > { %v3397_v19 = vadd.f32 %v4521_v56, %v6046_v51  ;;  %v3508_v23 = vadd.f32 %v3476_v6, %v3386_v8  ;;  %v3542_v21 = vmax.f32 %v3510_v26, 0.0 }
 0x76a   : > { %v3388_v20 = vpop.f32.mrf.mxu1 }
 0x76b   : > { %v3511_v42 = vadd.f32 %v3479_v17, %v3397_v19  ;;  %v3389_v36 = vadd.f32 %v6046_v51, %v3388_v20  ;;  %v3540_v30 = vmax.f32 %v3508_v23, 0.0  ;;  %v3487_v23 = vunpack.c.h.bf16 %v5974_v4 }
 0x76d   : > { %v3509_v29 = vadd.f32 %v3477_v16, %v3389_v36  ;;  %v3543_v46 = vmax.f32 %v3511_v42, 0.0  ;;  %v3486_v42 = vunpack.c.l.bf16 %v5974_v4 }
 0x76f   : > { %v3541_v43 = vmax.f32 %v3509_v29, 0.0  ;;  %v3567_v25 = vpack.c.bf16 %v3543_v46, %v3542_v21 }
 0x771   : > { %v3566_v48 = vpack.c.bf16 %v3541_v43, %v3540_v30  ;;  %v3590_v39 = vunpack.c.l.bf16 %v3567_v25  ;;  %v3591_v2 = vunpack.c.h.bf16 %v3567_v25  ;;  %v3485_v30 = vunpack.c.h.bf16 %v5972_v11 }
 0x773   : > { %v3588_v35 = vunpack.c.l.bf16 %v3566_v48  ;;  %v3589_v47 = vunpack.c.h.bf16 %v3566_v48 }
 0x775   : > { %v3619_v63 = vadd.f32 %v3618_v9, %v3588_v35 }
 0x777   : > { %v3620_v10 = vadd.f32 %v3619_v63, %v3589_v47  ;;  %v4524_v28 = vpop.f32.mrf.mxu1 }
 0x778   : > { %v3410_v55 = vadd.f32 %v4524_v28, %v6046_v51 }
 0x779   : > { %v3621_v41 = vadd.f32 %v3620_v10, %v3590_v39  ;;  %v3401_v38 = vpop.f32.mrf.mxu1 }
 0x77a   : > { %v3402_v31 = vadd.f32 %v6046_v51, %v3401_v38  ;;  %v3514_v44 = vadd.f32 %v3482_v53, %v3410_v55  ;;  %v3491_v53 = vunpack.c.h.bf16 %v5988_v24 }
 0x77b   : > { %v4525_v1 = vpop.f32.mrf.mxu1  ;;  %v3622_v32 = vadd.f32 %v3621_v41, %v3591_v2 }
 0x77c   : > { %v3413_v49 = vadd.f32 %v4525_v1, %v6046_v51  ;;  %v3512_v3 = vadd.f32 %v3480_v14, %v3402_v31  ;;  %v3546_v22 = vmax.f32 %v3514_v44, 0.0  ;;  %v3489_v44 = vunpack.c.h.bf16 %v5986_v33 }
 0x77d   : > { %v3404_v40 = vpop.f32.mrf.mxu1 }
 0x77e   : > { %v3515_v7 = vadd.f32 %v3483_v37, %v3413_v49  ;;  %v3405_v50 = vadd.f32 %v6046_v51, %v3404_v40  ;;  %v3544_v45 = vmax.f32 %v3512_v3, 0.0  ;;  %v3488_v49 = vunpack.c.l.bf16 %v5986_v33 }
 0x77f   : > { %v3490_v40 = vunpack.c.l.bf16 %v5988_v24 }
 0x780   : > { %v3513_v60 = vadd.f32 %v3481_v58, %v3405_v50  ;;  %v3547_v52 = vmax.f32 %v3515_v7, 0.0 }
 0x782   : > { %v3545_v27 = vmax.f32 %v3513_v60, 0.0  ;;  %v3569_v0 = vpack.c.bf16 %v3547_v52, %v3546_v22 }
 0x784   : > { %v3568_v61 = vpack.c.bf16 %v3545_v27, %v3544_v45  ;;  %v3594_v57 = vunpack.c.l.bf16 %v3569_v0  ;;  %v3595_v56 = vunpack.c.h.bf16 %v3569_v0 }
 0x786   : > { %v3592_v18 = vunpack.c.l.bf16 %v3568_v61  ;;  %v3593_v5 = vunpack.c.h.bf16 %v3568_v61 }
 0x788   : > { %v3623_v13 = vadd.f32 %v3622_v32, %v3592_v18 }
 0x78a   : > { %v3624_v34 = vadd.f32 %v3623_v13, %v3593_v5  ;;  %v4528_v8 = vpop.f32.mrf.mxu1 }
 0x78b   : > { %v3426_v17 = vadd.f32 %v4528_v8, %v6046_v51 }
 0x78c   : > { %v3625_v9 = vadd.f32 %v3624_v34, %v3594_v57  ;;  %v3417_v15 = vpop.f32.mrf.mxu1 }
 0x78d   : > { %v3418_v6 = vadd.f32 %v6046_v51, %v3417_v15  ;;  %v3518_v46 = vadd.f32 %v3486_v42, %v3426_v17  ;;  %v3492_v17 = vunpack.c.l.bf16 %v6000_v59 }
 0x78e   : > { %v4529_v54 = vpop.f32.mrf.mxu1  ;;  %v3626_v19 = vadd.f32 %v3625_v9, %v3595_v56 }
 0x78f   : > { %v3429_v20 = vadd.f32 %v4529_v54, %v6046_v51  ;;  %v3516_v16 = vadd.f32 %v3484_v12, %v3418_v6  ;;  %v3550_v35 = vmax.f32 %v3518_v46, 0.0 }
 0x790   : > { %v3420_v36 = vpop.f32.mrf.mxu1 }
 0x791   : > { %v3519_v26 = vadd.f32 %v3487_v23, %v3429_v20  ;;  %v3421_v29 = vadd.f32 %v6046_v51, %v3420_v36  ;;  %v3548_v21 = vmax.f32 %v3516_v16, 0.0  ;;  %v3495_v20 = vunpack.c.h.bf16 %v6002_v62 }
 0x792   : > { %v3494_v23 = vunpack.c.l.bf16 %v6002_v62 }
 0x793   : > { %v3517_v43 = vadd.f32 %v3485_v30, %v3421_v29  ;;  %v3551_v48 = vmax.f32 %v3519_v26, 0.0  ;;  %v3493_v29 = vunpack.c.h.bf16 %v6000_v59 }
 0x795   : > { %v3549_v25 = vmax.f32 %v3517_v43, 0.0  ;;  %v3571_v63 = vpack.c.bf16 %v3551_v48, %v3550_v35 }
 0x797   : > { %v3570_v47 = vpack.c.bf16 %v3549_v25, %v3548_v21  ;;  %v3598_v2 = vunpack.c.l.bf16 %v3571_v63  ;;  %v3599_v38 = vunpack.c.h.bf16 %v3571_v63 }
 0x799   : > { %v3596_v39 = vunpack.c.l.bf16 %v3570_v47  ;;  %v3597_v10 = vunpack.c.h.bf16 %v3570_v47 }
 0x79b   : > { %v3627_v28 = vadd.f32 %v3626_v19, %v3596_v39 }
 0x79d   : > { %v3628_v4 = vadd.f32 %v3627_v28, %v3597_v10  ;;  %v4532_v41 = vpop.f32.mrf.mxu1 }
 0x79e   : > { %v3442_v14 = vadd.f32 %v4532_v41, %v6046_v51 }
 0x79f   : > { %v3629_v31 = vadd.f32 %v3628_v4, %v3598_v2  ;;  %v3433_v1 = vpop.f32.mrf.mxu1 }
 0x7a0   : > { %v3434_v32 = vadd.f32 %v6046_v51, %v3433_v1  ;;  %v3522_v60 = vadd.f32 %v3490_v40, %v3442_v14 }
 0x7a1   : > { %v4533_v11 = vpop.f32.mrf.mxu1  ;;  %v3630_v55 = vadd.f32 %v3629_v31, %v3599_v38 }
 0x7a2   : > { %v3445_v37 = vadd.f32 %v4533_v11, %v6046_v51  ;;  %v3520_v7 = vadd.f32 %v3488_v49, %v3434_v32  ;;  %v3554_v61 = vmax.f32 %v3522_v60, 0.0  ;;  %v3646_v11 = vld [vmem:[%s6067_s8] sm:$0x1] }
 0x7a3   : > { %v3436_v3 = vpop.f32.mrf.mxu1 }
 0x7a4   : > { %v3523_v50 = vadd.f32 %v3491_v53, %v3445_v37  ;;  %v3437_v58 = vadd.f32 %v6046_v51, %v3436_v3  ;;  %v3552_v52 = vmax.f32 %v3520_v7, 0.0 }
 0x7a6   : > { %v3521_v45 = vadd.f32 %v3489_v44, %v3437_v58  ;;  %v3555_v27 = vmax.f32 %v3523_v50, 0.0 }
 0x7a8   : > { %v3553_v22 = vmax.f32 %v3521_v45, 0.0  ;;  %v3573_v18 = vpack.c.bf16 %v3555_v27, %v3554_v61 }
 0x7aa   : > { %v3572_v0 = vpack.c.bf16 %v3553_v22, %v3552_v52  ;;  %v3602_v34 = vunpack.c.l.bf16 %v3573_v18  ;;  %v3603_v56 = vunpack.c.h.bf16 %v3573_v18 }
 0x7ac   : > { %v3600_v5 = vunpack.c.l.bf16 %v3572_v0  ;;  %v3601_v13 = vunpack.c.h.bf16 %v3572_v0 }
 0x7ae   : > { %v3631_v57 = vadd.f32 %v3630_v55, %v3600_v5 }
 0x7b0   : > { %v3632_v24 = vadd.f32 %v3631_v57, %v3601_v13  ;;  %v4536_v8 = vpop.f32.mrf.mxu1 }
 0x7b1   : > { %v3458_v19 = vadd.f32 %v4536_v8, %v6046_v51 }
 0x7b2   : > { %v3633_v9 = vadd.f32 %v3632_v24, %v3602_v34  ;;  %v3449_v15 = vpop.f32.mrf.mxu1 }
 0x7b3   : > { %v3450_v6 = vadd.f32 %v6046_v51, %v3449_v15  ;;  %v3526_v30 = vadd.f32 %v3494_v23, %v3458_v19 }
 0x7b4   : > { %v4537_v33 = vpop.f32.mrf.mxu1  ;;  %v3634_v54 = vadd.f32 %v3633_v9, %v3603_v56 }
 0x7b5   : > { %v3461_v12 = vadd.f32 %v4537_v33, %v6046_v51  ;;  %v3524_v36 = vadd.f32 %v3492_v17, %v3450_v6  ;;  %v3558_v25 = vmax.f32 %v3526_v30, 0.0 }
 0x7b6   : > { %v3452_v42 = vpop.f32.mrf.mxu1 }
 0x7b7   : > { %v3527_v16 = vadd.f32 %v3495_v20, %v3461_v12  ;;  %v3453_v26 = vadd.f32 %v6046_v51, %v3452_v42  ;;  %v3556_v43 = vmax.f32 %v3524_v36, 0.0 }
 0x7b9   : > { %v3525_v46 = vadd.f32 %v3493_v29, %v3453_v26  ;;  %v3559_v21 = vmax.f32 %v3527_v16, 0.0 }
 0x7bb   : > { %v3557_v48 = vmax.f32 %v3525_v46, 0.0  ;;  %v3575_v47 = vpack.c.bf16 %v3559_v21, %v3558_v25 }
 0x7bd   : > { %v3574_v35 = vpack.c.bf16 %v3557_v48, %v3556_v43  ;;  %v3606_v10 = vunpack.c.l.bf16 %v3575_v47  ;;  %v3607_v2 = vunpack.c.h.bf16 %v3575_v47 }
 0x7bf   : > { %v3604_v63 = vunpack.c.l.bf16 %v3574_v35  ;;  %v3605_v62 = vunpack.c.h.bf16 %v3574_v35 }
 0x7c1   : > { %v3635_v39 = vadd.f32 %v3634_v54, %v3604_v63 }
 0x7c3   : > { %v3636_v28 = vadd.f32 %v3635_v39, %v3605_v62 }
 0x7c5   : > { %v3637_v51 = vadd.f32 %v3636_v28, %v3606_v10 }
 0x7c7   : > { %v3638_v59 = vadd.f32 %v3637_v51, %v3607_v2 }
 0x7c9   : > { %v3639_v4 = vrot.slane %v3638_v59, 4 }
 0x7cb   : > { %v3640_v41 = vadd.f32 %v3639_v4, %v3638_v59 }
 0x7cd   : > { %v3641_v38 = vrot.slane %v3640_v41, 2 }
 0x7cf   : > { %v3642_v31 = vadd.f32 %v3641_v38, %v3640_v41 }
 0x7d1   : > { %v3643_v1 = vrot.slane %v3642_v31, 1 }
 0x7d3   : > { %v3644_v32 = vadd.f32 %v3643_v1, %v3642_v31 }
 0x7d5   : > { %v3645_v55 = vmul.f32 0.00390625, %v3644_v32 }
 0x7d7   : > { %v3647_v14 = vadd.f32 %v3646_v11, %v3645_v55 }
 0x7d9   : > { %3648 = vst [vmem:[%s6067_s8] sm:$0x1] %v3647_v14 }
 0x7da   : > { %4983 = shalt.err (!%p4980_p3)
}
 0x7db   : > { %s4984_s23 = scalar_lea.hbm %s3660_s18, 16  ;;  %s4988_s8 = scalar_lea.hbm %s6168_s7, 32 }
 0x7dc   : > { %p4985_p5 = scmp.ne.s32.totalorder %s3660_s18, %s4984_s23  ;;  %p4989_p9 = scmp.lt.s32.totalorder %s3660_s18, %s6168_s7 }
 0x7dd   : > { %p4990_p12 = scmp.lt.s32.totalorder %s4988_s8, %s4984_s23 }
 0x7de   : > { %p4986_p6 = pnand %p4985_p5, %p5140_p4 }
 0x7df   : > { %p4991_p10 = por %p4990_p12, %p4989_p9 }
 0x7e0   : > { %p4987_p7 = pneg %p4986_p6 }
 0x7e2   : > { %p4992_p11 = pnand %p4991_p10, %p4987_p7 }
 0x7e4   : > { %4995 = shalt.err (!%p4992_p11)
}
 0x7e5   : > { %4542 = dma.vmem_to_hbm [thread:$0]  (%p5140_p4), %s3663_s12, 16, %s3660_s18, %s3650_s19  }
 0x7e6 PF: > { %p4554_p13 = scmp.ge.s32.totalorder %s5050_s29, 2  ;;  %s3674_s17 = sand.u32 1, %s5030_s24  }
 0x7e7   : > { %s3675_s20 = scalar_lea.sflag [#allocation4], %s3674_s17 }
 0x7e8   : > { %p4549_p0 = pnand %p4554_p13, %p5147_p8 }
 0x7ea   : > { %p4550_p1 = pneg %p4549_p0 }
 0x7ec   : > { %5025 = dma.done.wait (%p4550_p1), %s3675_s20, 16  }
 0x7ed   : > { %5027 = vsyncadd (%p4550_p1), %s3675_s20, 4294967280  ;;  %s21_s29 = sadd.s32 1, %s5050_s29   ;;  %s6173_s24 = smov %s5034_s25 }
 0x7ee   : > { %p18_p2 = scmp.ge.s32.totalorder %s21_s29, 4   ;;  %s6174_s25 = smov %s5038_s26 }
 0x7ef   : > { %s6175_s26 = smov %s5153_s14  ;;  %s6176_s27 = smov %s5046_s28 }
 0x7f0   : > { %s6177_s28 = smov %s6179_s9  ;;  %20 = sbr.rel (!%p18_p2) target bundleno = 5 (0x5), region = 104 }
 0x7f5   :  { %3679 = vsyncpa [#allocation3], 1 }
 0x7f6   :  { %3681 = vsyncpa [#allocation3 + $0x1], 1 }
 0x7f7   :  { %3682 = vsyncpa [#allocation4], 1 }
 0x7f8   :  { %3684 = vsyncpa [#allocation4 + $0x1], 1 }

</bundles_post_ra>
